<compile_context>
chip_gen: v7x
topology: tpu7x:2x2x1
jax: 0.10.0
libtpu: 0.0.40
codegen_flags: <defaults>
</compile_context>

<pallas_src>
import numpy as np
import jax
import jax.numpy as jnp
from jax.experimental import pallas as pl
from jax.experimental.pallas import tpu as pltpu

# ----------------------------- config ----------------------------------------
J = 2              # scattering scales
L = 4              # orientations
M_IN = 16          # module's M (height)
N_IN = 16          # module's N (width)
B = 2              # batch
C = 3              # channels
RANDOM_PROJ = 32   # SparseRandomProjection n_components
NUM_CLASSES = 10   # `last` chosen as nn.Linear(RANDOM_PROJ, NUM_CLASSES)
MAX_POOL = False   # spatial after scattering = 4; MaxPool2d(4 // 8) invalid -> branch off
GLOBAL_POOL = True
K_COEFF = 1 + J * L + (L * L) * (J * (J - 1) // 2)   # 25 scattering paths

P = M_IN * N_IN                       # 256 flattened spatial
F = J * L                             # 8 band-pass filters
LP = L * P                            # 1024 = width of one re (or im) per-scale block
POUT = (M_IN >> J) * (N_IN >> J)      # 16 spatial after 2^J subsample
N_IMG = B * C                         # 6 images (batch x channel)
N_IMG_PAD = 8                         # pad rows to sublane multiple
R1 = F * N_IMG_PAD                    # 64 order-1 rows  (row = f*8 + i)
R2 = L * L * N_IMG_PAD                # 128 order-2 rows (row = t2*32 + t1*8 + i)
U1_BASE = N_IMG_PAD                   # 8   : first order-1 row in the slab
U2_BASE = N_IMG_PAD + R1              # 72  : first order-2 row in the slab
ROWS = 208                            # 8 + 64 + 128 = 200, padded to bf16 tile (16) multiple


# --------------- Morlet filter bank -> circular-conv operators (glue) --------
def _morlet_filter_bank(M, N, J_, L_, sigma0=0.8, xi0=3.0 * np.pi / 4.0, slant=0.5):
    kx = 2.0 * np.pi * np.fft.fftfreq(M)
    ky = 2.0 * np.pi * np.fft.fftfreq(N)
    KX, KY = np.meshgrid(kx, ky, indexing="ij")
    psis = []
    for j in range(J_):
        sigma = sigma0 * (2.0 ** j)
        xi = xi0 / (2.0 ** j)
        for t in range(L_):
            theta = (np.pi / L_) * t
            c, s = np.cos(theta), np.sin(theta)
            kpar = KX * c + KY * s
            kperp = -KX * s + KY * c
            gab = np.exp(-(sigma ** 2) * ((kpar - xi) ** 2 + (slant * kperp) ** 2) / 2.0)
            gab0 = np.exp(-(sigma ** 2) * (kpar ** 2 + (slant * kperp) ** 2) / 2.0)
            psi_hat = gab - (gab[0, 0] / gab0[0, 0]) * gab0   # zero-mean (Morlet)
            psis.append(psi_hat)
    sigma_J = sigma0 * (2.0 ** J_)
    phi_hat = np.exp(-(sigma_J ** 2) * (KX ** 2 + KY ** 2) / 2.0)
    return np.stack(psis, axis=0), phi_hat


def _circular_conv_operator(h_spatial, M, N):
    # C[(i1,j1),(i2,j2)] = h[(i1-i2)%M, (j1-j2)%N]  (periodic conv as a matrix)
    di = (np.arange(M)[:, None] - np.arange(M)[None, :]) % M
    dj = (np.arange(N)[:, None] - np.arange(N)[None, :]) % N
    C4 = h_spatial[di[:, None, :, None], dj[None, :, None, :]]   # (M,N,M,N)
    return C4.reshape(M * N, M * N)


def build_operators(M, N, J_, L_):
    psi_hat, phi_hat = _morlet_filter_bank(M, N, J_, L_)
    wre, wim = [], []
    for f in range(J_ * L_):
        h = np.fft.ifft2(psi_hat[f])                              # complex spatial Morlet
        wre.append(_circular_conv_operator(h.real, M, N).T)       # stored so y = x @ W
        wim.append(_circular_conv_operator(h.imag, M, N).T)
    phi_sp = np.real(np.fft.ifft2(phi_hat))
    cphi = _circular_conv_operator(phi_sp, M, N)
    step = 2 ** J_
    rows = (np.arange(0, M, step)[:, None] * N + np.arange(0, N, step)[None, :]).reshape(-1)
    wphi_t = cphi[rows, :].T                                      # (P, Pout): low-pass + 2^J subsample
    return (np.stack(wre).astype(np.float32),
            np.stack(wim).astype(np.float32),
            wphi_t.astype(np.float32))


# --------------------------- the single fused kernel ---------------------------
def _scat_fused_kernel(x_ref, wpsi_ref, wphi_ref, sel_ref, wexp_ref, bias_ref,
                       out_ref, buf):
    k = pl.program_id(0)
    x0 = x_ref[...]                                   # (8, 256) bf16
    wblk = wpsi_ref[...]                              # (256, 2048) bf16: [re j=k | im j=k]

    # ---- order 1 at scale j=k.  Runs at BOTH grid steps so the j=1 filter
    # block's 1 MiB DMA overlaps the step-0 compute.  bf16 x bf16 -> f32 MXU.
    y1 = jnp.dot(x0, wblk, preferred_element_type=jnp.float32)           # (8, 2048)
    u1 = jnp.sqrt(y1[:, :LP] * y1[:, :LP] + y1[:, LP:] * y1[:, LP:]
                  ).astype(jnp.bfloat16)                                 # (8, 1024)

    def write_u1(row0):
        # static, 256-lane-aligned (8,256) stores; slab row = row0 + t*8 + i
        for t in range(L):
            buf[pl.ds(row0 + t * N_IMG_PAD, N_IMG_PAD), :] = u1[:, t * P:(t + 1) * P]

    @pl.when(k == 0)
    def _():
        write_u1(U1_BASE)                                                # j=0 -> rows 8..39
        buf[pl.ds(0, N_IMG_PAD), :] = x0                                 # order-0 rows 0..7
        buf[pl.ds(ROWS - N_IMG_PAD, N_IMG_PAD), :] = jnp.zeros_like(x0)  # pad rows 200..207

    @pl.when(k == pl.num_programs(0) - 1)
    def _():
        write_u1(U1_BASE + L * N_IMG_PAD)                                # j=1 -> rows 40..71

        # ---- order 2: ||x * psi_{0,t1}| * psi_{1,t2}| (j2 > j1 only); the
        # resident wblk at this step IS the j=1 filter block -> ONE wide matmul.
        x2 = buf[pl.ds(U1_BASE, L * N_IMG_PAD), :]                       # (32, 256) bf16
        y2 = jnp.dot(x2, wblk, preferred_element_type=jnp.float32)       # (32, 2048)
        u2 = jnp.sqrt(y2[:, :LP] * y2[:, :LP] + y2[:, LP:] * y2[:, LP:]
                      ).astype(jnp.bfloat16)                             # (32, 1024)
        for t2 in range(L):   # slab row = 72 + t2*32 + t1*8 + i
            buf[pl.ds(U2_BASE + t2 * L * N_IMG_PAD, L * N_IMG_PAD), :] = \
                u2[:, t2 * P:(t2 + 1) * P]

        # ---- low-pass phi_J + 2^J subsample fused with the GLOBAL MAX pool,
        # done ONCE over the whole consolidated slab (nothing leaves VMEM).
        s = jnp.dot(buf[...], wphi_ref[...],
                    preferred_element_type=jnp.float32)                  # (208, 16)
        pool = jnp.max(s, axis=-1, keepdims=True)                        # (208, 1)

        # ---- tail: pre-composed SparseRandomProjection @ Linear (+ bias):
        #     out[b] = bias + sum_r sel[b, r] * pool[r] * wexp[r, :]
        out_ref[...] = jnp.dot(sel_ref[...], pool * wexp_ref[...],
                               preferred_element_type=jnp.float32) + bias_ref[...]


def scat_forward(x, wpsi_bf16, wphi_bf16, sel, wexp, bias_row):
    Bx, Cx, M, N = x.shape
    x0 = x.reshape(Bx * Cx, M * N).astype(jnp.bfloat16)
    x0p = jnp.zeros((N_IMG_PAD, P), jnp.bfloat16).at[:Bx * Cx].set(x0)   # pad 6 -> 8 rows
    return pl.pallas_call(
        _scat_fused_kernel,
        out_shape=jax.ShapeDtypeStruct((Bx, NUM_CLASSES), jnp.float32),
        grid=(J,),
        in_specs=[
            pl.BlockSpec((N_IMG_PAD, P), lambda k: (0, 0)),              # x        (resident)
            pl.BlockSpec((P, 2 * LP), lambda k: (0, k)),                 # filters  (per-scale block)
            pl.BlockSpec((P, POUT), lambda k: (0, 0)),                   # phi      (resident)
            pl.BlockSpec((B, ROWS), lambda k: (0, 0)),                   # sel      (resident)
            pl.BlockSpec((ROWS, NUM_CLASSES), lambda k: (0, 0)),         # wexp     (resident)
            pl.BlockSpec((1, NUM_CLASSES), lambda k: (0, 0)),            # bias     (resident)
        ],
        out_specs=pl.BlockSpec((Bx, NUM_CLASSES), lambda k: (0, 0)),
        scratch_shapes=[pltpu.VMEM((ROWS, P), jnp.bfloat16)],            # consolidated slab
        compiler_params=pltpu.CompilerParams(
            dimension_semantics=("arbitrary",)),                         # sequential: step 1 reads step-0 slab
    )(x0p, wpsi_bf16, wphi_bf16, sel, wexp, bias_row)


# -------- host-side precompute: pre-composed tail maps on the slab layout --------
def build_tail_maps(wtail):
    """wtail: (C*K_COEFF, NUM_CLASSES) = rp_t @ last_w_t, expanded onto the kernel's
    consolidated pooled-row layout: ONE selection matrix + ONE weight matrix."""
    wtail = np.asarray(wtail, dtype=np.float32)
    sel = np.zeros((B, ROWS), np.float32)
    wexp = np.zeros((ROWS, NUM_CLASSES), np.float32)
    for i in range(N_IMG):                      # i = b*C + c ; pad rows stay zero
        b, c = divmod(i, C)
        sel[b, i] = 1.0
        wexp[i] = wtail[c * K_COEFF + 0]                        # order-0 path
        for f in range(F):                                       # path k = 1 + f
            r = U1_BASE + f * N_IMG_PAD + i
            sel[b, r] = 1.0
            wexp[r] = wtail[c * K_COEFF + 1 + f]
        for t1 in range(L):
            for t2 in range(L):                                  # path k = 1 + J*L + t1*L + t2
                r = U2_BASE + t2 * (L * N_IMG_PAD) + t1 * N_IMG_PAD + i
                sel[b, r] = 1.0
                wexp[r] = wtail[c * K_COEFF + 1 + J * L + t1 * L + t2]
    return jnp.asarray(sel), jnp.asarray(wexp)


# ------------------------- pure-JAX reference (check) -------------------------
def reference_forward(x, wre_t, wim_t, wphi_t, wtail, last_b_row):
    Bx, Cx, M, N = x.shape
    Pf = M * N
    Mo, No = M >> J, N >> J
    bf = lambda a: a.astype(jnp.bfloat16).astype(jnp.float32)   # mirror kernel bf16 rounding
    x0 = bf(x.reshape(Bx * Cx, Pf).astype(jnp.float32))

    def cmod_ref(xx, wr, wi):
        yre = jnp.einsum("ip,fpq->fiq", xx, wr)
        yim = jnp.einsum("ip,fpq->fiq", xx, wi)
        return jnp.sqrt(yre * yre + yim * yim)

    u1 = bf(cmod_ref(x0, wre_t, wim_t))
    u1_t = jnp.transpose(u1, (1, 0, 2))
    x2 = u1_t[:, :L, :].reshape(Bx * Cx * L, Pf)
    u2 = bf(cmod_ref(x2, wre_t[L:2 * L], wim_t[L:2 * L]))
    u2_t = jnp.transpose(u2, (1, 0, 2)).reshape(Bx * Cx, L * L, Pf)
    s_in = jnp.concatenate([x0[:, None, :], u1_t, u2_t], axis=1)
    s = s_in.reshape(Bx * Cx * K_COEFF, Pf) @ wphi_t
    s = s.reshape(Bx, Cx, K_COEFF, Mo, No)           # scattering output (squeeze is a no-op)
    # MAX_POOL branch disabled (spatial // 8 == 0 at this config); GLOBAL_POOL:
    pooled = jnp.max(s.reshape(Bx * Cx * K_COEFF, Mo * No), axis=-1)
    feat = pooled.reshape(Bx, Cx * K_COEFF)
    return feat @ wtail + last_b_row                 # pre-composed rp @ last + bias


# ----------------------------------- main -------------------------------------
if __name__ == "__main__":
    assert GLOBAL_POOL and not MAX_POOL

    wre_np, wim_np, wphi_np = build_operators(M_IN, N_IN, J, L)

    # pack per-scale [re j | im j] blocks (column blocks 0:2048 = j0, 2048:4096 = j1);
    # stored bf16: halves the dominant HBM traffic and feeds the MXU at native rate
    blocks = []
    for j in range(J):
        blocks += [wre_np[j * L + t] for t in range(L)]
        blocks += [wim_np[j * L + t] for t in range(L)]
    wpsi_bf16 = jnp.asarray(np.hstack(blocks)).astype(jnp.bfloat16)      # (256, 4096)
    wphi_bf16 = jnp.asarray(wphi_np).astype(jnp.bfloat16)                # (256, 16)

    # reference uses the same bf16-rounded filters so the comparison is tight
    wpsi_rt = np.asarray(wpsi_bf16.astype(jnp.float32))
    wre_rt, wim_rt = [], []
    for j in range(J):
        off = j * 2 * LP
        for t in range(L):
            wre_rt.append(wpsi_rt[:, off + t * P: off + (t + 1) * P])
        for t in range(L):
            wim_rt.append(wpsi_rt[:, off + LP + t * P: off + LP + (t + 1) * P])
    wre_rt = jnp.asarray(np.stack(wre_rt))
    wim_rt = jnp.asarray(np.stack(wim_rt))
    wphi_rt = wphi_bf16.astype(jnp.float32)

    key = jax.random.PRNGKey(0)
    kx, kr1, kr2, kw, kb = jax.random.split(key, 5)
    x = jax.random.normal(kx, (B, C, M_IN, N_IN), dtype=jnp.float32)

    # SparseRandomProjection components (deterministic, sklearn-style density)
    n_feat = C * K_COEFF                                     # 75 features after global pool
    density = 1.0 / np.sqrt(n_feat)
    mask = (jax.random.uniform(kr1, (RANDOM_PROJ, n_feat)) < density).astype(jnp.float32)
    signs = jnp.where(jax.random.uniform(kr2, (RANDOM_PROJ, n_feat)) < 0.5, -1.0, 1.0)
    rp = mask * signs * np.float32(np.sqrt(1.0 / density) / np.sqrt(RANDOM_PROJ))
    rp_t = rp.T.astype(jnp.float32)                          # (75, RANDOM_PROJ)

    # `last` = nn.Linear(RANDOM_PROJ, NUM_CLASSES), deterministic init
    last_w = jax.random.normal(kw, (NUM_CLASSES, RANDOM_PROJ), dtype=jnp.float32) / np.sqrt(RANDOM_PROJ)
    last_b = 0.01 * jax.random.normal(kb, (NUM_CLASSES,), dtype=jnp.float32)
    last_b_row = last_b.reshape(1, NUM_CLASSES)

    # pre-compose SparseRandomProjection with `last` (no nonlinearity between them)
    wtail = rp_t @ last_w.T                                  # (75, 10)
    sel, wexp = build_tail_maps(wtail)

    fwd = jax.jit(scat_forward)
    out = jax.block_until_ready(fwd(x, wpsi_bf16, wphi_bf16, sel, wexp, last_b_row))

    ref = jax.block_until_ready(
        reference_forward(x, wre_rt, wim_rt, wphi_rt, wtail, last_b_row))

    assert out.shape == (B, NUM_CLASSES), out.shape
    assert bool(jnp.all(jnp.isfinite(out)))
    assert bool(jnp.allclose(out, ref, rtol=5e-2, atol=5e-2))
    print("KERNEL_OK")
</pallas_src>

<mosaic_0001>
module attributes {stable_mosaic.version = 11 : i64} {
  func.func @_scat_fused_kernel(%arg0: i32, %arg1: memref<8x256xbf16, #tpu.memory_space<vmem>>, %arg2: memref<256x2048xbf16, #tpu.memory_space<vmem>>, %arg3: memref<256x16xbf16, #tpu.memory_space<vmem>>, %arg4: memref<2x208xf32, #tpu.memory_space<vmem>>, %arg5: memref<208x10xf32, #tpu.memory_space<vmem>>, %arg6: memref<1x10xf32, #tpu.memory_space<vmem>>, %arg7: memref<2x10xf32, #tpu.memory_space<vmem>>, %arg8: memref<208x256xbf16, #tpu.memory_space<vmem>>) attributes {dimension_semantics = [#tpu.dimension_semantics<arbitrary>], iteration_bounds = array<i64: 2>, scalar_prefetch = 0 : i64, scratch_operands = 1 : i64, tpu.core_type = #tpu.core_type<tc>, window_params = [{pipeline_mode = #tpu.pipeline_mode<synchronous>, transform_indices = @transform_0, window_bounds = array<i64: 8, 256>}, {transform_indices = @transform_1, window_bounds = array<i64: 256, 2048>}, {pipeline_mode = #tpu.pipeline_mode<synchronous>, transform_indices = @transform_2, window_bounds = array<i64: 256, 16>}, {pipeline_mode = #tpu.pipeline_mode<synchronous>, transform_indices = @transform_3, window_bounds = array<i64: 2, 208>}, {pipeline_mode = #tpu.pipeline_mode<synchronous>, transform_indices = @transform_4, window_bounds = array<i64: 208, 10>}, {pipeline_mode = #tpu.pipeline_mode<synchronous>, transform_indices = @transform_5, window_bounds = array<i64: 1, 10>}, {pipeline_mode = #tpu.pipeline_mode<synchronous>, transform_indices = @transform_6, window_bounds = array<i64: 2, 10>}]} {
    %c0 = arith.constant 0 : index
    %c0_0 = arith.constant 0 : index
    %0 = vector.load %arg1[%c0, %c0_0] : memref<8x256xbf16, #tpu.memory_space<vmem>>, vector<8x256xbf16>
    %c0_1 = arith.constant 0 : index
    %c0_2 = arith.constant 0 : index
    %1 = vector.load %arg2[%c0_1, %c0_2] : memref<256x2048xbf16, #tpu.memory_space<vmem>>, vector<256x2048xbf16>
    %cst = arith.constant dense<0.000000e+00> : vector<8x2048xf32>
    %2 = tpu.matmul %0, %1, %cst {dimension_numbers = #tpu.dot_dimension_numbers<[1], [0], [0], [1], [0, 0, 1, 1], [], []>} : vector<8x256xbf16>, vector<256x2048xbf16>, vector<8x2048xf32> -> vector<8x2048xf32>
    %3 = vector.extract_strided_slice %2 {offsets = [0, 0], sizes = [8, 1024], strides = [1, 1]} : vector<8x2048xf32> to vector<8x1024xf32>
    %4 = vector.extract_strided_slice %2 {offsets = [0, 0], sizes = [8, 1024], strides = [1, 1]} : vector<8x2048xf32> to vector<8x1024xf32>
    %5 = arith.mulf %3, %4 : vector<8x1024xf32>
    %6 = vector.extract_strided_slice %2 {offsets = [0, 1024], sizes = [8, 1024], strides = [1, 1]} : vector<8x2048xf32> to vector<8x1024xf32>
    %7 = vector.extract_strided_slice %2 {offsets = [0, 1024], sizes = [8, 1024], strides = [1, 1]} : vector<8x2048xf32> to vector<8x1024xf32>
    %8 = arith.mulf %6, %7 : vector<8x1024xf32>
    %9 = arith.addf %5, %8 : vector<8x1024xf32>
    %10 = math.sqrt %9 : vector<8x1024xf32>
    %11 = arith.truncf %10 : vector<8x1024xf32> to vector<8x1024xbf16>
    %c0_i32 = arith.constant 0 : i32
    %12 = arith.cmpi eq, %arg0, %c0_i32 : i32
    %13 = arith.extui %12 : i1 to i32
    %c0_i32_3 = arith.constant 0 : i32
    %14 = arith.cmpi ne, %13, %c0_i32_3 : i32
    scf.if %14 {
      %18 = vector.extract_strided_slice %11 {offsets = [0, 0], sizes = [8, 256], strides = [1, 1]} : vector<8x1024xbf16> to vector<8x256xbf16>
      %c8 = arith.constant 8 : index
      %c0_5 = arith.constant 0 : index
      %19 = vector.load %arg8[%c8, %c0_5] : memref<208x256xbf16, #tpu.memory_space<vmem>>, vector<8x256xbf16>
      tpu.vector_store %arg8[%c8, %c0_5], %18 {strides = array<i32>} : memref<208x256xbf16, #tpu.memory_space<vmem>>, vector<8x256xbf16>,
      %20 = vector.extract_strided_slice %11 {offsets = [0, 256], sizes = [8, 256], strides = [1, 1]} : vector<8x1024xbf16> to vector<8x256xbf16>
      %c16 = arith.constant 16 : index
      %c0_6 = arith.constant 0 : index
      %21 = vector.load %arg8[%c16, %c0_6] : memref<208x256xbf16, #tpu.memory_space<vmem>>, vector<8x256xbf16>
      tpu.vector_store %arg8[%c16, %c0_6], %20 {strides = array<i32>} : memref<208x256xbf16, #tpu.memory_space<vmem>>, vector<8x256xbf16>,
      %22 = vector.extract_strided_slice %11 {offsets = [0, 512], sizes = [8, 256], strides = [1, 1]} : vector<8x1024xbf16> to vector<8x256xbf16>
      %c24 = arith.constant 24 : index
      %c0_7 = arith.constant 0 : index
      %23 = vector.load %arg8[%c24, %c0_7] : memref<208x256xbf16, #tpu.memory_space<vmem>>, vector<8x256xbf16>
      tpu.vector_store %arg8[%c24, %c0_7], %22 {strides = array<i32>} : memref<208x256xbf16, #tpu.memory_space<vmem>>, vector<8x256xbf16>,
      %24 = vector.extract_strided_slice %11 {offsets = [0, 768], sizes = [8, 256], strides = [1, 1]} : vector<8x1024xbf16> to vector<8x256xbf16>
      %c32 = arith.constant 32 : index
      %c0_8 = arith.constant 0 : index
      %25 = vector.load %arg8[%c32, %c0_8] : memref<208x256xbf16, #tpu.memory_space<vmem>>, vector<8x256xbf16>
      tpu.vector_store %arg8[%c32, %c0_8], %24 {strides = array<i32>} : memref<208x256xbf16, #tpu.memory_space<vmem>>, vector<8x256xbf16>,
      %c0_9 = arith.constant 0 : index
      %c0_10 = arith.constant 0 : index
      %26 = vector.load %arg8[%c0_9, %c0_10] : memref<208x256xbf16, #tpu.memory_space<vmem>>, vector<8x256xbf16>
      tpu.vector_store %arg8[%c0_9, %c0_10], %0 {strides = array<i32>} : memref<208x256xbf16, #tpu.memory_space<vmem>>, vector<8x256xbf16>,
      %cst_11 = arith.constant 0.000000e+00 : bf16
      %27 = vector.broadcast %cst_11 : bf16 to vector<8x256xbf16>
      %c200 = arith.constant 200 : index
      %c0_12 = arith.constant 0 : index
      %28 = vector.load %arg8[%c200, %c0_12] : memref<208x256xbf16, #tpu.memory_space<vmem>>, vector<8x256xbf16>
      tpu.vector_store %arg8[%c200, %c0_12], %27 {strides = array<i32>} : memref<208x256xbf16, #tpu.memory_space<vmem>>, vector<8x256xbf16>,
    } else {
    }
    %c1_i32 = arith.constant 1 : i32
    %15 = arith.cmpi eq, %arg0, %c1_i32 : i32
    %16 = arith.extui %15 : i1 to i32
    %c0_i32_4 = arith.constant 0 : i32
    %17 = arith.cmpi ne, %16, %c0_i32_4 : i32
    scf.if %17 {
      %18 = vector.extract_strided_slice %11 {offsets = [0, 0], sizes = [8, 256], strides = [1, 1]} : vector<8x1024xbf16> to vector<8x256xbf16>
      %c40 = arith.constant 40 : index
      %c0_5 = arith.constant 0 : index
      %19 = vector.load %arg8[%c40, %c0_5] : memref<208x256xbf16, #tpu.memory_space<vmem>>, vector<8x256xbf16>
      tpu.vector_store %arg8[%c40, %c0_5], %18 {strides = array<i32>} : memref<208x256xbf16, #tpu.memory_space<vmem>>, vector<8x256xbf16>,
      %20 = vector.extract_strided_slice %11 {offsets = [0, 256], sizes = [8, 256], strides = [1, 1]} : vector<8x1024xbf16> to vector<8x256xbf16>
      %c48 = arith.constant 48 : index
      %c0_6 = arith.constant 0 : index
      %21 = vector.load %arg8[%c48, %c0_6] : memref<208x256xbf16, #tpu.memory_space<vmem>>, vector<8x256xbf16>
      tpu.vector_store %arg8[%c48, %c0_6], %20 {strides = array<i32>} : memref<208x256xbf16, #tpu.memory_space<vmem>>, vector<8x256xbf16>,
      %22 = vector.extract_strided_slice %11 {offsets = [0, 512], sizes = [8, 256], strides = [1, 1]} : vector<8x1024xbf16> to vector<8x256xbf16>
      %c56 = arith.constant 56 : index
      %c0_7 = arith.constant 0 : index
      %23 = vector.load %arg8[%c56, %c0_7] : memref<208x256xbf16, #tpu.memory_space<vmem>>, vector<8x256xbf16>
      tpu.vector_store %arg8[%c56, %c0_7], %22 {strides = array<i32>} : memref<208x256xbf16, #tpu.memory_space<vmem>>, vector<8x256xbf16>,
      %24 = vector.extract_strided_slice %11 {offsets = [0, 768], sizes = [8, 256], strides = [1, 1]} : vector<8x1024xbf16> to vector<8x256xbf16>
      %c64 = arith.constant 64 : index
      %c0_8 = arith.constant 0 : index
      %25 = vector.load %arg8[%c64, %c0_8] : memref<208x256xbf16, #tpu.memory_space<vmem>>, vector<8x256xbf16>
      tpu.vector_store %arg8[%c64, %c0_8], %24 {strides = array<i32>} : memref<208x256xbf16, #tpu.memory_space<vmem>>, vector<8x256xbf16>,
      %c8 = arith.constant 8 : index
      %c0_9 = arith.constant 0 : index
      %26 = vector.load %arg8[%c8, %c0_9] : memref<208x256xbf16, #tpu.memory_space<vmem>>, vector<32x256xbf16>
      %cst_10 = arith.constant dense<0.000000e+00> : vector<32x2048xf32>
      %27 = tpu.matmul %26, %1, %cst_10 {dimension_numbers = #tpu.dot_dimension_numbers<[1], [0], [0], [1], [0, 0, 1, 1], [], []>} : vector<32x256xbf16>, vector<256x2048xbf16>, vector<32x2048xf32> -> vector<32x2048xf32>
      %28 = vector.extract_strided_slice %27 {offsets = [0, 0], sizes = [32, 1024], strides = [1, 1]} : vector<32x2048xf32> to vector<32x1024xf32>
      %29 = vector.extract_strided_slice %27 {offsets = [0, 0], sizes = [32, 1024], strides = [1, 1]} : vector<32x2048xf32> to vector<32x1024xf32>
      %30 = arith.mulf %28, %29 : vector<32x1024xf32>
      %31 = vector.extract_strided_slice %27 {offsets = [0, 1024], sizes = [32, 1024], strides = [1, 1]} : vector<32x2048xf32> to vector<32x1024xf32>
      %32 = vector.extract_strided_slice %27 {offsets = [0, 1024], sizes = [32, 1024], strides = [1, 1]} : vector<32x2048xf32> to vector<32x1024xf32>
      %33 = arith.mulf %31, %32 : vector<32x1024xf32>
      %34 = arith.addf %30, %33 : vector<32x1024xf32>
      %35 = math.sqrt %34 : vector<32x1024xf32>
      %36 = arith.truncf %35 : vector<32x1024xf32> to vector<32x1024xbf16>
      %37 = vector.extract_strided_slice %36 {offsets = [0, 0], sizes = [32, 256], strides = [1, 1]} : vector<32x1024xbf16> to vector<32x256xbf16>
      %c72 = arith.constant 72 : index
      %c0_11 = arith.constant 0 : index
      %38 = vector.load %arg8[%c72, %c0_11] : memref<208x256xbf16, #tpu.memory_space<vmem>>, vector<32x256xbf16>
      tpu.vector_store %arg8[%c72, %c0_11], %37 {strides = array<i32>} : memref<208x256xbf16, #tpu.memory_space<vmem>>, vector<32x256xbf16>,
      %39 = vector.extract_strided_slice %36 {offsets = [0, 256], sizes = [32, 256], strides = [1, 1]} : vector<32x1024xbf16> to vector<32x256xbf16>
      %c104 = arith.constant 104 : index
      %c0_12 = arith.constant 0 : index
      %40 = vector.load %arg8[%c104, %c0_12] : memref<208x256xbf16, #tpu.memory_space<vmem>>, vector<32x256xbf16>
      tpu.vector_store %arg8[%c104, %c0_12], %39 {strides = array<i32>} : memref<208x256xbf16, #tpu.memory_space<vmem>>, vector<32x256xbf16>,
      %41 = vector.extract_strided_slice %36 {offsets = [0, 512], sizes = [32, 256], strides = [1, 1]} : vector<32x1024xbf16> to vector<32x256xbf16>
      %c136 = arith.constant 136 : index
      %c0_13 = arith.constant 0 : index
      %42 = vector.load %arg8[%c136, %c0_13] : memref<208x256xbf16, #tpu.memory_space<vmem>>, vector<32x256xbf16>
      tpu.vector_store %arg8[%c136, %c0_13], %41 {strides = array<i32>} : memref<208x256xbf16, #tpu.memory_space<vmem>>, vector<32x256xbf16>,
      %43 = vector.extract_strided_slice %36 {offsets = [0, 768], sizes = [32, 256], strides = [1, 1]} : vector<32x1024xbf16> to vector<32x256xbf16>
      %c168 = arith.constant 168 : index
      %c0_14 = arith.constant 0 : index
      %44 = vector.load %arg8[%c168, %c0_14] : memref<208x256xbf16, #tpu.memory_space<vmem>>, vector<32x256xbf16>
      tpu.vector_store %arg8[%c168, %c0_14], %43 {strides = array<i32>} : memref<208x256xbf16, #tpu.memory_space<vmem>>, vector<32x256xbf16>,
      %c0_15 = arith.constant 0 : index
      %c0_16 = arith.constant 0 : index
      %45 = vector.load %arg8[%c0_15, %c0_16] : memref<208x256xbf16, #tpu.memory_space<vmem>>, vector<208x256xbf16>
      %c0_17 = arith.constant 0 : index
      %c0_18 = arith.constant 0 : index
      %46 = vector.load %arg3[%c0_17, %c0_18] : memref<256x16xbf16, #tpu.memory_space<vmem>>, vector<256x16xbf16>
      %cst_19 = arith.constant dense<0.000000e+00> : vector<208x16xf32>
      %47 = tpu.matmul %45, %46, %cst_19 {dimension_numbers = #tpu.dot_dimension_numbers<[1], [0], [0], [1], [0, 0, 1, 1], [], []>} : vector<208x256xbf16>, vector<256x16xbf16>, vector<208x16xf32> -> vector<208x16xf32>
      %cst_20 = arith.constant dense<0xFF800000> : vector<208xf32>
      %48 = vector.multi_reduction <maximumf>, %47, %cst_20 [1] : vector<208x16xf32> to vector<208xf32>
      %49 = vector.shape_cast %48 : vector<208xf32> to vector<208x1xf32>
      %c0_21 = arith.constant 0 : index
      %c0_22 = arith.constant 0 : index
      %50 = vector.load %arg4[%c0_21, %c0_22] : memref<2x208xf32, #tpu.memory_space<vmem>>, vector<2x208xf32>
      %c0_23 = arith.constant 0 : index
      %c0_24 = arith.constant 0 : index
      %51 = vector.load %arg5[%c0_23, %c0_24] : memref<208x10xf32, #tpu.memory_space<vmem>>, vector<208x10xf32>
      %52 = vector.broadcast %49 : vector<208x1xf32> to vector<208x10xf32>
      %53 = arith.mulf %52, %51 : vector<208x10xf32>
      %cst_25 = arith.constant dense<0.000000e+00> : vector<2x10xf32>
      %54 = tpu.matmul %50, %53, %cst_25 {dimension_numbers = #tpu.dot_dimension_numbers<[1], [0], [0], [1], [0, 0, 1, 1], [], []>} : vector<2x208xf32>, vector<208x10xf32>, vector<2x10xf32> -> vector<2x10xf32>
      %c0_26 = arith.constant 0 : index
      %c0_27 = arith.constant 0 : index
      %55 = vector.load %arg6[%c0_26, %c0_27] : memref<1x10xf32, #tpu.memory_space<vmem>>, vector<1x10xf32>
      %56 = vector.broadcast %55 : vector<1x10xf32> to vector<2x10xf32>
      %57 = arith.addf %54, %56 : vector<2x10xf32>
      %c0_28 = arith.constant 0 : index
      %c0_29 = arith.constant 0 : index
      %58 = vector.load %arg7[%c0_28, %c0_29] : memref<2x10xf32, #tpu.memory_space<vmem>>, vector<2x10xf32>
      tpu.vector_store %arg7[%c0_28, %c0_29], %57 {strides = array<i32>} : memref<2x10xf32, #tpu.memory_space<vmem>>, vector<2x10xf32>,
    } else {
    }
    return
  }
  func.func @transform_0(%arg0: i32) -> (i32, i32) {
    %c0_i32 = arith.constant 0 : i32
    %c0_i32_0 = arith.constant 0 : i32
    %c0_i32_1 = arith.constant 0 : i32
    return %c0_i32, %c0_i32_0 : i32, i32
  }
  func.func @transform_1(%arg0: i32) -> (i32, i32) {
    %c0_i32 = arith.constant 0 : i32
    %c0_i32_0 = arith.constant 0 : i32
    return %c0_i32, %arg0 : i32, i32
  }
  func.func @transform_2(%arg0: i32) -> (i32, i32) {
    %c0_i32 = arith.constant 0 : i32
    %c0_i32_0 = arith.constant 0 : i32
    %c0_i32_1 = arith.constant 0 : i32
    return %c0_i32, %c0_i32_0 : i32, i32
  }
  func.func @transform_3(%arg0: i32) -> (i32, i32) {
    %c0_i32 = arith.constant 0 : i32
    %c0_i32_0 = arith.constant 0 : i32
    %c0_i32_1 = arith.constant 0 : i32
    return %c0_i32, %c0_i32_0 : i32, i32
  }
  func.func @transform_4(%arg0: i32) -> (i32, i32) {
    %c0_i32 = arith.constant 0 : i32
    %c0_i32_0 = arith.constant 0 : i32
    %c0_i32_1 = arith.constant 0 : i32
    return %c0_i32, %c0_i32_0 : i32, i32
  }
  func.func @transform_5(%arg0: i32) -> (i32, i32) {
    %c0_i32 = arith.constant 0 : i32
    %c0_i32_0 = arith.constant 0 : i32
    %c0_i32_1 = arith.constant 0 : i32
    return %c0_i32, %c0_i32_0 : i32, i32
  }
  func.func @transform_6(%arg0: i32) -> (i32, i32) {
    %c0_i32 = arith.constant 0 : i32
    %c0_i32_0 = arith.constant 0 : i32
    %c0_i32_1 = arith.constant 0 : i32
    return %c0_i32, %c0_i32_0 : i32, i32
  }
}

</mosaic_0001>

<bundles_post_ra>
// kernel: scat_forward.1
= control target key start
LH: loop header
LB: loop body
LE: loop exit
PB: predicated region body
PF: predicated region fallthrough
CT: control target
= control target key end

     0   :  { %11 = vsyncpa [#allocation4], 0  ;;  %s6632_s0 = inlined_call_operand.vmem [shape: bf16[8,256], index: 0, kind: input, shape index: {}]   ;;  %s6633_s1 = inlined_call_operand.hbm [shape: bf16[256,4096], index: 1, kind: input, shape index: {}]   ;;  %s6634_s2 = inlined_call_operand.vmem [shape: bf16[256,16], index: 2, kind: input, shape index: {}]   ;;  %s6635_s3 = inlined_call_operand.hbm [shape: f32[2,208], index: 3, kind: input, shape index: {}]   ;;  %s6636_s4 = inlined_call_operand.vmem [shape: f32[208,10], index: 4, kind: input, shape index: {}]   ;;  %s6637_s5 = inlined_call_operand.hbm [shape: f32[1,10], index: 5, kind: input, shape index: {}]   ;;  %s6638_s6 = inlined_call_operand.hbm [shape: f32[2,10], index: 6, kind: output, shape index: {}]  }
   0x1   :  { %13 = vsyncpa [#allocation4 + $0x1], 0 }
   0x2   :  { %14 = vsyncpa [#allocation7], 0 }
   0x3   :  { %15 = vsyncpa [#allocation5], 0  ;;  %s4562_s21 = smov 0   ;;  %s4564_s22 = smov 0  }
   0x4   :  { %s4566_s23 = smov 0   ;;  %s4568_s24 = smov 0  }
   0x5 LB: > { %s4581_s25 = sadd.s32 4294967295, %s4516_s24   ;;  %s4584_s26 = sadd.s32 1, %s4516_s24   ;;  %s4516_s24 = sphi %s4568_s24, %s7323_s24   ;;  %s4512_s23 = sphi %s4566_s23, %s7322_s23   ;;  %s4508_s22 = sphi %s4564_s22, %s7321_s22   ;;  %s4504_s21 = sphi %s4562_s21, %s7320_s21  }
   0x6   : > { %s46_s27 = ssub.s32 %s4516_s24, %s4584_s26  ;;  %s49_s28 = sadd.s32 1, %s4512_s23 }
   0x7   : > { %p47_p0 = scmp.eq.s32.totalorder %s46_s27, 0  ;;  %p56_p1 = scmp.ne.s32.totalorder %s4512_s23, %s4508_s22 }
   0x8   : > { %p57_p2 = scmp.eq.s32.totalorder %s4516_s24, 0  ;;  %p62_p3 = scmp.ne.s32.totalorder %s4508_s22, %s4504_s21 }
   0x9   : > { %s4594_s29 = scalar_select %p47_p0, %s4512_s23, %s49_s28  }
   0xa   : > { %p4596_p4 = por %p57_p2, %p56_p1  ;;  %p6639_p5 = scmp.eq.s32.totalorder %s4581_s25, 0 }
   0xb   : > { %p3764_p6 = scmp.ge.s32.totalorder %s4516_s24, 1  ;;  %p178_p7 = scmp.lt.s32.totalorder %s4516_s24, 3 }
   0xc   : > { %p4605_p8 = por %p6639_p5, %p62_p3  ;;  %s4518_s9 = smov [#allocation6]  }
   0xd   : > { %p4610_p10 = pnand %p3764_p6, %p178_p7  ;;  %s197_s10 = sshll.u32 %s4518_s9, 4  ;;  %s198_s10 = int_to_ptr.vmem [resolvable:$true] %s197_s10 }
   0xe   : > { %s6866_s7 = scalar_select %p4605_p8, 1, 0 }
   0xf   : > { %s6867_s8 = scalar_select %p4610_p10, 1, 0 }
  0x10   : > { %p4206_p11 = pneg %p4610_p10  ;;  %p4219_p12 = scmp.lt.s32.totalorder %s4516_s24, 2 }
  0x11   : > { %s4519_s12 = smov [#allocation8]   ;;  %s222_s15 = sand.u32 1, %s4512_s23  }
  0x12   : > { %p4619_p13 = pnand %p4206_p11, %p6639_p5  ;;  %s211_s13 = sshll.u32 %s4519_s12, 4  ;;  %s4629_s13 = int_to_ptr.vmem [resolvable:$true] %s211_s13 }
  0x13   : > { %p4625_p0 = pnand %p4219_p12, %p4596_p4  ;;  %s4362_s18 = scalar_lea.hbm %s6635_s3, 64 }
  0x14   : > { %p4363_p1 = scmp.ne.s32.totalorder %s6635_s3, %s4362_s18  ;;  %p4364_p2 = pneg %p4619_p13 }
  0x15   : > { %s6869_s14 = scalar_select %p4625_p0, 1, 0 }
  0x16   : > { %p4365_p3 = pnand %p4364_p2, %p4363_p1  ;;  %p4369_p6 = scmp.lt.u32.totalorder %s4362_s18, %s6635_s3 }
  0x18   : > { %p4366_p4 = pneg %p4365_p3 }
  0x1a   : > { %p4371_p7 = pnand %p4369_p6, %p4366_p4 }
  0x1c   : > { %4374 = shalt.err (!%p4371_p7)
}
  0x1d   : > { %s4375_s28 = scalar_lea.vmem %s198_s10, 64  ;;  %p4383_p5 = scmp.lt.s32.totalorder %s198_s10, %s198_s10 }
  0x1e   : > { %p4376_p11 = scmp.ne.s32.totalorder %s198_s10, %s4375_s28  ;;  %p4384_p8 = scmp.lt.s32.totalorder %s4375_s28, %s4375_s28 }
  0x20   : > { %p4378_p12 = pnand %p4376_p11, %p4364_p2  ;;  %p4385_p10 = por %p4384_p8, %p4383_p5 }
  0x22   : > { %p4379_p9 = pneg %p4378_p12 }
  0x24   : > { %p4386_p0 = pnand %p4385_p10, %p4379_p9 }
  0x26   : > { %4389 = shalt.err (!%p4386_p0)
}
  0x27   : > { %4209 = dma.hbm_to_vmem [thread:$0]  (!%p4619_p13), %s6635_s3, 64, %s198_s10, [#allocation7]  }
  0x28   : > { %s4390_s17 = scalar_lea.hbm %s6637_s5, 16 }
  0x29   : > { %p4391_p1 = scmp.ne.s32.totalorder %s6637_s5, %s4390_s17  ;;  %p4397_p9 = scmp.lt.u32.totalorder %s4390_s17, %s6637_s5 }
  0x2b   : > { %p4393_p5 = pnand %p4391_p1, %p4364_p2 }
  0x2d   : > { %p4394_p8 = pneg %p4393_p5 }
  0x2f   : > { %p4399_p10 = pnand %p4397_p9, %p4394_p8 }
  0x31   : > { %4402 = shalt.err (!%p4399_p10)
}
  0x32   : > { %s4403_s10 = scalar_lea.vmem %s4629_s13, 16  ;;  %s4410_s27 = scalar_lea.vmem %s4629_s13, 32 }
  0x33   : > { %p4404_p0 = scmp.ne.s32.totalorder %s4629_s13, %s4403_s10  ;;  %p4411_p6 = scmp.lt.s32.totalorder %s4629_s13, %s4629_s13 }
  0x34   : > { %p4412_p7 = scmp.lt.s32.totalorder %s4410_s27, %s4403_s10 }
  0x35   : > { %p4406_p3 = pnand %p4404_p0, %p4364_p2 }
  0x36   : > { %p4413_p11 = por %p4412_p7, %p4411_p6 }
  0x37   : > { %p4407_p4 = pneg %p4406_p3 }
  0x39   : > { %p4414_p12 = pnand %p4413_p11, %p4407_p4 }
  0x3b   : > { %4417 = shalt.err (!%p4414_p12)
}
  0x3c   : > { %4212 = dma.hbm_to_vmem [thread:$0]  (!%p4619_p13), %s6637_s5, 16, %s4629_s13, [#allocation7]  }
  0x3d   : > { %s3768_s9 = sshll.u32 %s222_s15, 11  ;;  %s4058_s12 = sshll.u32 %s4516_s24, 10 }
  0x3e   : > { %s4686_s18 = scalar_lea.hbm %s6633_s1, %s4058_s12  ;;  %s226_s11 = scalar_lea.vmem [#allocation3], %s3768_s9 }
  0x3f   : > { %s233_s19 = sshll.u32 %s226_s11, 4  ;;  %s4692_s20 = scalar_lea.sflag [#allocation4], %s222_s15  ;;  %s4688_s19 = int_to_ptr.vmem [resolvable:$true] %s233_s19 }
  0x40   : > { %s4418_s13 = scalar_lea.hbm %s4686_s18, 32768  ;;  %p6870_p2 = scmp.ne.s32.totalorder %s6869_s14, 0 }
  0x41   : > { %p4419_p13 = scmp.ne.s32.totalorder %s4686_s18, %s4418_s13  ;;  %s4423_s10 = scalar_lea.hbm %s6633_s1, 65536 }
  0x42   : > { %p4420_p1 = pneg %p6870_p2  ;;  %p4424_p9 = scmp.lt.u32.totalorder %s4686_s18, %s6633_s1 }
  0x43   : > { %p4425_p10 = scmp.lt.u32.totalorder %s4423_s10, %s4418_s13  ;;  %p4427_p3 = scmp.lt.u32.totalorder %s4418_s13, %s4686_s18 }
  0x44   : > { %p4421_p5 = pnand %p4420_p1, %p4419_p13 }
  0x45   : > { %p4426_p0 = por %p4425_p10, %p4424_p9 }
  0x46   : > { %p4422_p8 = pneg %p4421_p5 }
  0x47   : > { %p4428_p4 = por %p4427_p3, %p4426_p0 }
  0x49   : > { %p4429_p6 = pnand %p4428_p4, %p4422_p8 }
  0x4b   : > { %4432 = shalt.err (!%p4429_p6)
}
  0x4c   : > { %s4433_s15 = scalar_lea.vmem %s4688_s19, 32768  ;;  %s4520_s30 = smov [#allocation3]  }
  0x4d   : > { %p4434_p7 = scmp.ne.s32.totalorder %s4688_s19, %s4433_s15  ;;  %s4438_s9 = sshll.u32 %s4520_s30, 4  ;;  %s4439_s9 = int_to_ptr.vmem [resolvable:$false] %s4438_s9 }
  0x4e   : > { %s4440_s12 = scalar_lea.vmem %s4439_s9, 65536  ;;  %p4441_p13 = scmp.lt.s32.totalorder %s4688_s19, %s4439_s9 }
  0x4f   : > { %p4436_p11 = pnand %p4434_p7, %p4420_p1  ;;  %p4442_p5 = scmp.lt.s32.totalorder %s4440_s12, %s4433_s15 }
  0x51   : > { %p4437_p12 = pneg %p4436_p11  ;;  %p4443_p9 = por %p4442_p5, %p4441_p13 }
  0x53   : > { %p4444_p10 = pnand %p4443_p9, %p4437_p12 }
  0x55   : > { %4447 = shalt.err (!%p4444_p10)
}
  0x56   : > { %s4521_s16 = smov 2048   ;;  %s4522_s17 = smov 1024  }
  0x57   : > { %s4523_s11 = smov 64   ;;  %p6871_p1 = scmp.ne.s32.totalorder %s6867_s8, 0 }
  0x58   : > { %4216 = dma.hbm_to_vmem [thread:$0]  (!%p6870_p2), %s4686_s18, 32768, %s4688_s19, %s4692_s20, %s4521_s16, %s4522_s17, %s4523_s11  }
  0x59   : > { %245 = sbr.rel (%p6871_p1) target bundleno = 1793 (0x701), region = 44 }
  0x60   : > { %s247_s13 = sand.u32 1, %s4508_s22   ;;  %p6872_p8 = scmp.ne.s32.totalorder %s6866_s7, 0 }
  0x61   : > { %s3772_s24 = sshll.u32 %s247_s13, 11  ;;  %s248_s21 = scalar_lea.sflag [#allocation4], %s247_s13 }
  0x62   : > { %s4723_s10 = scalar_lea.vmem [#allocation3], %s3772_s24 }
  0x63   : > { %4491 = dma.done.wait (%p6872_p8), %s248_s21, 32768  }
  0x64   : > { %4493 = vsyncadd (%p6872_p8), %s248_s21, 4294934528  ;;  %p6873_p0 = scmp.eq.s32.totalorder %s4581_s25, 0 }
  0x66   : > { %4495 = dma.done.wait (%p6873_p0), [#allocation7], 80   ;;  %p6874_p2 = pmov %p6873_p0 }
  0x67   : > { %v286_v0 = vld [vmem:[%s4723_s10] sm:$0xff]  ;;  %v287_v2 = vld [vmem:[%s4723_s10 + $0x8] sm:$0xff]  ;;  %v4835_v53 = vld [vmem:[%s6632_s0] sm:$0xff]  ;;  %p7097_p3 = scmp.ne.s32.totalorder %s4581_s25, 0 }
  0x68   : > { %4497 = vsyncadd (%p6874_p2), [#allocation7], 4294967216  ;;  %v294_v1 = vld [vmem:[%s4723_s10 + $0x40] sm:$0xff]  ;;  %v295_v4 = vld [vmem:[%s4723_s10 + $0x48] sm:$0xff]  ;;  %v4844_v57 = vcombine.high %v4835_v53, %v4835_v53 }
  0x69   : > { %v4736_v3 = vcombine.high %v286_v0, %v294_v1  ;;  %v4739_v5 = vcombine.low %v286_v0, %v294_v1  ;;  %v302_v6 = vld [vmem:[%s4723_s10 + $0x80] sm:$0xff]  ;;  %v4743_v8 = vcombine.high %v287_v2, %v295_v4  ;;  %v4745_v9 = vcombine.low %v287_v2, %v295_v4  ;;  %v303_v11 = vld [vmem:[%s4723_s10 + $0x88] sm:$0xff] }
  0x6a   : > { %v310_v7 = vld [vmem:[%s4723_s10 + $0xc0] sm:$0xff]  ;;  %v311_v12 = vld [vmem:[%s4723_s10 + $0xc8] sm:$0xff]  ;;  %1861 = vmatprep.mubr.bf16.mxu0 %v4844_v57  ;;  %1902 = vmatprep.mubr.bf16.mxu1 %v4844_v57  ;;  %2270 = vst [vmem:[#allocation2 + $0x8] sm:$0xf] (!%p7097_p3), %v4844_v57 }
  0x6b   : > { %6875 = vst [vmem:[#allocation13_spill] sm:$0xff] %v4743_v8  ;;  %6876 = vst [vmem:[#allocation14_spill] sm:$0xff] %v4745_v9  ;;  %v4747_v10 = vcombine.high %v302_v6, %v310_v7  ;;  %v318_v13 = vld [vmem:[%s4723_s10 + $0x100] sm:$0xff]  ;;  %1829 = vmatprep.subr.bf16.mxu0 %v4736_v3  ;;  %v4753_v14 = vcombine.high %v303_v11, %v311_v12  ;;  %v319_v16 = vld [vmem:[%s4723_s10 + $0x108] sm:$0xff]  ;;  %1870 = vmatprep.subr.bf16.mxu1 %v4743_v8 }
  0x6c   : > { %v326_v15 = vld [vmem:[%s4723_s10 + $0x140] sm:$0xff]  ;;  %v327_v17 = vld [vmem:[%s4723_s10 + $0x148] sm:$0xff]  ;;  %1830 = vmatpush1.bf16.msra.mxu0 %v4739_v5  ;;  %v4760_v18 = vcombine.low %v302_v6, %v310_v7  ;;  %1871 = vmatpush1.bf16.msra.mxu1 %v4745_v9  ;;  %v4764_v19 = vcombine.low %v303_v11, %v311_v12  ;;  %v424_v9 = vld [vmem:[%s4723_s10 + $0x450] sm:$0xff] }
  0x6d   : > { %6877 = vst [vmem:[#allocation15_spill] sm:$0xff] %v4753_v14  ;;  %1831 = vmatprep.subr.bf16.mxu0 %v4747_v10  ;;  %v4766_v20 = vcombine.high %v318_v13, %v326_v15  ;;  %1872 = vmatprep.subr.bf16.mxu1 %v4753_v14  ;;  %v4769_v21 = vcombine.high %v319_v16, %v327_v17  ;;  %v334_v22 = vld [vmem:[%s4723_s10 + $0x180] sm:$0xff]  ;;  %v335_v24 = vld [vmem:[%s4723_s10 + $0x188] sm:$0xff]  ;;  %v416_v14 = vld [vmem:[%s4723_s10 + $0x410] sm:$0xff] }
  0x6e   : > { %6878 = vst [vmem:[#allocation16_spill] sm:$0xff] %v4764_v19  ;;  %v342_v23 = vld [vmem:[%s4723_s10 + $0x1c0] sm:$0xff]  ;;  %v343_v25 = vld [vmem:[%s4723_s10 + $0x1c8] sm:$0xff]  ;;  %v4776_v26 = vcombine.low %v318_v13, %v326_v15  ;;  %v4780_v27 = vcombine.low %v319_v16, %v327_v17  ;;  %v432_v8 = vld [vmem:[%s4723_s10 + $0x490] sm:$0xff] }
  0x6f   : > { %6879 = vst [vmem:[#allocation17_spill] sm:$0xff] %v4769_v21  ;;  %v4782_v28 = vcombine.high %v334_v22, %v342_v23  ;;  %v4785_v29 = vcombine.high %v335_v24, %v343_v25  ;;  %v350_v30 = vld [vmem:[%s4723_s10 + $0x200] sm:$0xff]  ;;  %v351_v32 = vld [vmem:[%s4723_s10 + $0x208] sm:$0xff]  ;;  %v4792_v34 = vcombine.low %v334_v22, %v342_v23  ;;  %v4796_v35 = vcombine.low %v335_v24, %v343_v25 }
  0x70   : > { %1832 = vmatpush1.bf16.msra.mxu0 %v4760_v18  ;;  %1873 = vmatpush1.bf16.msra.mxu1 %v4764_v19  ;;  %6880 = vst [vmem:[#allocation18_spill] sm:$0xff] %v4780_v27  ;;  %v358_v31 = vld [vmem:[%s4723_s10 + $0x240] sm:$0xff]  ;;  %v359_v33 = vld [vmem:[%s4723_s10 + $0x248] sm:$0xff]  ;;  %v408_v19 = vld [vmem:[%s4723_s10 + $0x3d0] sm:$0xff] }
  0x71   : > { %1833 = vmatprep.subr.bf16.mxu0 %v4766_v20  ;;  %1874 = vmatprep.subr.bf16.mxu1 %v4769_v21  ;;  %6881 = vst [vmem:[#allocation19_spill] sm:$0xff] %v4785_v29  ;;  %6882 = vst [vmem:[#allocation20_spill] sm:$0xff] %v4796_v35  ;;  %v4798_v36 = vcombine.high %v350_v30, %v358_v31  ;;  %v4801_v37 = vcombine.high %v351_v32, %v359_v33  ;;  %v366_v38 = vld [vmem:[%s4723_s10 + $0x280] sm:$0xff]  ;;  %v367_v40 = vld [vmem:[%s4723_s10 + $0x288] sm:$0xff] }
  0x72   : > { %v374_v39 = vld [vmem:[%s4723_s10 + $0x2c0] sm:$0xff]  ;;  %v375_v41 = vld [vmem:[%s4723_s10 + $0x2c8] sm:$0xff]  ;;  %v4808_v42 = vcombine.low %v350_v30, %v358_v31  ;;  %v4812_v43 = vcombine.low %v351_v32, %v359_v33  ;;  %v400_v21 = vld [vmem:[%s4723_s10 + $0x390] sm:$0xff] }
  0x73   : > { %6883 = vst [vmem:[#allocation21_spill] sm:$0xff] %v4801_v37  ;;  %v4814_v44 = vcombine.high %v366_v38, %v374_v39  ;;  %v4817_v45 = vcombine.high %v367_v40, %v375_v41  ;;  %v382_v46 = vld [vmem:[%s4723_s10 + $0x300] sm:$0xff]  ;;  %v383_v48 = vld [vmem:[%s4723_s10 + $0x308] sm:$0xff]  ;;  %v4824_v50 = vcombine.low %v366_v38, %v374_v39  ;;  %v4828_v51 = vcombine.low %v367_v40, %v375_v41 }
  0x74   : > { %1834 = vmatpush1.bf16.msra.mxu0 %v4776_v26  ;;  %1875 = vmatpush1.bf16.msra.mxu1 %v4780_v27  ;;  %6884 = vst [vmem:[#allocation22_spill] sm:$0xff] %v4812_v43  ;;  %v390_v47 = vld [vmem:[%s4723_s10 + $0x340] sm:$0xff]  ;;  %v391_v49 = vld [vmem:[%s4723_s10 + $0x348] sm:$0xff]  ;;  %v392_v27 = vld [vmem:[%s4723_s10 + $0x350] sm:$0xff] }
  0x75   : > { %1835 = vmatprep.subr.bf16.mxu0 %v4782_v28  ;;  %1876 = vmatprep.subr.bf16.mxu1 %v4785_v29  ;;  %6885 = vst [vmem:[#allocation23_spill] sm:$0xff] %v4817_v45  ;;  %6886 = vst [vmem:[#allocation24_spill] sm:$0xff] %v4828_v51  ;;  %v4830_v52 = vcombine.high %v382_v46, %v390_v47  ;;  %v4838_v54 = vcombine.high %v383_v48, %v391_v49  ;;  %v398_v55 = vld [vmem:[%s4723_s10 + $0x380] sm:$0xff]  ;;  %v399_v58 = vld [vmem:[%s4723_s10 + $0x388] sm:$0xff] }
  0x76   : > { %v406_v56 = vld [vmem:[%s4723_s10 + $0x3c0] sm:$0xff]  ;;  %v407_v59 = vld [vmem:[%s4723_s10 + $0x3c8] sm:$0xff]  ;;  %v4849_v60 = vcombine.low %v382_v46, %v390_v47  ;;  %v4854_v61 = vcombine.low %v383_v48, %v391_v49  ;;  %v384_v29 = vld [vmem:[%s4723_s10 + $0x310] sm:$0xff] }
  0x77   : > { %6887 = vst [vmem:[#allocation25_spill] sm:$0xff] %v4838_v54  ;;  %v4856_v62 = vcombine.high %v398_v55, %v406_v56  ;;  %v4859_v63 = vcombine.high %v399_v58, %v407_v59  ;;  %v414_v0 = vld [vmem:[%s4723_s10 + $0x400] sm:$0xff]  ;;  %v415_v2 = vld [vmem:[%s4723_s10 + $0x408] sm:$0xff]  ;;  %v4867_v6 = vcombine.low %v398_v55, %v406_v56  ;;  %v4871_v7 = vcombine.low %v399_v58, %v407_v59 }
  0x78   : > { %1836 = vmatpush1.bf16.msra.mxu0 %v4792_v34  ;;  %1877 = vmatpush1.bf16.msra.mxu1 %v4796_v35  ;;  %6888 = vst [vmem:[#allocation26_spill] sm:$0xff] %v4854_v61  ;;  %v422_v1 = vld [vmem:[%s4723_s10 + $0x440] sm:$0xff]  ;;  %v423_v4 = vld [vmem:[%s4723_s10 + $0x448] sm:$0xff]  ;;  %v376_v35 = vld [vmem:[%s4723_s10 + $0x2d0] sm:$0xff] }
  0x79   : > { %1837 = vmatprep.subr.bf16.mxu0 %v4798_v36  ;;  %1878 = vmatprep.subr.bf16.mxu1 %v4801_v37  ;;  %6889 = vst [vmem:[#allocation27_spill] sm:$0xff] %v4859_v63  ;;  %6890 = vst [vmem:[#allocation28_spill] sm:$0xff] %v4871_v7  ;;  %v4873_v11 = vcombine.high %v414_v0, %v422_v1  ;;  %v4876_v12 = vcombine.high %v415_v2, %v423_v4  ;;  %v430_v13 = vld [vmem:[%s4723_s10 + $0x480] sm:$0xff]  ;;  %v431_v16 = vld [vmem:[%s4723_s10 + $0x488] sm:$0xff] }
  0x7a   : > { %v438_v15 = vld [vmem:[%s4723_s10 + $0x4c0] sm:$0xff]  ;;  %v439_v17 = vld [vmem:[%s4723_s10 + $0x4c8] sm:$0xff]  ;;  %v4883_v22 = vcombine.low %v414_v0, %v422_v1  ;;  %v4887_v23 = vcombine.low %v415_v2, %v423_v4  ;;  %v368_v37 = vld [vmem:[%s4723_s10 + $0x290] sm:$0xff] }
  0x7b   : > { %6891 = vst [vmem:[#allocation29_spill] sm:$0xff] %v4876_v12  ;;  %v4889_v24 = vcombine.high %v430_v13, %v438_v15  ;;  %v4892_v25 = vcombine.high %v431_v16, %v439_v17  ;;  %v446_v30 = vld [vmem:[%s4723_s10 + $0x500] sm:$0xff]  ;;  %v447_v32 = vld [vmem:[%s4723_s10 + $0x508] sm:$0xff]  ;;  %v4899_v38 = vcombine.low %v430_v13, %v438_v15  ;;  %v4903_v39 = vcombine.low %v431_v16, %v439_v17 }
  0x7c   : > { %1838 = vmatpush1.bf16.msra.mxu0 %v4808_v42  ;;  %1879 = vmatpush1.bf16.msra.mxu1 %v4812_v43  ;;  %6892 = vst [vmem:[#allocation30_spill] sm:$0xff] %v4883_v22  ;;  %6893 = vst [vmem:[#allocation31_spill] sm:$0xff] %v4887_v23  ;;  %v454_v31 = vld [vmem:[%s4723_s10 + $0x540] sm:$0xff]  ;;  %v455_v33 = vld [vmem:[%s4723_s10 + $0x548] sm:$0xff] }
  0x7d   : > { %1839 = vmatprep.subr.bf16.mxu0 %v4814_v44  ;;  %1880 = vmatprep.subr.bf16.mxu1 %v4817_v45  ;;  %6894 = vst [vmem:[#allocation32_spill] sm:$0xff] %v4889_v24  ;;  %6895 = vst [vmem:[#allocation33_spill] sm:$0xff] %v4892_v25  ;;  %v4905_v40 = vcombine.high %v446_v30, %v454_v31  ;;  %v4908_v41 = vcombine.high %v447_v32, %v455_v33  ;;  %v462_v46 = vld [vmem:[%s4723_s10 + $0x580] sm:$0xff]  ;;  %v463_v48 = vld [vmem:[%s4723_s10 + $0x588] sm:$0xff] }
  0x7e   : > { %6896 = vst [vmem:[#allocation34_spill] sm:$0xff] %v4899_v38  ;;  %6897 = vst [vmem:[#allocation35_spill] sm:$0xff] %v4903_v39  ;;  %v470_v47 = vld [vmem:[%s4723_s10 + $0x5c0] sm:$0xff]  ;;  %v471_v49 = vld [vmem:[%s4723_s10 + $0x5c8] sm:$0xff]  ;;  %v4915_v55 = vcombine.low %v446_v30, %v454_v31  ;;  %v4919_v56 = vcombine.low %v447_v32, %v455_v33 }
  0x7f   : > { %6898 = vst [vmem:[#allocation36_spill] sm:$0xff] %v4905_v40  ;;  %6899 = vst [vmem:[#allocation37_spill] sm:$0xff] %v4908_v41  ;;  %v4921_v58 = vcombine.high %v462_v46, %v470_v47  ;;  %v4924_v59 = vcombine.high %v463_v48, %v471_v49  ;;  %v478_v0 = vld [vmem:[%s4723_s10 + $0x600] sm:$0xff]  ;;  %v479_v2 = vld [vmem:[%s4723_s10 + $0x608] sm:$0xff]  ;;  %v4931_v13 = vcombine.low %v462_v46, %v470_v47 }
  0x80   : > { %1840 = vmatpush1.bf16.msra.mxu0 %v4824_v50  ;;  %1881 = vmatpush1.bf16.msra.mxu1 %v4828_v51  ;;  %6900 = vst [vmem:[#allocation38_spill] sm:$0xff] %v4915_v55  ;;  %6901 = vst [vmem:[#allocation39_spill] sm:$0xff] %v4919_v56  ;;  %v486_v1 = vld [vmem:[%s4723_s10 + $0x640] sm:$0xff]  ;;  %v487_v4 = vld [vmem:[%s4723_s10 + $0x648] sm:$0xff]  ;;  %v4935_v15 = vcombine.low %v463_v48, %v471_v49 }
  0x81   : > { %1841 = vmatprep.subr.bf16.mxu0 %v4830_v52  ;;  %1882 = vmatprep.subr.bf16.mxu1 %v4838_v54  ;;  %6902 = vst [vmem:[#allocation40_spill] sm:$0xff] %v4921_v58  ;;  %6903 = vst [vmem:[#allocation41_spill] sm:$0xff] %v4924_v59  ;;  %v4937_v16 = vcombine.high %v478_v0, %v486_v1  ;;  %v4940_v17 = vcombine.high %v479_v2, %v487_v4  ;;  %v494_v30 = vld [vmem:[%s4723_s10 + $0x680] sm:$0xff]  ;;  %v495_v32 = vld [vmem:[%s4723_s10 + $0x688] sm:$0xff] }
  0x82   : > { %6904 = vst [vmem:[#allocation42_spill] sm:$0xff] %v4931_v13  ;;  %6905 = vst [vmem:[#allocation43_spill] sm:$0xff] %v4935_v15  ;;  %v502_v31 = vld [vmem:[%s4723_s10 + $0x6c0] sm:$0xff]  ;;  %v503_v33 = vld [vmem:[%s4723_s10 + $0x6c8] sm:$0xff]  ;;  %v4947_v46 = vcombine.low %v478_v0, %v486_v1  ;;  %v4951_v47 = vcombine.low %v479_v2, %v487_v4 }
  0x83   : > { %6906 = vst [vmem:[#allocation44_spill] sm:$0xff] %v4937_v16  ;;  %6907 = vst [vmem:[#allocation45_spill] sm:$0xff] %v4940_v17  ;;  %v4953_v48 = vcombine.high %v494_v30, %v502_v31  ;;  %v4956_v49 = vcombine.high %v495_v32, %v503_v33  ;;  %v511_v0 = vld [vmem:[%s4723_s10 + $0x708] sm:$0xff]  ;;  %v4967_v2 = vcombine.low %v495_v32, %v503_v33  ;;  %v336_v54 = vld [vmem:[%s4723_s10 + $0x190] sm:$0xff] }
  0x84   : > { %1842 = vmatpush1.bf16.msra.mxu0 %v4849_v60  ;;  %1883 = vmatpush1.bf16.msra.mxu1 %v4854_v61  ;;  %6908 = vst [vmem:[#allocation46_spill] sm:$0xff] %v4947_v46  ;;  %6909 = vst [vmem:[#allocation47_spill] sm:$0xff] %v4951_v47  ;;  %v519_v1 = vld [vmem:[%s4723_s10 + $0x748] sm:$0xff]  ;;  %v328_v61 = vld [vmem:[%s4723_s10 + $0x150] sm:$0xff] }
  0x85   : > { %1843 = vmatprep.subr.bf16.mxu0 %v4856_v62  ;;  %1884 = vmatprep.subr.bf16.mxu1 %v4859_v63  ;;  %6910 = vst [vmem:[#allocation48_spill] sm:$0xff] %v4953_v48  ;;  %6911 = vst [vmem:[#allocation49_spill] sm:$0xff] %v4956_v49  ;;  %v4983_v32 = vcombine.low %v511_v0, %v519_v1  ;;  %v344_v51 = vld [vmem:[%s4723_s10 + $0x1d0] sm:$0xff] }
  0x86   : > { %6913 = vst [vmem:[#allocation51_spill] sm:$0xff] %v4967_v2  ;;  %v352_v45 = vld [vmem:[%s4723_s10 + $0x210] sm:$0xff] }
  0x87   : > { %6917 = vst [vmem:[#allocation55_spill] sm:$0xff] %v4983_v32  ;;  %v360_v43 = vld [vmem:[%s4723_s10 + $0x250] sm:$0xff] }
  0x88   : > { %1844 = vmatpush1.bf16.msra.mxu0 %v4867_v6  ;;  %1885 = vmatpush1.bf16.msra.mxu1 %v4871_v7  ;;  %v312_v7 = vld [vmem:[%s4723_s10 + $0xd0] sm:$0xff] }
  0x89   : > { %1845 = vmatprep.subr.bf16.mxu0 %v4873_v11  ;;  %1886 = vmatprep.subr.bf16.mxu1 %v4876_v12  ;;  %v304_v12 = vld [vmem:[%s4723_s10 + $0x90] sm:$0xff] }
  0x8c   : > { %1846 = vmatpush1.bf16.msra.mxu0 %v4883_v22  ;;  %1887 = vmatpush1.bf16.msra.mxu1 %v4887_v23  ;;  %v296_v23 = vld [vmem:[%s4723_s10 + $0x50] sm:$0xff] }
  0x8d   : > { %1847 = vmatprep.subr.bf16.mxu0 %v4889_v24  ;;  %1888 = vmatprep.subr.bf16.mxu1 %v4892_v25  ;;  %v288_v25 = vld [vmem:[%s4723_s10 + $0x10] sm:$0xff] }
  0x90   : > { %1848 = vmatpush1.bf16.msra.mxu0 %v4899_v38  ;;  %1889 = vmatpush1.bf16.msra.mxu1 %v4903_v39  ;;  %v534_v39 = vld [vmem:[%s4723_s10 + $0x7c0] sm:$0xff] }
  0x91   : > { %1849 = vmatprep.subr.bf16.mxu0 %v4905_v40  ;;  %1890 = vmatprep.subr.bf16.mxu1 %v4908_v41  ;;  %v526_v41 = vld [vmem:[%s4723_s10 + $0x780] sm:$0xff] }
  0x92   : > { %v4985_v33 = vcombine.high %v526_v41, %v534_v39 }
  0x94   : > { %1850 = vmatpush1.bf16.msra.mxu0 %v4915_v55  ;;  %1891 = vmatpush1.bf16.msra.mxu1 %v4919_v56  ;;  %v518_v56 = vld [vmem:[%s4723_s10 + $0x740] sm:$0xff]  ;;  %6918 = vst [vmem:[#allocation56_spill] sm:$0xff] %v4985_v33  ;;  %v541_v55 = vld [vmem:[%s4723_s10 + $0x7f8] sm:$0xff] }
  0x95   : > { %1851 = vmatprep.subr.bf16.mxu0 %v4921_v58  ;;  %1892 = vmatprep.subr.bf16.mxu1 %v4924_v59  ;;  %v510_v59 = vld [vmem:[%s4723_s10 + $0x700] sm:$0xff] }
  0x96   : > { %v4969_v4 = vcombine.high %v510_v59, %v518_v56  ;;  %v330_v58 = vld [vmem:[%s4723_s10 + $0x160] sm:$0xff] }
  0x98   : > { %1852 = vmatpush1.bf16.msra.mxu0 %v4931_v13  ;;  %1893 = vmatpush1.bf16.msra.mxu1 %v4935_v15  ;;  %v4963_v15 = vcombine.low %v494_v30, %v502_v31  ;;  %6914 = vst [vmem:[#allocation52_spill] sm:$0xff] %v4969_v4  ;;  %v527_v30 = vld [vmem:[%s4723_s10 + $0x788] sm:$0xff]  ;;  %v504_v13 = vld [vmem:[%s4723_s10 + $0x6d0] sm:$0xff] }
  0x99   : > { %1853 = vmatprep.subr.bf16.mxu0 %v4937_v16  ;;  %1894 = vmatprep.subr.bf16.mxu1 %v4940_v17  ;;  %v4972_v17 = vcombine.high %v511_v0, %v519_v1  ;;  %v535_v31 = vld [vmem:[%s4723_s10 + $0x7c8] sm:$0xff]  ;;  %v5001_v1 = vcombine.high %v288_v25, %v296_v23  ;;  %v496_v16 = vld [vmem:[%s4723_s10 + $0x690] sm:$0xff] }
  0x9a   : > { %6912 = vst [vmem:[#allocation50_spill] sm:$0xff] %v4963_v15  ;;  %v4999_v0 = vcombine.low %v527_v30, %v535_v31 }
  0x9b   : > { %6915 = vst [vmem:[#allocation53_spill] sm:$0xff] %v4972_v17 }
  0x9c   : > { %1854 = vmatpush1.bf16.msra.mxu0 %v4947_v46  ;;  %1895 = vmatpush1.bf16.msra.mxu1 %v4951_v47  ;;  %v4979_v47 = vcombine.low %v510_v59, %v518_v56  ;;  %v289_v56 = vld [vmem:[%s4723_s10 + $0x18] sm:$0xff]  ;;  %6921 = vst [vmem:[#allocation59_spill] sm:$0xff] %v4999_v0  ;;  %v488_v46 = vld [vmem:[%s4723_s10 + $0x650] sm:$0xff] }
  0x9d   : > { %1855 = vmatprep.subr.bf16.mxu0 %v4953_v48  ;;  %1896 = vmatprep.subr.bf16.mxu1 %v4956_v49  ;;  %v4988_v49 = vcombine.high %v527_v30, %v535_v31  ;;  %v297_v59 = vld [vmem:[%s4723_s10 + $0x58] sm:$0xff]  ;;  %v5015_v30 = vcombine.low %v288_v25, %v296_v23  ;;  %v480_v48 = vld [vmem:[%s4723_s10 + $0x610] sm:$0xff] }
  0x9e   : > { %6916 = vst [vmem:[#allocation54_spill] sm:$0xff] %v4979_v47  ;;  %v5019_v31 = vcombine.low %v289_v56, %v297_v59  ;;  %v321_v23 = vld [vmem:[%s4723_s10 + $0x118] sm:$0xff] }
  0x9f   : > { %6919 = vst [vmem:[#allocation57_spill] sm:$0xff] %v4988_v49  ;;  %v329_v25 = vld [vmem:[%s4723_s10 + $0x158] sm:$0xff] }
  0xa0   : > { %1856 = vmatpush1.bf16.msra.mxu0 %v4963_v15  ;;  %1897 = vmatpush1.bf16.msra.mxu1 %v4967_v2  ;;  %v4995_v2 = vcombine.low %v526_v41, %v534_v39  ;;  %v5010_v39 = vcombine.low %v4835_v53, %v4835_v53  ;;  %v305_v41 = vld [vmem:[%s4723_s10 + $0x98] sm:$0xff]  ;;  %6923 = vst [vmem:[#allocation61_spill] sm:$0xff] %v5019_v31  ;;  %v320_v53 = vld [vmem:[%s4723_s10 + $0x110] sm:$0xff] }
  0xa1   : > { %1857 = vmatprep.subr.bf16.mxu0 %v4969_v4  ;;  %1898 = vmatprep.subr.bf16.mxu1 %v4972_v17  ;;  %v5004_v17 = vcombine.high %v289_v56, %v297_v59  ;;  %v5033_v56 = vcombine.low %v304_v12, %v312_v7  ;;  %v464_v4 = vld [vmem:[%s4723_s10 + $0x590] sm:$0xff] }
  0xa2   : > { %6920 = vst [vmem:[#allocation58_spill] sm:$0xff] %v4995_v2  ;;  %v472_v15 = vld [vmem:[%s4723_s10 + $0x5d0] sm:$0xff]  ;;  %2269 = vst [vmem:[#allocation2] sm:$0xf] (!%p7097_p3), %v5010_v39 }
  0xa3   : > { %6922 = vst [vmem:[#allocation60_spill] sm:$0xff] %v5004_v17 }
  0xa4   : > { %1858 = vmatpush1.bf16.msra.mxu0 %v4979_v47  ;;  %1899 = vmatpush1.bf16.msra.mxu1 %v4983_v32  ;;  %v313_v32 = vld [vmem:[%s4723_s10 + $0xd8] sm:$0xff]  ;;  %v456_v47 = vld [vmem:[%s4723_s10 + $0x550] sm:$0xff] }
  0xa5   : > { %1859 = vmatprep.subr.bf16.mxu0 %v4985_v33  ;;  %1900 = vmatprep.subr.bf16.mxu1 %v4988_v49  ;;  %v5021_v49 = vcombine.high %v304_v12, %v312_v7  ;;  %v5024_v63 = vcombine.high %v305_v41, %v313_v32  ;;  %v5037_v59 = vcombine.low %v305_v41, %v313_v32  ;;  %v337_v7 = vld [vmem:[%s4723_s10 + $0x198] sm:$0xff]  ;;  %v448_v33 = vld [vmem:[%s4723_s10 + $0x510] sm:$0xff] }
  0xa6   : > { %v345_v12 = vld [vmem:[%s4723_s10 + $0x1d8] sm:$0xff]  ;;  %v5051_v32 = vcombine.low %v320_v53, %v328_v61  ;;  %v5055_v41 = vcombine.low %v321_v23, %v329_v25 }
  0xa7   : > { %6924 = vst [vmem:[#allocation62_spill] sm:$0xff] %v5024_v63  ;;  %6925 = vst [vmem:[#allocation63_spill] sm:$0xff] %v5037_v59 }
  0xa8   : > { %1860 = vmatpush1.bf16.msra.mxu0 %v4995_v2  ;;  %1901 = vmatpush1.bf16.msra.mxu1 %v4999_v0  ;;  %v5042_v0 = vcombine.high %v321_v23, %v329_v25  ;;  %6927 = vst [vmem:[#allocation65_spill] sm:$0xff] %v5055_v41  ;;  %v5071_v23 = vcombine.low %v337_v7, %v345_v12  ;;  %v440_v2 = vld [vmem:[%s4723_s10 + $0x4d0] sm:$0xff] }
  0xa9   : > { %1911 = vmatprep.subr.bf16.mxu0 %v5001_v1  ;;  %1952 = vmatprep.subr.bf16.mxu1 %v5004_v17  ;;  %v5039_v17 = vcombine.high %v320_v53, %v328_v61  ;;  %v353_v61 = vld [vmem:[%s4723_s10 + $0x218] sm:$0xff]  ;;  %v5073_v25 = vcombine.high %v352_v45, %v360_v43 }
  0xaa   : > { %6926 = vst [vmem:[#allocation64_spill] sm:$0xff] %v5042_v0  ;;  %v361_v53 = vld [vmem:[%s4723_s10 + $0x258] sm:$0xff]  ;;  %6929 = vst [vmem:[#allocation67_spill] sm:$0xff] %v5071_v23 }
  0xab   : > { %1862 = vmatmul.mubr.bf16.vlgmr.msra.gmra.mrb[0].mxu0 %v5010_v39  ;;  %1903 = vmatmul.mubr.bf16.vlgmr.msra.gmra.mrb[0].mxu1 %v5010_v39 }
  0xac   : > { %1912 = vmatpush1.bf16.msra.mxu0 %v5015_v30  ;;  %1953 = vmatpush1.bf16.msra.mxu1 %v5019_v31  ;;  %v5060_v31 = vcombine.high %v337_v7, %v345_v12  ;;  %v5087_v7 = vcombine.low %v353_v61, %v361_v53  ;;  %v5089_v12 = vcombine.high %v368_v37, %v376_v35 }
  0xad   : > { %1913 = vmatprep.subr.bf16.mxu0 %v5021_v49  ;;  %1954 = vmatprep.subr.bf16.mxu1 %v5024_v63  ;;  %v5057_v63 = vcombine.high %v336_v54, %v344_v51 }
  0xae   : > { %1943 = vmatprep.mubr.bf16.mxu0 %v4844_v57  ;;  %1984 = vmatprep.mubr.bf16.mxu1 %v4844_v57  ;;  %6928 = vst [vmem:[#allocation66_spill] sm:$0xff] %v5060_v31  ;;  %6931 = vst [vmem:[#allocation69_spill] sm:$0xff] %v5087_v7 }
  0xb0   : > { %1914 = vmatpush1.bf16.msra.mxu0 %v5033_v56  ;;  %1955 = vmatpush1.bf16.msra.mxu1 %v5037_v59  ;;  %v5067_v59 = vcombine.low %v336_v54, %v344_v51  ;;  %v369_v51 = vld [vmem:[%s4723_s10 + $0x298] sm:$0xff] }
  0xb1   : > { %1915 = vmatprep.subr.bf16.mxu0 %v5039_v17  ;;  %1956 = vmatprep.subr.bf16.mxu1 %v5042_v0  ;;  %v5076_v0 = vcombine.high %v353_v61, %v361_v53  ;;  %v377_v54 = vld [vmem:[%s4723_s10 + $0x2d8] sm:$0xff]  ;;  %v5105_v53 = vcombine.high %v384_v29, %v392_v27 }
  0xb2   : > { %v5103_v61 = vcombine.low %v369_v51, %v377_v54 }
  0xb3   : > { %6930 = vst [vmem:[#allocation68_spill] sm:$0xff] %v5076_v0 }
  0xb4   : > { %1916 = vmatpush1.bf16.msra.mxu0 %v5051_v32  ;;  %1957 = vmatpush1.bf16.msra.mxu1 %v5055_v41  ;;  %v5083_v41 = vcombine.low %v352_v45, %v360_v43  ;;  %v385_v43 = vld [vmem:[%s4723_s10 + $0x318] sm:$0xff]  ;;  %6933 = vst [vmem:[#allocation71_spill] sm:$0xff] %v5103_v61 }
  0xb5   : > { %1917 = vmatprep.subr.bf16.mxu0 %v5057_v63  ;;  %1958 = vmatprep.subr.bf16.mxu1 %v5060_v31  ;;  %v5092_v31 = vcombine.high %v369_v51, %v377_v54  ;;  %v393_v45 = vld [vmem:[%s4723_s10 + $0x358] sm:$0xff]  ;;  %v5121_v54 = vcombine.high %v400_v21, %v408_v19 }
  0xb6   : > { %v5119_v51 = vcombine.low %v385_v43, %v393_v45 }
  0xb7   : > { %6932 = vst [vmem:[#allocation70_spill] sm:$0xff] %v5092_v31 }
  0xb8   : > { %1918 = vmatpush1.bf16.msra.mxu0 %v5067_v59  ;;  %1959 = vmatpush1.bf16.msra.mxu1 %v5071_v23  ;;  %v5099_v23 = vcombine.low %v368_v37, %v376_v35  ;;  %v401_v35 = vld [vmem:[%s4723_s10 + $0x398] sm:$0xff]  ;;  %6935 = vst [vmem:[#allocation73_spill] sm:$0xff] %v5119_v51 }
  0xb9   : > { %1919 = vmatprep.subr.bf16.mxu0 %v5073_v25  ;;  %1960 = vmatprep.subr.bf16.mxu1 %v5076_v0  ;;  %v5108_v0 = vcombine.high %v385_v43, %v393_v45  ;;  %v409_v37 = vld [vmem:[%s4723_s10 + $0x3d8] sm:$0xff]  ;;  %v5137_v45 = vcombine.high %v416_v14, %v424_v9 }
  0xba   : > { %v5135_v43 = vcombine.low %v401_v35, %v409_v37 }
  0xbb   : > { %6934 = vst [vmem:[#allocation72_spill] sm:$0xff] %v5108_v0 }
  0xbc   : > { %1920 = vmatpush1.bf16.msra.mxu0 %v5083_v41  ;;  %1961 = vmatpush1.bf16.msra.mxu1 %v5087_v7  ;;  %v5115_v7 = vcombine.low %v384_v29, %v392_v27  ;;  %v417_v27 = vld [vmem:[%s4723_s10 + $0x418] sm:$0xff]  ;;  %6937 = vst [vmem:[#allocation75_spill] sm:$0xff] %v5135_v43 }
  0xbd   : > { %1921 = vmatprep.subr.bf16.mxu0 %v5089_v12  ;;  %1962 = vmatprep.subr.bf16.mxu1 %v5092_v31  ;;  %v5124_v31 = vcombine.high %v401_v35, %v409_v37  ;;  %v425_v29 = vld [vmem:[%s4723_s10 + $0x458] sm:$0xff]  ;;  %v5153_v37 = vcombine.high %v432_v8, %v440_v2 }
  0xbe   : > { %v5151_v35 = vcombine.low %v417_v27, %v425_v29 }
  0xbf   : > { %6936 = vst [vmem:[#allocation74_spill] sm:$0xff] %v5124_v31  ;;  %6941 = vst [vmem:[#allocation79_spill] sm:$0xff] %v5153_v37 }
  0xc0   : > { %1922 = vmatpush1.bf16.msra.mxu0 %v5099_v23  ;;  %1963 = vmatpush1.bf16.msra.mxu1 %v5103_v61  ;;  %v5131_v61 = vcombine.low %v400_v21, %v408_v19  ;;  %v433_v19 = vld [vmem:[%s4723_s10 + $0x498] sm:$0xff]  ;;  %6940 = vst [vmem:[#allocation78_spill] sm:$0xff] %v5151_v35 }
  0xc1   : > { %1923 = vmatprep.subr.bf16.mxu0 %v5105_v53  ;;  %1964 = vmatprep.subr.bf16.mxu1 %v5108_v0  ;;  %v5140_v0 = vcombine.high %v417_v27, %v425_v29  ;;  %v441_v21 = vld [vmem:[%s4723_s10 + $0x4d8] sm:$0xff]  ;;  %v5169_v29 = vcombine.high %v448_v33, %v456_v47 }
  0xc2   : > { %v5167_v27 = vcombine.low %v433_v19, %v441_v21 }
  0xc3   : > { %6938 = vst [vmem:[#allocation76_spill] sm:$0xff] %v5140_v0  ;;  %6945 = vst [vmem:[#allocation83_spill] sm:$0xff] %v5169_v29 }
  0xc4   : > { %1924 = vmatpush1.bf16.msra.mxu0 %v5115_v7  ;;  %1965 = vmatpush1.bf16.msra.mxu1 %v5119_v51  ;;  %v5147_v51 = vcombine.low %v416_v14, %v424_v9  ;;  %v449_v9 = vld [vmem:[%s4723_s10 + $0x518] sm:$0xff]  ;;  %6944 = vst [vmem:[#allocation82_spill] sm:$0xff] %v5167_v27 }
  0xc5   : > { %1925 = vmatprep.subr.bf16.mxu0 %v5121_v54  ;;  %1966 = vmatprep.subr.bf16.mxu1 %v5124_v31  ;;  %v5156_v31 = vcombine.high %v433_v19, %v441_v21  ;;  %v457_v14 = vld [vmem:[%s4723_s10 + $0x558] sm:$0xff]  ;;  %v5185_v21 = vcombine.high %v464_v4, %v472_v15 }
  0xc6   : > { %6939 = vst [vmem:[#allocation77_spill] sm:$0xff] %v5147_v51  ;;  %v5183_v19 = vcombine.low %v449_v9, %v457_v14 }
  0xc7   : > { %6942 = vst [vmem:[#allocation80_spill] sm:$0xff] %v5156_v31  ;;  %6949 = vst [vmem:[#allocation87_spill] sm:$0xff] %v5185_v21 }
  0xc8   : > { %1926 = vmatpush1.bf16.msra.mxu0 %v5131_v61  ;;  %1967 = vmatpush1.bf16.msra.mxu1 %v5135_v43  ;;  %v5163_v43 = vcombine.low %v432_v8, %v440_v2  ;;  %v465_v8 = vld [vmem:[%s4723_s10 + $0x598] sm:$0xff]  ;;  %6948 = vst [vmem:[#allocation86_spill] sm:$0xff] %v5183_v19 }
  0xc9   : > { %1927 = vmatprep.subr.bf16.mxu0 %v5137_v45  ;;  %1968 = vmatprep.subr.bf16.mxu1 %v5140_v0  ;;  %v5172_v0 = vcombine.high %v449_v9, %v457_v14  ;;  %v473_v2 = vld [vmem:[%s4723_s10 + $0x5d8] sm:$0xff]  ;;  %v5201_v14 = vcombine.high %v480_v48, %v488_v46 }
  0xca   : > { %6943 = vst [vmem:[#allocation81_spill] sm:$0xff] %v5163_v43  ;;  %v5199_v9 = vcombine.low %v465_v8, %v473_v2 }
  0xcb   : > { %6946 = vst [vmem:[#allocation84_spill] sm:$0xff] %v5172_v0  ;;  %6953 = vst [vmem:[#allocation91_spill] sm:$0xff] %v5201_v14 }
  0xcc   : > { %1928 = vmatpush1.bf16.msra.mxu0 %v5147_v51  ;;  %1969 = vmatpush1.bf16.msra.mxu1 %v5151_v35  ;;  %v5179_v35 = vcombine.low %v448_v33, %v456_v47  ;;  %v481_v47 = vld [vmem:[%s4723_s10 + $0x618] sm:$0xff]  ;;  %6952 = vst [vmem:[#allocation90_spill] sm:$0xff] %v5199_v9 }
  0xcd   : > { %1929 = vmatprep.subr.bf16.mxu0 %v5153_v37  ;;  %1970 = vmatprep.subr.bf16.mxu1 %v5156_v31  ;;  %v5188_v31 = vcombine.high %v465_v8, %v473_v2  ;;  %v489_v33 = vld [vmem:[%s4723_s10 + $0x658] sm:$0xff]  ;;  %v5217_v2 = vcombine.high %v496_v16, %v504_v13 }
  0xce   : > { %6947 = vst [vmem:[#allocation85_spill] sm:$0xff] %v5179_v35  ;;  %v5215_v8 = vcombine.low %v481_v47, %v489_v33 }
  0xcf   : > { %6950 = vst [vmem:[#allocation88_spill] sm:$0xff] %v5188_v31  ;;  %6957 = vst [vmem:[#allocation95_spill] sm:$0xff] %v5217_v2 }
  0xd0   : > { %1930 = vmatpush1.bf16.msra.mxu0 %v5163_v43  ;;  %1971 = vmatpush1.bf16.msra.mxu1 %v5167_v27  ;;  %v5195_v27 = vcombine.low %v464_v4, %v472_v15  ;;  %v497_v15 = vld [vmem:[%s4723_s10 + $0x698] sm:$0xff]  ;;  %6956 = vst [vmem:[#allocation94_spill] sm:$0xff] %v5215_v8 }
  0xd1   : > { %1931 = vmatprep.subr.bf16.mxu0 %v5169_v29  ;;  %1972 = vmatprep.subr.bf16.mxu1 %v5172_v0  ;;  %v5204_v0 = vcombine.high %v481_v47, %v489_v33  ;;  %v505_v4 = vld [vmem:[%s4723_s10 + $0x6d8] sm:$0xff] }
  0xd2   : > { %6951 = vst [vmem:[#allocation89_spill] sm:$0xff] %v5195_v27  ;;  %v5231_v47 = vcombine.low %v497_v15, %v505_v4 }
  0xd3   : > { %6954 = vst [vmem:[#allocation92_spill] sm:$0xff] %v5204_v0 }
  0xd4   : > { %1932 = vmatpush1.bf16.msra.mxu0 %v5179_v35  ;;  %1973 = vmatpush1.bf16.msra.mxu1 %v5183_v19  ;;  %v5211_v19 = vcombine.low %v480_v48, %v488_v46  ;;  %v513_v46 = vld [vmem:[%s4723_s10 + $0x718] sm:$0xff]  ;;  %6960 = vst [vmem:[#allocation98_spill] sm:$0xff] %v5231_v47 }
  0xd5   : > { %1933 = vmatprep.subr.bf16.mxu0 %v5185_v21  ;;  %1974 = vmatprep.subr.bf16.mxu1 %v5188_v31  ;;  %v5220_v31 = vcombine.high %v497_v15, %v505_v4  ;;  %v512_v21 = vld [vmem:[%s4723_s10 + $0x710] sm:$0xff]  ;;  %v521_v48 = vld [vmem:[%s4723_s10 + $0x758] sm:$0xff] }
  0xd6   : > { %6955 = vst [vmem:[#allocation93_spill] sm:$0xff] %v5211_v19  ;;  %v5247_v15 = vcombine.low %v513_v46, %v521_v48  ;;  %v533_v35 = vld [vmem:[%s4723_s10 + $0x7b8] sm:$0xff] }
  0xd7   : > { %6958 = vst [vmem:[#allocation96_spill] sm:$0xff] %v5220_v31 }
  0xd8   : > { %1934 = vmatpush1.bf16.msra.mxu0 %v5195_v27  ;;  %1975 = vmatpush1.bf16.msra.mxu1 %v5199_v9  ;;  %v520_v27 = vld [vmem:[%s4723_s10 + $0x750] sm:$0xff]  ;;  %v5227_v9 = vcombine.low %v496_v16, %v504_v13  ;;  %v529_v13 = vld [vmem:[%s4723_s10 + $0x798] sm:$0xff]  ;;  %6964 = vst [vmem:[#allocation102_spill] sm:$0xff] %v5247_v15 }
  0xd9   : > { %1935 = vmatprep.subr.bf16.mxu0 %v5201_v14  ;;  %1976 = vmatprep.subr.bf16.mxu1 %v5204_v0  ;;  %v5233_v33 = vcombine.high %v512_v21, %v520_v27  ;;  %v5236_v0 = vcombine.high %v513_v46, %v521_v48  ;;  %v528_v14 = vld [vmem:[%s4723_s10 + $0x790] sm:$0xff]  ;;  %v537_v16 = vld [vmem:[%s4723_s10 + $0x7d8] sm:$0xff] }
  0xda   : > { %6959 = vst [vmem:[#allocation97_spill] sm:$0xff] %v5227_v9  ;;  %v5263_v46 = vcombine.low %v529_v13, %v537_v16 }
  0xdb   : > { %6961 = vst [vmem:[#allocation99_spill] sm:$0xff] %v5233_v33  ;;  %6962 = vst [vmem:[#allocation100_spill] sm:$0xff] %v5236_v0 }
  0xdc   : > { %1936 = vmatpush1.bf16.msra.mxu0 %v5211_v19  ;;  %1977 = vmatpush1.bf16.msra.mxu1 %v5215_v8  ;;  %v536_v19 = vld [vmem:[%s4723_s10 + $0x7d0] sm:$0xff]  ;;  %v5243_v8 = vcombine.low %v512_v21, %v520_v27  ;;  %v291_v27 = vld [vmem:[%s4723_s10 + $0x28] sm:$0xff]  ;;  %6968 = vst [vmem:[#allocation106_spill] sm:$0xff] %v5263_v46 }
  0xdd   : > { %1937 = vmatprep.subr.bf16.mxu0 %v5217_v2  ;;  %1978 = vmatprep.subr.bf16.mxu1 %v5220_v31  ;;  %v5249_v4 = vcombine.high %v528_v14, %v536_v19  ;;  %v5252_v31 = vcombine.high %v529_v13, %v537_v16  ;;  %v290_v2 = vld [vmem:[%s4723_s10 + $0x20] sm:$0xff]  ;;  %v299_v21 = vld [vmem:[%s4723_s10 + $0x68] sm:$0xff] }
  0xde   : > { %6963 = vst [vmem:[#allocation101_spill] sm:$0xff] %v5243_v8  ;;  %v5279_v13 = vcombine.low %v291_v27, %v299_v21 }
  0xdf   : > { %6965 = vst [vmem:[#allocation103_spill] sm:$0xff] %v5249_v4  ;;  %6966 = vst [vmem:[#allocation104_spill] sm:$0xff] %v5252_v31 }
  0xe0   : > { %1938 = vmatpush1.bf16.msra.mxu0 %v5227_v9  ;;  %1979 = vmatpush1.bf16.msra.mxu1 %v5231_v47  ;;  %v298_v9 = vld [vmem:[%s4723_s10 + $0x60] sm:$0xff]  ;;  %v5259_v47 = vcombine.low %v528_v14, %v536_v19  ;;  %v307_v19 = vld [vmem:[%s4723_s10 + $0xa8] sm:$0xff]  ;;  %6972 = vst [vmem:[#allocation110_spill] sm:$0xff] %v5279_v13 }
  0xe1   : > { %1939 = vmatprep.subr.bf16.mxu0 %v5233_v33  ;;  %1980 = vmatprep.subr.bf16.mxu1 %v5236_v0  ;;  %v5265_v48 = vcombine.high %v290_v2, %v298_v9  ;;  %v5268_v0 = vcombine.high %v291_v27, %v299_v21  ;;  %v306_v33 = vld [vmem:[%s4723_s10 + $0xa0] sm:$0xff]  ;;  %v315_v14 = vld [vmem:[%s4723_s10 + $0xe8] sm:$0xff] }
  0xe2   : > { %6967 = vst [vmem:[#allocation105_spill] sm:$0xff] %v5259_v47  ;;  %v5297_v21 = vcombine.low %v307_v19, %v315_v14 }
  0xe3   : > { %6969 = vst [vmem:[#allocation107_spill] sm:$0xff] %v5265_v48  ;;  %6970 = vst [vmem:[#allocation108_spill] sm:$0xff] %v5268_v0 }
  0xe4   : > { %1940 = vmatpush1.bf16.msra.mxu0 %v5243_v8  ;;  %1981 = vmatpush1.bf16.msra.mxu1 %v5247_v15  ;;  %v314_v8 = vld [vmem:[%s4723_s10 + $0xe0] sm:$0xff]  ;;  %v5275_v15 = vcombine.low %v290_v2, %v298_v9  ;;  %v323_v9 = vld [vmem:[%s4723_s10 + $0x128] sm:$0xff]  ;;  %6976 = vst [vmem:[#allocation114_spill] sm:$0xff] %v5297_v21 }
  0xe5   : > { %1941 = vmatprep.subr.bf16.mxu0 %v5249_v4  ;;  %1982 = vmatprep.subr.bf16.mxu1 %v5252_v31  ;;  %v5281_v16 = vcombine.high %v306_v33, %v314_v8  ;;  %v5284_v31 = vcombine.high %v307_v19, %v315_v14  ;;  %v322_v4 = vld [vmem:[%s4723_s10 + $0x120] sm:$0xff]  ;;  %v331_v2 = vld [vmem:[%s4723_s10 + $0x168] sm:$0xff]  ;;  %v5293_v27 = vcombine.low %v306_v33, %v314_v8 }
  0xe6   : > { %6971 = vst [vmem:[#allocation109_spill] sm:$0xff] %v5275_v15  ;;  %v339_v8 = vld [vmem:[%s4723_s10 + $0x1a8] sm:$0xff]  ;;  %v5311_v19 = vcombine.low %v322_v4, %v330_v58  ;;  %v5315_v14 = vcombine.low %v323_v9, %v331_v2 }
  0xe7   : > { %6973 = vst [vmem:[#allocation111_spill] sm:$0xff] %v5281_v16  ;;  %6974 = vst [vmem:[#allocation112_spill] sm:$0xff] %v5284_v31  ;;  %v347_v33 = vld [vmem:[%s4723_s10 + $0x1e8] sm:$0xff] }
  0xe8   : > { %1942 = vmatpush1.bf16.msra.mxu0 %v5259_v47  ;;  %1983 = vmatpush1.bf16.msra.mxu1 %v5263_v46  ;;  %6975 = vst [vmem:[#allocation113_spill] sm:$0xff] %v5293_v27  ;;  %v5302_v46 = vcombine.high %v323_v9, %v331_v2  ;;  %v346_v47 = vld [vmem:[%s4723_s10 + $0x1e0] sm:$0xff]  ;;  %6979 = vst [vmem:[#allocation117_spill] sm:$0xff] %v5311_v19  ;;  %v5331_v9 = vcombine.low %v339_v8, %v347_v33 }
  0xe9   : > { %1993 = vmatprep.subr.bf16.mxu0 %v5265_v48  ;;  %2034 = vmatprep.subr.bf16.mxu1 %v5268_v0  ;;  %v5299_v0 = vcombine.high %v322_v4, %v330_v58  ;;  %v338_v48 = vld [vmem:[%s4723_s10 + $0x1a0] sm:$0xff]  ;;  %6980 = vst [vmem:[#allocation118_spill] sm:$0xff] %v5315_v14  ;;  %v355_v58 = vld [vmem:[%s4723_s10 + $0x228] sm:$0xff] }
  0xea   : > { %6978 = vst [vmem:[#allocation116_spill] sm:$0xff] %v5302_v46  ;;  %v363_v4 = vld [vmem:[%s4723_s10 + $0x268] sm:$0xff]  ;;  %6984 = vst [vmem:[#allocation122_spill] sm:$0xff] %v5331_v9 }
  0xeb   : > { %1944 = vmatmul.mubr.bf16.vlgmr.msra.gmra.mrb[4].mxu0 %v5010_v39  ;;  %1985 = vmatmul.mubr.bf16.vlgmr.msra.gmra.mrb[4].mxu1 %v5010_v39  ;;  %6977 = vst [vmem:[#allocation115_spill] sm:$0xff] %v5299_v0 }
  0xec   : > { %1994 = vmatpush1.bf16.msra.mxu0 %v5275_v15  ;;  %2035 = vmatpush1.bf16.msra.mxu1 %v5279_v13  ;;  %v5320_v13 = vcombine.high %v339_v8, %v347_v33  ;;  %v5347_v8 = vcombine.low %v355_v58, %v363_v4  ;;  %v332_v15 = vld [vmem:[%s4723_s10 + $0x170] sm:$0xff] }
  0xed   : > { %1995 = vmatprep.subr.bf16.mxu0 %v5281_v16  ;;  %2036 = vmatprep.subr.bf16.mxu1 %v5284_v31  ;;  %v5317_v31 = vcombine.high %v338_v48, %v346_v47  ;;  %v354_v16 = vld [vmem:[%s4723_s10 + $0x220] sm:$0xff] }
  0xee   : > { %2025 = vmatprep.mubr.bf16.mxu0 %v4844_v57  ;;  %2066 = vmatprep.mubr.bf16.mxu1 %v4844_v57  ;;  %6982 = vst [vmem:[#allocation120_spill] sm:$0xff] %v5320_v13  ;;  %6988 = vst [vmem:[#allocation126_spill] sm:$0xff] %v5347_v8 }
  0xef   : > { %6981 = vst [vmem:[#allocation119_spill] sm:$0xff] %v5317_v31 }
  0xf0   : > { %1996 = vmatpush1.bf16.msra.mxu0 %v5293_v27  ;;  %2037 = vmatpush1.bf16.msra.mxu1 %v5297_v21  ;;  %v362_v27 = vld [vmem:[%s4723_s10 + $0x260] sm:$0xff]  ;;  %v5327_v21 = vcombine.low %v338_v48, %v346_v47  ;;  %v371_v47 = vld [vmem:[%s4723_s10 + $0x2a8] sm:$0xff] }
  0xf1   : > { %1997 = vmatprep.subr.bf16.mxu0 %v5299_v0  ;;  %2038 = vmatprep.subr.bf16.mxu1 %v5302_v46  ;;  %v5333_v2 = vcombine.high %v354_v16, %v362_v27  ;;  %v5336_v46 = vcombine.high %v355_v58, %v363_v4  ;;  %v370_v0 = vld [vmem:[%s4723_s10 + $0x2a0] sm:$0xff]  ;;  %v379_v48 = vld [vmem:[%s4723_s10 + $0x2e8] sm:$0xff] }
  0xf2   : > { %6983 = vst [vmem:[#allocation121_spill] sm:$0xff] %v5327_v21  ;;  %v5363_v58 = vcombine.low %v371_v47, %v379_v48 }
  0xf3   : > { %6985 = vst [vmem:[#allocation123_spill] sm:$0xff] %v5333_v2  ;;  %6986 = vst [vmem:[#allocation124_spill] sm:$0xff] %v5336_v46 }
  0xf4   : > { %1998 = vmatpush1.bf16.msra.mxu0 %v5311_v19  ;;  %2039 = vmatpush1.bf16.msra.mxu1 %v5315_v14  ;;  %v378_v19 = vld [vmem:[%s4723_s10 + $0x2e0] sm:$0xff]  ;;  %v5343_v14 = vcombine.low %v354_v16, %v362_v27  ;;  %v387_v16 = vld [vmem:[%s4723_s10 + $0x328] sm:$0xff]  ;;  %6992 = vst [vmem:[#allocation130_spill] sm:$0xff] %v5363_v58 }
  0xf5   : > { %1999 = vmatprep.subr.bf16.mxu0 %v5317_v31  ;;  %2040 = vmatprep.subr.bf16.mxu1 %v5320_v13  ;;  %v5349_v33 = vcombine.high %v370_v0, %v378_v19  ;;  %v5352_v13 = vcombine.high %v371_v47, %v379_v48  ;;  %v386_v31 = vld [vmem:[%s4723_s10 + $0x320] sm:$0xff]  ;;  %v395_v27 = vld [vmem:[%s4723_s10 + $0x368] sm:$0xff] }
  0xf6   : > { %6987 = vst [vmem:[#allocation125_spill] sm:$0xff] %v5343_v14  ;;  %v5379_v47 = vcombine.low %v387_v16, %v395_v27 }
  0xf7   : > { %6989 = vst [vmem:[#allocation127_spill] sm:$0xff] %v5349_v33  ;;  %6990 = vst [vmem:[#allocation128_spill] sm:$0xff] %v5352_v13 }
  0xf8   : > { %2000 = vmatpush1.bf16.msra.mxu0 %v5327_v21  ;;  %2041 = vmatpush1.bf16.msra.mxu1 %v5331_v9  ;;  %v394_v21 = vld [vmem:[%s4723_s10 + $0x360] sm:$0xff]  ;;  %v5359_v9 = vcombine.low %v370_v0, %v378_v19  ;;  %v403_v0 = vld [vmem:[%s4723_s10 + $0x3a8] sm:$0xff]  ;;  %6996 = vst [vmem:[#allocation134_spill] sm:$0xff] %v5379_v47 }
  0xf9   : > { %2001 = vmatprep.subr.bf16.mxu0 %v5333_v2  ;;  %2042 = vmatprep.subr.bf16.mxu1 %v5336_v46  ;;  %v5365_v4 = vcombine.high %v386_v31, %v394_v21  ;;  %v5368_v46 = vcombine.high %v387_v16, %v395_v27  ;;  %v402_v2 = vld [vmem:[%s4723_s10 + $0x3a0] sm:$0xff]  ;;  %v411_v19 = vld [vmem:[%s4723_s10 + $0x3e8] sm:$0xff] }
  0xfa   : > { %6991 = vst [vmem:[#allocation129_spill] sm:$0xff] %v5359_v9  ;;  %v5395_v16 = vcombine.low %v403_v0, %v411_v19 }
  0xfb   : > { %6993 = vst [vmem:[#allocation131_spill] sm:$0xff] %v5365_v4  ;;  %6994 = vst [vmem:[#allocation132_spill] sm:$0xff] %v5368_v46 }
  0xfc   : > { %2002 = vmatpush1.bf16.msra.mxu0 %v5343_v14  ;;  %2043 = vmatpush1.bf16.msra.mxu1 %v5347_v8  ;;  %v410_v14 = vld [vmem:[%s4723_s10 + $0x3e0] sm:$0xff]  ;;  %v5375_v8 = vcombine.low %v386_v31, %v394_v21  ;;  %v419_v31 = vld [vmem:[%s4723_s10 + $0x428] sm:$0xff]  ;;  %7000 = vst [vmem:[#allocation138_spill] sm:$0xff] %v5395_v16 }
  0xfd   : > { %2003 = vmatprep.subr.bf16.mxu0 %v5349_v33  ;;  %2044 = vmatprep.subr.bf16.mxu1 %v5352_v13  ;;  %v5381_v48 = vcombine.high %v402_v2, %v410_v14  ;;  %v5384_v13 = vcombine.high %v403_v0, %v411_v19  ;;  %v418_v33 = vld [vmem:[%s4723_s10 + $0x420] sm:$0xff]  ;;  %v427_v21 = vld [vmem:[%s4723_s10 + $0x468] sm:$0xff] }
  0xfe   : > { %6995 = vst [vmem:[#allocation133_spill] sm:$0xff] %v5375_v8  ;;  %v5411_v0 = vcombine.low %v419_v31, %v427_v21 }
  0xff   : > { %6997 = vst [vmem:[#allocation135_spill] sm:$0xff] %v5381_v48  ;;  %6998 = vst [vmem:[#allocation136_spill] sm:$0xff] %v5384_v13 }
 0x100   : > { %2004 = vmatpush1.bf16.msra.mxu0 %v5359_v9  ;;  %2045 = vmatpush1.bf16.msra.mxu1 %v5363_v58  ;;  %v426_v9 = vld [vmem:[%s4723_s10 + $0x460] sm:$0xff]  ;;  %v5391_v58 = vcombine.low %v402_v2, %v410_v14  ;;  %v435_v14 = vld [vmem:[%s4723_s10 + $0x4a8] sm:$0xff]  ;;  %7004 = vst [vmem:[#allocation142_spill] sm:$0xff] %v5411_v0 }
 0x101   : > { %2005 = vmatprep.subr.bf16.mxu0 %v5365_v4  ;;  %2046 = vmatprep.subr.bf16.mxu1 %v5368_v46  ;;  %v5397_v27 = vcombine.high %v418_v33, %v426_v9  ;;  %v5400_v46 = vcombine.high %v419_v31, %v427_v21  ;;  %v434_v4 = vld [vmem:[%s4723_s10 + $0x4a0] sm:$0xff]  ;;  %v443_v2 = vld [vmem:[%s4723_s10 + $0x4e8] sm:$0xff] }
 0x102   : > { %6999 = vst [vmem:[#allocation137_spill] sm:$0xff] %v5391_v58  ;;  %v5427_v31 = vcombine.low %v435_v14, %v443_v2 }
 0x103   : > { %7001 = vst [vmem:[#allocation139_spill] sm:$0xff] %v5397_v27  ;;  %7002 = vst [vmem:[#allocation140_spill] sm:$0xff] %v5400_v46 }
 0x104   : > { %2006 = vmatpush1.bf16.msra.mxu0 %v5375_v8  ;;  %2047 = vmatpush1.bf16.msra.mxu1 %v5379_v47  ;;  %v442_v8 = vld [vmem:[%s4723_s10 + $0x4e0] sm:$0xff]  ;;  %v5407_v47 = vcombine.low %v418_v33, %v426_v9  ;;  %v451_v9 = vld [vmem:[%s4723_s10 + $0x528] sm:$0xff]  ;;  %7008 = vst [vmem:[#allocation146_spill] sm:$0xff] %v5427_v31 }
 0x105   : > { %2007 = vmatprep.subr.bf16.mxu0 %v5381_v48  ;;  %2048 = vmatprep.subr.bf16.mxu1 %v5384_v13  ;;  %v5413_v19 = vcombine.high %v434_v4, %v442_v8  ;;  %v5416_v13 = vcombine.high %v435_v14, %v443_v2  ;;  %v450_v48 = vld [vmem:[%s4723_s10 + $0x520] sm:$0xff]  ;;  %v459_v33 = vld [vmem:[%s4723_s10 + $0x568] sm:$0xff] }
 0x106   : > { %7003 = vst [vmem:[#allocation141_spill] sm:$0xff] %v5407_v47  ;;  %v5443_v14 = vcombine.low %v451_v9, %v459_v33 }
 0x107   : > { %7005 = vst [vmem:[#allocation143_spill] sm:$0xff] %v5413_v19  ;;  %7006 = vst [vmem:[#allocation144_spill] sm:$0xff] %v5416_v13 }
 0x108   : > { %2008 = vmatpush1.bf16.msra.mxu0 %v5391_v58  ;;  %2049 = vmatpush1.bf16.msra.mxu1 %v5395_v16  ;;  %v458_v58 = vld [vmem:[%s4723_s10 + $0x560] sm:$0xff]  ;;  %v5423_v16 = vcombine.low %v434_v4, %v442_v8  ;;  %v467_v8 = vld [vmem:[%s4723_s10 + $0x5a8] sm:$0xff]  ;;  %7012 = vst [vmem:[#allocation150_spill] sm:$0xff] %v5443_v14 }
 0x109   : > { %2009 = vmatprep.subr.bf16.mxu0 %v5397_v27  ;;  %2050 = vmatprep.subr.bf16.mxu1 %v5400_v46  ;;  %v5429_v21 = vcombine.high %v450_v48, %v458_v58  ;;  %v5432_v46 = vcombine.high %v451_v9, %v459_v33  ;;  %v466_v27 = vld [vmem:[%s4723_s10 + $0x5a0] sm:$0xff]  ;;  %v475_v4 = vld [vmem:[%s4723_s10 + $0x5e8] sm:$0xff] }
 0x10a   : > { %7007 = vst [vmem:[#allocation145_spill] sm:$0xff] %v5423_v16  ;;  %v5459_v9 = vcombine.low %v467_v8, %v475_v4 }
 0x10b   : > { %7009 = vst [vmem:[#allocation147_spill] sm:$0xff] %v5429_v21  ;;  %7010 = vst [vmem:[#allocation148_spill] sm:$0xff] %v5432_v46 }
 0x10c   : > { %2010 = vmatpush1.bf16.msra.mxu0 %v5407_v47  ;;  %2051 = vmatpush1.bf16.msra.mxu1 %v5411_v0  ;;  %v474_v47 = vld [vmem:[%s4723_s10 + $0x5e0] sm:$0xff]  ;;  %v5439_v0 = vcombine.low %v450_v48, %v458_v58  ;;  %v483_v58 = vld [vmem:[%s4723_s10 + $0x628] sm:$0xff]  ;;  %7016 = vst [vmem:[#allocation154_spill] sm:$0xff] %v5459_v9 }
 0x10d   : > { %2011 = vmatprep.subr.bf16.mxu0 %v5413_v19  ;;  %2052 = vmatprep.subr.bf16.mxu1 %v5416_v13  ;;  %v5445_v2 = vcombine.high %v466_v27, %v474_v47  ;;  %v5448_v13 = vcombine.high %v467_v8, %v475_v4  ;;  %v482_v19 = vld [vmem:[%s4723_s10 + $0x620] sm:$0xff]  ;;  %v491_v48 = vld [vmem:[%s4723_s10 + $0x668] sm:$0xff] }
 0x10e   : > { %7011 = vst [vmem:[#allocation149_spill] sm:$0xff] %v5439_v0  ;;  %v5475_v8 = vcombine.low %v483_v58, %v491_v48 }
 0x10f   : > { %7013 = vst [vmem:[#allocation151_spill] sm:$0xff] %v5445_v2  ;;  %7014 = vst [vmem:[#allocation152_spill] sm:$0xff] %v5448_v13 }
 0x110   : > { %2012 = vmatpush1.bf16.msra.mxu0 %v5423_v16  ;;  %2053 = vmatpush1.bf16.msra.mxu1 %v5427_v31  ;;  %v490_v16 = vld [vmem:[%s4723_s10 + $0x660] sm:$0xff]  ;;  %v5455_v31 = vcombine.low %v466_v27, %v474_v47  ;;  %v499_v47 = vld [vmem:[%s4723_s10 + $0x6a8] sm:$0xff]  ;;  %7020 = vst [vmem:[#allocation158_spill] sm:$0xff] %v5475_v8 }
 0x111   : > { %2013 = vmatprep.subr.bf16.mxu0 %v5429_v21  ;;  %2054 = vmatprep.subr.bf16.mxu1 %v5432_v46  ;;  %v5461_v33 = vcombine.high %v482_v19, %v490_v16  ;;  %v5464_v46 = vcombine.high %v483_v58, %v491_v48  ;;  %v498_v21 = vld [vmem:[%s4723_s10 + $0x6a0] sm:$0xff]  ;;  %v507_v27 = vld [vmem:[%s4723_s10 + $0x6e8] sm:$0xff] }
 0x112   : > { %7015 = vst [vmem:[#allocation153_spill] sm:$0xff] %v5455_v31  ;;  %v5491_v58 = vcombine.low %v499_v47, %v507_v27 }
 0x113   : > { %7017 = vst [vmem:[#allocation155_spill] sm:$0xff] %v5461_v33  ;;  %7018 = vst [vmem:[#allocation156_spill] sm:$0xff] %v5464_v46 }
 0x114   : > { %2014 = vmatpush1.bf16.msra.mxu0 %v5439_v0  ;;  %2055 = vmatpush1.bf16.msra.mxu1 %v5443_v14  ;;  %v506_v0 = vld [vmem:[%s4723_s10 + $0x6e0] sm:$0xff]  ;;  %v5471_v14 = vcombine.low %v482_v19, %v490_v16  ;;  %v515_v16 = vld [vmem:[%s4723_s10 + $0x728] sm:$0xff]  ;;  %7024 = vst [vmem:[#allocation162_spill] sm:$0xff] %v5491_v58 }
 0x115   : > { %2015 = vmatprep.subr.bf16.mxu0 %v5445_v2  ;;  %2056 = vmatprep.subr.bf16.mxu1 %v5448_v13  ;;  %v5477_v4 = vcombine.high %v498_v21, %v506_v0  ;;  %v5480_v13 = vcombine.high %v499_v47, %v507_v27  ;;  %v514_v2 = vld [vmem:[%s4723_s10 + $0x720] sm:$0xff]  ;;  %v523_v19 = vld [vmem:[%s4723_s10 + $0x768] sm:$0xff] }
 0x116   : > { %7019 = vst [vmem:[#allocation157_spill] sm:$0xff] %v5471_v14  ;;  %v5507_v47 = vcombine.low %v515_v16, %v523_v19 }
 0x117   : > { %7021 = vst [vmem:[#allocation159_spill] sm:$0xff] %v5477_v4  ;;  %7022 = vst [vmem:[#allocation160_spill] sm:$0xff] %v5480_v13 }
 0x118   : > { %2016 = vmatpush1.bf16.msra.mxu0 %v5455_v31  ;;  %2057 = vmatpush1.bf16.msra.mxu1 %v5459_v9  ;;  %v522_v31 = vld [vmem:[%s4723_s10 + $0x760] sm:$0xff]  ;;  %v5487_v9 = vcombine.low %v498_v21, %v506_v0  ;;  %v531_v0 = vld [vmem:[%s4723_s10 + $0x7a8] sm:$0xff]  ;;  %7028 = vst [vmem:[#allocation166_spill] sm:$0xff] %v5507_v47 }
 0x119   : > { %2017 = vmatprep.subr.bf16.mxu0 %v5461_v33  ;;  %2058 = vmatprep.subr.bf16.mxu1 %v5464_v46  ;;  %v5493_v48 = vcombine.high %v514_v2, %v522_v31  ;;  %v5496_v46 = vcombine.high %v515_v16, %v523_v19  ;;  %v530_v33 = vld [vmem:[%s4723_s10 + $0x7a0] sm:$0xff]  ;;  %v539_v21 = vld [vmem:[%s4723_s10 + $0x7e8] sm:$0xff] }
 0x11a   : > { %7023 = vst [vmem:[#allocation161_spill] sm:$0xff] %v5487_v9  ;;  %v5523_v16 = vcombine.low %v531_v0, %v539_v21 }
 0x11b   : > { %7025 = vst [vmem:[#allocation163_spill] sm:$0xff] %v5493_v48  ;;  %7026 = vst [vmem:[#allocation164_spill] sm:$0xff] %v5496_v46 }
 0x11c   : > { %2018 = vmatpush1.bf16.msra.mxu0 %v5471_v14  ;;  %2059 = vmatpush1.bf16.msra.mxu1 %v5475_v8  ;;  %v538_v14 = vld [vmem:[%s4723_s10 + $0x7e0] sm:$0xff]  ;;  %v5503_v8 = vcombine.low %v514_v2, %v522_v31  ;;  %v293_v31 = vld [vmem:[%s4723_s10 + $0x38] sm:$0xff]  ;;  %7032 = vst [vmem:[#allocation170_spill] sm:$0xff] %v5523_v16 }
 0x11d   : > { %2019 = vmatprep.subr.bf16.mxu0 %v5477_v4  ;;  %2060 = vmatprep.subr.bf16.mxu1 %v5480_v13  ;;  %v5509_v27 = vcombine.high %v530_v33, %v538_v14  ;;  %v5512_v13 = vcombine.high %v531_v0, %v539_v21  ;;  %v292_v4 = vld [vmem:[%s4723_s10 + $0x30] sm:$0xff]  ;;  %v301_v2 = vld [vmem:[%s4723_s10 + $0x78] sm:$0xff] }
 0x11e   : > { %7027 = vst [vmem:[#allocation165_spill] sm:$0xff] %v5503_v8  ;;  %v5539_v0 = vcombine.low %v293_v31, %v301_v2 }
 0x11f   : > { %7029 = vst [vmem:[#allocation167_spill] sm:$0xff] %v5509_v27  ;;  %7030 = vst [vmem:[#allocation168_spill] sm:$0xff] %v5512_v13 }
 0x120   : > { %2020 = vmatpush1.bf16.msra.mxu0 %v5487_v9  ;;  %2061 = vmatpush1.bf16.msra.mxu1 %v5491_v58  ;;  %v300_v9 = vld [vmem:[%s4723_s10 + $0x70] sm:$0xff]  ;;  %v5519_v58 = vcombine.low %v530_v33, %v538_v14  ;;  %v309_v14 = vld [vmem:[%s4723_s10 + $0xb8] sm:$0xff]  ;;  %7036 = vst [vmem:[#allocation174_spill] sm:$0xff] %v5539_v0 }
 0x121   : > { %2021 = vmatprep.subr.bf16.mxu0 %v5493_v48  ;;  %2062 = vmatprep.subr.bf16.mxu1 %v5496_v46  ;;  %v5525_v19 = vcombine.high %v292_v4, %v300_v9  ;;  %v5528_v46 = vcombine.high %v293_v31, %v301_v2  ;;  %v308_v48 = vld [vmem:[%s4723_s10 + $0xb0] sm:$0xff]  ;;  %v317_v33 = vld [vmem:[%s4723_s10 + $0xf8] sm:$0xff] }
 0x122   : > { %7031 = vst [vmem:[#allocation169_spill] sm:$0xff] %v5519_v58  ;;  %v5557_v2 = vcombine.low %v309_v14, %v317_v33 }
 0x123   : > { %7033 = vst [vmem:[#allocation171_spill] sm:$0xff] %v5525_v19  ;;  %7034 = vst [vmem:[#allocation172_spill] sm:$0xff] %v5528_v46 }
 0x124   : > { %2022 = vmatpush1.bf16.msra.mxu0 %v5503_v8  ;;  %2063 = vmatpush1.bf16.msra.mxu1 %v5507_v47  ;;  %v316_v8 = vld [vmem:[%s4723_s10 + $0xf0] sm:$0xff]  ;;  %v5535_v47 = vcombine.low %v292_v4, %v300_v9  ;;  %v325_v9 = vld [vmem:[%s4723_s10 + $0x138] sm:$0xff]  ;;  %7040 = vst [vmem:[#allocation178_spill] sm:$0xff] %v5557_v2 }
 0x125   : > { %2023 = vmatprep.subr.bf16.mxu0 %v5509_v27  ;;  %2064 = vmatprep.subr.bf16.mxu1 %v5512_v13  ;;  %v5541_v21 = vcombine.high %v308_v48, %v316_v8  ;;  %v5544_v13 = vcombine.high %v309_v14, %v317_v33  ;;  %v324_v27 = vld [vmem:[%s4723_s10 + $0x130] sm:$0xff]  ;;  %v333_v4 = vld [vmem:[%s4723_s10 + $0x178] sm:$0xff]  ;;  %v5553_v31 = vcombine.low %v308_v48, %v316_v8 }
 0x126   : > { %7035 = vst [vmem:[#allocation173_spill] sm:$0xff] %v5535_v47  ;;  %v341_v8 = vld [vmem:[%s4723_s10 + $0x1b8] sm:$0xff]  ;;  %v5571_v14 = vcombine.low %v324_v27, %v332_v15  ;;  %v5575_v33 = vcombine.low %v325_v9, %v333_v4 }
 0x127   : > { %7037 = vst [vmem:[#allocation175_spill] sm:$0xff] %v5541_v21  ;;  %7038 = vst [vmem:[#allocation176_spill] sm:$0xff] %v5544_v13  ;;  %v349_v48 = vld [vmem:[%s4723_s10 + $0x1f8] sm:$0xff] }
 0x128   : > { %2024 = vmatpush1.bf16.msra.mxu0 %v5519_v58  ;;  %2065 = vmatpush1.bf16.msra.mxu1 %v5523_v16  ;;  %7039 = vst [vmem:[#allocation177_spill] sm:$0xff] %v5553_v31  ;;  %v5562_v16 = vcombine.high %v325_v9, %v333_v4  ;;  %v348_v58 = vld [vmem:[%s4723_s10 + $0x1f0] sm:$0xff]  ;;  %7043 = vst [vmem:[#allocation181_spill] sm:$0xff] %v5571_v14  ;;  %v5591_v9 = vcombine.low %v341_v8, %v349_v48 }
 0x129   : > { %2075 = vmatprep.subr.bf16.mxu0 %v5525_v19  ;;  %2116 = vmatprep.subr.bf16.mxu1 %v5528_v46  ;;  %v5559_v46 = vcombine.high %v324_v27, %v332_v15  ;;  %v340_v19 = vld [vmem:[%s4723_s10 + $0x1b0] sm:$0xff]  ;;  %7044 = vst [vmem:[#allocation182_spill] sm:$0xff] %v5575_v33  ;;  %v357_v15 = vld [vmem:[%s4723_s10 + $0x238] sm:$0xff] }
 0x12a   : > { %7042 = vst [vmem:[#allocation180_spill] sm:$0xff] %v5562_v16  ;;  %v365_v27 = vld [vmem:[%s4723_s10 + $0x278] sm:$0xff]  ;;  %7048 = vst [vmem:[#allocation186_spill] sm:$0xff] %v5591_v9 }
 0x12b   : > { %2026 = vmatmul.mubr.bf16.vlgmr.msra.gmra.mrb[8].mxu0 %v5010_v39  ;;  %2067 = vmatmul.mubr.bf16.vlgmr.msra.gmra.mrb[8].mxu1 %v5010_v39  ;;  %7041 = vst [vmem:[#allocation179_spill] sm:$0xff] %v5559_v46 }
 0x12c   : > { %2076 = vmatpush1.bf16.msra.mxu0 %v5535_v47  ;;  %2117 = vmatpush1.bf16.msra.mxu1 %v5539_v0  ;;  %v5580_v0 = vcombine.high %v341_v8, %v349_v48  ;;  %v5607_v8 = vcombine.low %v357_v15, %v365_v27  ;;  %v540_v47 = vld [vmem:[%s4723_s10 + $0x7f0] sm:$0xff] }
 0x12d   : > { %2077 = vmatprep.subr.bf16.mxu0 %v5541_v21  ;;  %2118 = vmatprep.subr.bf16.mxu1 %v5544_v13  ;;  %v5577_v13 = vcombine.high %v340_v19, %v348_v58  ;;  %v356_v21 = vld [vmem:[%s4723_s10 + $0x230] sm:$0xff] }
 0x12e   : > { %2107 = vmatprep.mubr.bf16.mxu0 %v4844_v57  ;;  %2148 = vmatprep.mubr.bf16.mxu1 %v4844_v57  ;;  %7046 = vst [vmem:[#allocation184_spill] sm:$0xff] %v5580_v0  ;;  %7052 = vst [vmem:[#allocation190_spill] sm:$0xff] %v5607_v8 }
 0x12f   : > { %7045 = vst [vmem:[#allocation183_spill] sm:$0xff] %v5577_v13 }
 0x130   : > { %2078 = vmatpush1.bf16.msra.mxu0 %v5553_v31  ;;  %2119 = vmatpush1.bf16.msra.mxu1 %v5557_v2  ;;  %v364_v31 = vld [vmem:[%s4723_s10 + $0x270] sm:$0xff]  ;;  %v5587_v2 = vcombine.low %v340_v19, %v348_v58  ;;  %v373_v58 = vld [vmem:[%s4723_s10 + $0x2b8] sm:$0xff] }
 0x131   : > { %2079 = vmatprep.subr.bf16.mxu0 %v5559_v46  ;;  %2120 = vmatprep.subr.bf16.mxu1 %v5562_v16  ;;  %v5593_v4 = vcombine.high %v356_v21, %v364_v31  ;;  %v5596_v16 = vcombine.high %v357_v15, %v365_v27  ;;  %v372_v46 = vld [vmem:[%s4723_s10 + $0x2b0] sm:$0xff]  ;;  %v381_v19 = vld [vmem:[%s4723_s10 + $0x2f8] sm:$0xff] }
 0x132   : > { %7047 = vst [vmem:[#allocation185_spill] sm:$0xff] %v5587_v2  ;;  %v5623_v15 = vcombine.low %v373_v58, %v381_v19 }
 0x133   : > { %7049 = vst [vmem:[#allocation187_spill] sm:$0xff] %v5593_v4  ;;  %7050 = vst [vmem:[#allocation188_spill] sm:$0xff] %v5596_v16 }
 0x134   : > { %2080 = vmatpush1.bf16.msra.mxu0 %v5571_v14  ;;  %2121 = vmatpush1.bf16.msra.mxu1 %v5575_v33  ;;  %v380_v14 = vld [vmem:[%s4723_s10 + $0x2f0] sm:$0xff]  ;;  %v5603_v33 = vcombine.low %v356_v21, %v364_v31  ;;  %v389_v21 = vld [vmem:[%s4723_s10 + $0x338] sm:$0xff]  ;;  %7056 = vst [vmem:[#allocation194_spill] sm:$0xff] %v5623_v15 }
 0x135   : > { %2081 = vmatprep.subr.bf16.mxu0 %v5577_v13  ;;  %2122 = vmatprep.subr.bf16.mxu1 %v5580_v0  ;;  %v5609_v48 = vcombine.high %v372_v46, %v380_v14  ;;  %v5612_v0 = vcombine.high %v373_v58, %v381_v19  ;;  %v388_v13 = vld [vmem:[%s4723_s10 + $0x330] sm:$0xff]  ;;  %v397_v31 = vld [vmem:[%s4723_s10 + $0x378] sm:$0xff] }
 0x136   : > { %7051 = vst [vmem:[#allocation189_spill] sm:$0xff] %v5603_v33  ;;  %v5639_v58 = vcombine.low %v389_v21, %v397_v31 }
 0x137   : > { %7053 = vst [vmem:[#allocation191_spill] sm:$0xff] %v5609_v48  ;;  %7054 = vst [vmem:[#allocation192_spill] sm:$0xff] %v5612_v0 }
 0x138   : > { %2082 = vmatpush1.bf16.msra.mxu0 %v5587_v2  ;;  %2123 = vmatpush1.bf16.msra.mxu1 %v5591_v9  ;;  %v396_v2 = vld [vmem:[%s4723_s10 + $0x370] sm:$0xff]  ;;  %v5619_v9 = vcombine.low %v372_v46, %v380_v14  ;;  %v405_v46 = vld [vmem:[%s4723_s10 + $0x3b8] sm:$0xff]  ;;  %7060 = vst [vmem:[#allocation198_spill] sm:$0xff] %v5639_v58 }
 0x139   : > { %2083 = vmatprep.subr.bf16.mxu0 %v5593_v4  ;;  %2124 = vmatprep.subr.bf16.mxu1 %v5596_v16  ;;  %v5625_v27 = vcombine.high %v388_v13, %v396_v2  ;;  %v5628_v16 = vcombine.high %v389_v21, %v397_v31  ;;  %v404_v4 = vld [vmem:[%s4723_s10 + $0x3b0] sm:$0xff]  ;;  %v413_v14 = vld [vmem:[%s4723_s10 + $0x3f8] sm:$0xff] }
 0x13a   : > { %7055 = vst [vmem:[#allocation193_spill] sm:$0xff] %v5619_v9  ;;  %v5655_v21 = vcombine.low %v405_v46, %v413_v14 }
 0x13b   : > { %7057 = vst [vmem:[#allocation195_spill] sm:$0xff] %v5625_v27  ;;  %7058 = vst [vmem:[#allocation196_spill] sm:$0xff] %v5628_v16 }
 0x13c   : > { %2084 = vmatpush1.bf16.msra.mxu0 %v5603_v33  ;;  %2125 = vmatpush1.bf16.msra.mxu1 %v5607_v8  ;;  %v412_v33 = vld [vmem:[%s4723_s10 + $0x3f0] sm:$0xff]  ;;  %v5635_v8 = vcombine.low %v388_v13, %v396_v2  ;;  %v421_v13 = vld [vmem:[%s4723_s10 + $0x438] sm:$0xff]  ;;  %7064 = vst [vmem:[#allocation202_spill] sm:$0xff] %v5655_v21 }
 0x13d   : > { %2085 = vmatprep.subr.bf16.mxu0 %v5609_v48  ;;  %2126 = vmatprep.subr.bf16.mxu1 %v5612_v0  ;;  %v5641_v19 = vcombine.high %v404_v4, %v412_v33  ;;  %v5644_v0 = vcombine.high %v405_v46, %v413_v14  ;;  %v420_v48 = vld [vmem:[%s4723_s10 + $0x430] sm:$0xff]  ;;  %v429_v2 = vld [vmem:[%s4723_s10 + $0x478] sm:$0xff] }
 0x13e   : > { %7059 = vst [vmem:[#allocation197_spill] sm:$0xff] %v5635_v8  ;;  %v5671_v46 = vcombine.low %v421_v13, %v429_v2 }
 0x13f   : > { %7061 = vst [vmem:[#allocation199_spill] sm:$0xff] %v5641_v19  ;;  %7062 = vst [vmem:[#allocation200_spill] sm:$0xff] %v5644_v0 }
 0x140   : > { %2086 = vmatpush1.bf16.msra.mxu0 %v5619_v9  ;;  %2127 = vmatpush1.bf16.msra.mxu1 %v5623_v15  ;;  %v428_v9 = vld [vmem:[%s4723_s10 + $0x470] sm:$0xff]  ;;  %v5651_v15 = vcombine.low %v404_v4, %v412_v33  ;;  %v437_v33 = vld [vmem:[%s4723_s10 + $0x4b8] sm:$0xff]  ;;  %7068 = vst [vmem:[#allocation206_spill] sm:$0xff] %v5671_v46 }
 0x141   : > { %2087 = vmatprep.subr.bf16.mxu0 %v5625_v27  ;;  %2128 = vmatprep.subr.bf16.mxu1 %v5628_v16  ;;  %v5657_v31 = vcombine.high %v420_v48, %v428_v9  ;;  %v5660_v16 = vcombine.high %v421_v13, %v429_v2  ;;  %v436_v27 = vld [vmem:[%s4723_s10 + $0x4b0] sm:$0xff]  ;;  %v445_v4 = vld [vmem:[%s4723_s10 + $0x4f8] sm:$0xff] }
 0x142   : > { %7063 = vst [vmem:[#allocation201_spill] sm:$0xff] %v5651_v15  ;;  %v5687_v13 = vcombine.low %v437_v33, %v445_v4 }
 0x143   : > { %7065 = vst [vmem:[#allocation203_spill] sm:$0xff] %v5657_v31  ;;  %7066 = vst [vmem:[#allocation204_spill] sm:$0xff] %v5660_v16 }
 0x144   : > { %2088 = vmatpush1.bf16.msra.mxu0 %v5635_v8  ;;  %2129 = vmatpush1.bf16.msra.mxu1 %v5639_v58  ;;  %v444_v8 = vld [vmem:[%s4723_s10 + $0x4f0] sm:$0xff]  ;;  %v5667_v58 = vcombine.low %v420_v48, %v428_v9  ;;  %v453_v9 = vld [vmem:[%s4723_s10 + $0x538] sm:$0xff]  ;;  %7072 = vst [vmem:[#allocation210_spill] sm:$0xff] %v5687_v13 }
 0x145   : > { %2089 = vmatprep.subr.bf16.mxu0 %v5641_v19  ;;  %2130 = vmatprep.subr.bf16.mxu1 %v5644_v0  ;;  %v5673_v14 = vcombine.high %v436_v27, %v444_v8  ;;  %v5676_v0 = vcombine.high %v437_v33, %v445_v4  ;;  %v452_v19 = vld [vmem:[%s4723_s10 + $0x530] sm:$0xff]  ;;  %v461_v48 = vld [vmem:[%s4723_s10 + $0x578] sm:$0xff] }
 0x146   : > { %7067 = vst [vmem:[#allocation205_spill] sm:$0xff] %v5667_v58  ;;  %v5703_v33 = vcombine.low %v453_v9, %v461_v48 }
 0x147   : > { %7069 = vst [vmem:[#allocation207_spill] sm:$0xff] %v5673_v14  ;;  %7070 = vst [vmem:[#allocation208_spill] sm:$0xff] %v5676_v0 }
 0x148   : > { %2090 = vmatpush1.bf16.msra.mxu0 %v5651_v15  ;;  %2131 = vmatpush1.bf16.msra.mxu1 %v5655_v21  ;;  %v460_v15 = vld [vmem:[%s4723_s10 + $0x570] sm:$0xff]  ;;  %v5683_v21 = vcombine.low %v436_v27, %v444_v8  ;;  %v469_v8 = vld [vmem:[%s4723_s10 + $0x5b8] sm:$0xff]  ;;  %7076 = vst [vmem:[#allocation214_spill] sm:$0xff] %v5703_v33 }
 0x149   : > { %2091 = vmatprep.subr.bf16.mxu0 %v5657_v31  ;;  %2132 = vmatprep.subr.bf16.mxu1 %v5660_v16  ;;  %v5689_v2 = vcombine.high %v452_v19, %v460_v15  ;;  %v5692_v16 = vcombine.high %v453_v9, %v461_v48  ;;  %v468_v31 = vld [vmem:[%s4723_s10 + $0x5b0] sm:$0xff]  ;;  %v477_v27 = vld [vmem:[%s4723_s10 + $0x5f8] sm:$0xff] }
 0x14a   : > { %7071 = vst [vmem:[#allocation209_spill] sm:$0xff] %v5683_v21  ;;  %v5719_v9 = vcombine.low %v469_v8, %v477_v27 }
 0x14b   : > { %7073 = vst [vmem:[#allocation211_spill] sm:$0xff] %v5689_v2  ;;  %7074 = vst [vmem:[#allocation212_spill] sm:$0xff] %v5692_v16 }
 0x14c   : > { %2092 = vmatpush1.bf16.msra.mxu0 %v5667_v58  ;;  %2133 = vmatpush1.bf16.msra.mxu1 %v5671_v46  ;;  %v476_v58 = vld [vmem:[%s4723_s10 + $0x5f0] sm:$0xff]  ;;  %v5699_v46 = vcombine.low %v452_v19, %v460_v15  ;;  %v485_v15 = vld [vmem:[%s4723_s10 + $0x638] sm:$0xff]  ;;  %7080 = vst [vmem:[#allocation218_spill] sm:$0xff] %v5719_v9 }
 0x14d   : > { %2093 = vmatprep.subr.bf16.mxu0 %v5673_v14  ;;  %2134 = vmatprep.subr.bf16.mxu1 %v5676_v0  ;;  %v5705_v4 = vcombine.high %v468_v31, %v476_v58  ;;  %v5708_v0 = vcombine.high %v469_v8, %v477_v27  ;;  %v484_v14 = vld [vmem:[%s4723_s10 + $0x630] sm:$0xff]  ;;  %v493_v19 = vld [vmem:[%s4723_s10 + $0x678] sm:$0xff] }
 0x14e   : > { %7075 = vst [vmem:[#allocation213_spill] sm:$0xff] %v5699_v46  ;;  %v5735_v8 = vcombine.low %v485_v15, %v493_v19 }
 0x14f   : > { %7077 = vst [vmem:[#allocation215_spill] sm:$0xff] %v5705_v4  ;;  %7078 = vst [vmem:[#allocation216_spill] sm:$0xff] %v5708_v0 }
 0x150   : > { %2094 = vmatpush1.bf16.msra.mxu0 %v5683_v21  ;;  %2135 = vmatpush1.bf16.msra.mxu1 %v5687_v13  ;;  %v492_v21 = vld [vmem:[%s4723_s10 + $0x670] sm:$0xff]  ;;  %v5715_v13 = vcombine.low %v468_v31, %v476_v58  ;;  %v501_v58 = vld [vmem:[%s4723_s10 + $0x6b8] sm:$0xff]  ;;  %7084 = vst [vmem:[#allocation222_spill] sm:$0xff] %v5735_v8 }
 0x151   : > { %2095 = vmatprep.subr.bf16.mxu0 %v5689_v2  ;;  %2136 = vmatprep.subr.bf16.mxu1 %v5692_v16  ;;  %v5721_v48 = vcombine.high %v484_v14, %v492_v21  ;;  %v5724_v16 = vcombine.high %v485_v15, %v493_v19  ;;  %v500_v2 = vld [vmem:[%s4723_s10 + $0x6b0] sm:$0xff]  ;;  %v509_v31 = vld [vmem:[%s4723_s10 + $0x6f8] sm:$0xff] }
 0x152   : > { %7079 = vst [vmem:[#allocation217_spill] sm:$0xff] %v5715_v13  ;;  %v5751_v15 = vcombine.low %v501_v58, %v509_v31 }
 0x153   : > { %7081 = vst [vmem:[#allocation219_spill] sm:$0xff] %v5721_v48  ;;  %7082 = vst [vmem:[#allocation220_spill] sm:$0xff] %v5724_v16 }
 0x154   : > { %2096 = vmatpush1.bf16.msra.mxu0 %v5699_v46  ;;  %2137 = vmatpush1.bf16.msra.mxu1 %v5703_v33  ;;  %v508_v46 = vld [vmem:[%s4723_s10 + $0x6f0] sm:$0xff]  ;;  %v5731_v33 = vcombine.low %v484_v14, %v492_v21  ;;  %v517_v21 = vld [vmem:[%s4723_s10 + $0x738] sm:$0xff]  ;;  %7088 = vst [vmem:[#allocation226_spill] sm:$0xff] %v5751_v15 }
 0x155   : > { %2097 = vmatprep.subr.bf16.mxu0 %v5705_v4  ;;  %2138 = vmatprep.subr.bf16.mxu1 %v5708_v0  ;;  %v5737_v27 = vcombine.high %v500_v2, %v508_v46  ;;  %v5740_v0 = vcombine.high %v501_v58, %v509_v31  ;;  %v516_v4 = vld [vmem:[%s4723_s10 + $0x730] sm:$0xff]  ;;  %v525_v14 = vld [vmem:[%s4723_s10 + $0x778] sm:$0xff]  ;;  %v5772_v31 = vcombine.high %v533_v35, %v541_v55 }
 0x156   : > { %7083 = vst [vmem:[#allocation221_spill] sm:$0xff] %v5731_v33 }
 0x157   : > { %7085 = vst [vmem:[#allocation223_spill] sm:$0xff] %v5737_v27  ;;  %7086 = vst [vmem:[#allocation224_spill] sm:$0xff] %v5740_v0 }
 0x158   : > { %2098 = vmatpush1.bf16.msra.mxu0 %v5715_v13  ;;  %2139 = vmatpush1.bf16.msra.mxu1 %v5719_v9  ;;  %v524_v13 = vld [vmem:[%s4723_s10 + $0x770] sm:$0xff]  ;;  %v5747_v9 = vcombine.low %v500_v2, %v508_v46  ;;  %v5767_v2 = vcombine.low %v517_v21, %v525_v14  ;;  %7094 = vst [vmem:[#allocation232_spill] sm:$0xff] %v5772_v31 }
 0x159   : > { %2099 = vmatprep.subr.bf16.mxu0 %v5721_v48  ;;  %2140 = vmatprep.subr.bf16.mxu1 %v5724_v16  ;;  %v5753_v19 = vcombine.high %v516_v4, %v524_v13  ;;  %v5756_v16 = vcombine.high %v517_v21, %v525_v14  ;;  %v532_v48 = vld [vmem:[%s4723_s10 + $0x7b0] sm:$0xff]  ;;  %v5763_v46 = vcombine.low %v516_v4, %v524_v13 }
 0x15a   : > { %7087 = vst [vmem:[#allocation225_spill] sm:$0xff] %v5747_v9  ;;  %7092 = vst [vmem:[#allocation230_spill] sm:$0xff] %v5767_v2  ;;  %v5769_v58 = vcombine.high %v532_v48, %v540_v47  ;;  %v5779_v13 = vcombine.low %v533_v35, %v541_v55 }
 0x15b   : > { %7089 = vst [vmem:[#allocation227_spill] sm:$0xff] %v5753_v19  ;;  %7090 = vst [vmem:[#allocation228_spill] sm:$0xff] %v5756_v16 }
 0x15c   : > { %2100 = vmatpush1.bf16.msra.mxu0 %v5731_v33  ;;  %2141 = vmatpush1.bf16.msra.mxu1 %v5735_v8  ;;  %7091 = vst [vmem:[#allocation229_spill] sm:$0xff] %v5763_v46  ;;  %7093 = vst [vmem:[#allocation231_spill] sm:$0xff] %v5769_v58 }
 0x15d   : > { %2101 = vmatprep.subr.bf16.mxu0 %v5737_v27  ;;  %2142 = vmatprep.subr.bf16.mxu1 %v5740_v0  ;;  %v5775_v0 = vcombine.low %v532_v48, %v540_v47  ;;  %7096 = vst [vmem:[#allocation234_spill] sm:$0xff] %v5779_v13 }
 0x15f   : > { %7095 = vst [vmem:[#allocation233_spill] sm:$0xff] %v5775_v0 }
 0x160   : > { %2102 = vmatpush1.bf16.msra.mxu0 %v5747_v9  ;;  %2143 = vmatpush1.bf16.msra.mxu1 %v5751_v15 }
 0x161   : > { %2103 = vmatprep.subr.bf16.mxu0 %v5753_v19  ;;  %2144 = vmatprep.subr.bf16.mxu1 %v5756_v16 }
 0x164   : > { %2104 = vmatpush1.bf16.msra.mxu0 %v5763_v46  ;;  %2145 = vmatpush1.bf16.msra.mxu1 %v5767_v2 }
 0x165   : > { %2105 = vmatprep.subr.bf16.mxu0 %v5769_v58  ;;  %2146 = vmatprep.subr.bf16.mxu1 %v5772_v31 }
 0x168   : > { %2106 = vmatpush1.bf16.msra.mxu0 %v5775_v0  ;;  %2147 = vmatpush1.bf16.msra.mxu1 %v5779_v13 }
 0x16b   : > { %2108 = vmatmul.mubr.bf16.vlgmr.msra.gmra.mrb[12].mxu0 %v5010_v39  ;;  %2149 = vmatmul.mubr.bf16.vlgmr.msra.gmra.mrb[12].mxu1 %v5010_v39 }
 0x17e   : > { %v1863_v4 = vpop.f32.mrb[0].mxu0  ;;  %v1904_v21 = vpop.f32.mrb[0].mxu1 }
 0x17f   : > { %v1865_v47 = vpop.f32.mrb[1].mxu0  ;;  %v1906_v48 = vpop.f32.mrb[1].mxu1  ;;  %v2157_v9 = vmul.f32 %v1863_v4, %v1863_v4 }
 0x180   : > { %v1867_v14 = vpop.f32.mrb[2].mxu0  ;;  %v1908_v2 = vpop.f32.mrb[2].mxu1 }
 0x181   : > { %v1868_v16 = vpop.f32.mrb[3].mxu0  ;;  %v1909_v15 = vpop.f32.mrb[3].mxu1  ;;  %v2159_v2 = vmul.f32 %v1904_v21, %v1904_v21 }
 0x182   : > { %v2158_v16 = vmul.f32 %v1865_v47, %v1865_v47 }
 0x1be   : > { %v5786_v55 = vpop.f32.mrb[4].mxu0  ;;  %v5788_v35 = vpop.f32.mrb[4].mxu1 }
 0x1bf   : > { %v5790_v31 = vpop.f32.mrb[5].mxu0  ;;  %v5792_v8 = vpop.f32.mrb[5].mxu1 }
 0x1c0   : > { %v1949_v13 = vpop.f32.mrb[6].mxu0  ;;  %v1990_v0 = vpop.f32.mrb[6].mxu1 }
 0x1c1   : > { %v1950_v58 = vpop.f32.mrb[7].mxu0  ;;  %v1991_v46 = vpop.f32.mrb[7].mxu1 }
 0x1c2   : > { %v2160_v46 = vmul.f32 %v1906_v48, %v1906_v48 }
 0x1fe   : > { %v2027_v19 = vpop.f32.mrb[8].mxu0  ;;  %v2068_v33 = vpop.f32.mrb[8].mxu1 }
 0x1ff   : > { %v2165_v27 = vmul.f32 %v2027_v19, %v2027_v19  ;;  %v2029_v14 = vpop.f32.mrb[9].mxu0  ;;  %v2167_v15 = vmul.f32 %v2068_v33, %v2068_v33  ;;  %v2070_v40 = vpop.f32.mrb[9].mxu1 }
 0x200   : > { %v2166_v29 = vmul.f32 %v2029_v14, %v2029_v14  ;;  %v2031_v43 = vpop.f32.mrb[10].mxu0  ;;  %v2072_v37 = vpop.f32.mrb[10].mxu1  ;;  %v2168_v13 = vmul.f32 %v2070_v40, %v2070_v40 }
 0x201   : > { %v2173_v38 = vadd.f32 %v2165_v27, %v2157_v9  ;;  %v2032_v24 = vpop.f32.mrb[11].mxu0  ;;  %v2175_v51 = vadd.f32 %v2167_v15, %v2159_v2  ;;  %v2073_v0 = vpop.f32.mrb[11].mxu1 }
 0x202   : > { %v2174_v22 = vadd.f32 %v2166_v29, %v2158_v16  ;;  %v2176_v19 = vadd.f32 %v2168_v13, %v2160_v46 }
 0x203   : > { %4266 = vrsqrt.f32 %v2173_v38  ;;  %vm2183_vm0 = vcmp.eq.f32.partialorder %v2173_v38, inf  ;;  %vm2185_vm1 = vcmp.eq.f32.partialorder %v2173_v38, 0.0  ;;  %v2186_v43 = vand.u32 2147483648, %v2173_v38 }
 0x204   : > { %4268 = vrsqrt.f32 %v2175_v51  ;;  %vm2197_vm2 = vcmp.eq.f32.partialorder %v2175_v51, inf  ;;  %vm2199_vm3 = vcmp.eq.f32.partialorder %v2175_v51, 0.0  ;;  %v2200_v37 = vand.u32 2147483648, %v2175_v51 }
 0x205   : > { %4270 = vrsqrt.f32 %v2174_v22  ;;  %vm2190_vm4 = vcmp.eq.f32.partialorder %v2174_v22, inf  ;;  %v2193_v47 = vand.u32 2147483648, %v2174_v22  ;;  %vm2192_vm5 = vcmp.eq.f32.partialorder %v2174_v22, 0.0 }
 0x206   : > { %4272 = vrsqrt.f32 %v2176_v19  ;;  %vm2204_vm6 = vcmp.eq.f32.partialorder %v2176_v19, inf  ;;  %vm2206_vm7 = vcmp.eq.f32.partialorder %v2176_v19, 0.0 }
 0x20d   : > { %v4267_v58 = vpop.eup %4266 }
 0x20e   : > { %v4269_v4 = vpop.eup %4268  ;;  %v2182_v21 = vmul.f32 %v4267_v58, %v2173_v38 }
 0x20f   : > { %v4271_v33 = vpop.eup %4270  ;;  %v2196_v9 = vmul.f32 %v4269_v4, %v2175_v51 }
 0x210   : > { %v2184_v24 = vsel %vm2183_vm0, %v2173_v38, %v2182_v21  ;;  %v2189_v40 = vmul.f32 %v4271_v33, %v2174_v22  ;;  %v4273_v48 = vpop.eup %4272  ;;  %v2207_v38 = vand.u32 2147483648, %v2176_v19  ;;  %v2161_v33 = vmul.f32 %v5786_v55, %v5786_v55 }
 0x211   : > { %v2187_v29 = vsel %vm2185_vm1, %v2186_v43, %v2184_v24  ;;  %v2198_v27 = vsel %vm2197_vm2, %v2175_v51, %v2196_v9  ;;  %v2203_v0 = vmul.f32 %v4273_v48, %v2176_v19  ;;  %v2163_v24 = vmul.f32 %v5788_v35, %v5788_v35 }
 0x212   : > { %v5794_v14 = vpack.c.bf16 %v2187_v29, %v2187_v29  ;;  %v2201_v2 = vsel %vm2199_vm3, %v2200_v37, %v2198_v27  ;;  %v2191_v16 = vsel %vm2190_vm4, %v2174_v22, %v2189_v40  ;;  %v2162_v37 = vmul.f32 %v5790_v31, %v5790_v31 }
 0x213   : > { %v5796_v15 = vpack.c.bf16 %v2201_v2, %v2201_v2  ;;  %v2194_v13 = vsel %vm2192_vm5, %v2193_v47, %v2191_v16  ;;  %v2205_v58 = vsel %vm2204_vm6, %v2176_v19, %v2203_v0 }
 0x214   : > { %v5798_v46 = vpack.c.bf16 %v2194_v13, %v2194_v13  ;;  %v2208_v4 = vsel %vm2206_vm7, %v2207_v38, %v2205_v58  ;;  %v2164_v38 = vmul.f32 %v5792_v8, %v5792_v8 }
 0x215   : > { %v5800_v51 = vpack.c.bf16 %v2208_v4, %v2208_v4  ;;  %2257 = vst [vmem:[#allocation2 + $0x10] sm:$0xf] (!%p7097_p3), %v5796_v15 }
 0x217   : > { %2258 = vst [vmem:[#allocation2 + $0x18] sm:$0xf] (!%p7097_p3), %v5800_v51 }
 0x23e   : > { %v2109_v21 = vpop.f32.mrb[12].mxu0  ;;  %v2150_v9 = vpop.f32.mrb[12].mxu1 }
 0x23f   : > { %v2169_v43 = vmul.f32 %v2109_v21, %v2109_v21  ;;  %v2111_v22 = vpop.f32.mrb[13].mxu0  ;;  %v2171_v40 = vmul.f32 %v2150_v9, %v2150_v9  ;;  %v2152_v27 = vpop.f32.mrb[13].mxu1 }
 0x240   : > { %v2170_v29 = vmul.f32 %v2111_v22, %v2111_v22  ;;  %v2113_v19 = vpop.f32.mrb[14].mxu0  ;;  %v2154_v48 = vpop.f32.mrb[14].mxu1  ;;  %v2172_v0 = vmul.f32 %v2152_v27, %v2152_v27 }
 0x241   : > { %v2177_v47 = vadd.f32 %v2169_v43, %v2161_v33  ;;  %v2114_v2 = vpop.f32.mrb[15].mxu0  ;;  %v2179_v16 = vadd.f32 %v2171_v40, %v2163_v24  ;;  %v2155_v55 = vpop.f32.mrb[15].mxu1 }
 0x242   : > { %v2178_v13 = vadd.f32 %v2170_v29, %v2162_v37  ;;  %v2180_v35 = vadd.f32 %v2172_v0, %v2164_v38 }
 0x243   : > { %4274 = vrsqrt.f32 %v2177_v47  ;;  %vm2211_vm8 = vcmp.eq.f32.partialorder %v2177_v47, inf  ;;  %vm2213_vm9 = vcmp.eq.f32.partialorder %v2177_v47, 0.0  ;;  %v2214_v33 = vand.u32 2147483648, %v2177_v47 }
 0x244   : > { %4276 = vrsqrt.f32 %v2179_v16  ;;  %vm2225_vm10 = vcmp.eq.f32.partialorder %v2179_v16, inf  ;;  %vm2227_vm11 = vcmp.eq.f32.partialorder %v2179_v16, 0.0  ;;  %v2228_v22 = vand.u32 2147483648, %v2179_v16 }
 0x245   : > { %4278 = vrsqrt.f32 %v2178_v13  ;;  %vm2218_vm12 = vcmp.eq.f32.partialorder %v2178_v13, inf  ;;  %v2221_v8 = vand.u32 2147483648, %v2178_v13  ;;  %vm2220_vm13 = vcmp.eq.f32.partialorder %v2178_v13, 0.0 }
 0x246   : > { %4280 = vrsqrt.f32 %v2180_v35  ;;  %vm2232_vm14 = vcmp.eq.f32.partialorder %v2180_v35, inf  ;;  %vm2234_vm15 = vcmp.eq.f32.partialorder %v2180_v35, 0.0 }
 0x24d   : > { %v4275_v31 = vpop.eup %4274 }
 0x24e   : > { %v4277_v58 = vpop.eup %4276  ;;  %v2210_v4 = vmul.f32 %v4275_v31, %v2177_v47 }
 0x24f   : > { %v4279_v21 = vpop.eup %4278  ;;  %v2224_v43 = vmul.f32 %v4277_v58, %v2179_v16  ;;  %2248 = sbr.rel (%p7097_p3) target bundleno = 601 (0x259), region = 60 }
 0x250   : > { %v2212_v9 = vsel %vm2211_vm8, %v2177_v47, %v2210_v4  ;;  %v2217_v24 = vmul.f32 %v4279_v21, %v2178_v13  ;;  %v4281_v29 = vpop.eup %4280  ;;  %v2235_v47 = vand.u32 2147483648, %v2180_v35  ;;  %v2252_v21 = vrot.slane (!%p7097_p3), %v5798_v46, 4 }
 0x251   : > { %v2215_v37 = vsel %vm2213_vm9, %v2214_v33, %v2212_v9  ;;  %v2226_v40 = vsel %vm2225_vm10, %v2179_v16, %v2224_v43  ;;  %v2231_v55 = vmul.f32 %v4281_v29, %v2180_v35  ;;  %v2251_v16 = vrot.slane (!%p7097_p3), %v5794_v14, 4 }
 0x252   : > { %v5810_v27 = vpack.c.bf16 %v2215_v37, %v2215_v37  ;;  %v2229_v19 = vsel %vm2227_vm11, %v2228_v22, %v2226_v40  ;;  %v2219_v48 = vsel %vm2218_vm12, %v2178_v13, %v2217_v24  ;;  %2256 = vst [vmem:[#allocation2 + $0x8] sm:$0xf0] (!%p7097_p3), %v2252_v21 }
 0x253   : > { %v2243_v2 = vpack.c.bf16 %v2229_v19, %v2229_v19  ;;  %v2222_v0 = vsel %vm2220_vm13, %v2221_v8, %v2219_v48  ;;  %v2233_v31 = vsel %vm2232_vm14, %v2180_v35, %v2231_v55  ;;  %2255 = vst [vmem:[#allocation2] sm:$0xf0] (!%p7097_p3), %v2251_v16  ;;  %v4524_v35 = vmov (!%p7097_p3), 0  }
 0x254   : > { %v5812_v38 = vpack.c.bf16 %v2222_v0, %v2222_v0  ;;  %v2236_v58 = vsel %vm2234_vm15, %v2235_v47, %v2233_v31  ;;  %v2261_v13 = vrot.slane (!%p7097_p3), %v5810_v27, 4  ;;  %2271 = vst [vmem:[#allocation2 + $0xc0] sm:$0xf0] (!%p7097_p3), %v4524_v35  ;;  %2272 = vst [vmem:[#allocation2 + $0xc8] sm:$0xf0] (!%p7097_p3), %v4524_v35 }
 0x255   : > { %v2244_v4 = vpack.c.bf16 %v2236_v58, %v2236_v58  ;;  %2267 = vst [vmem:[#allocation2 + $0x20] sm:$0xf] (!%p7097_p3), %v2243_v2 }
 0x256   : > { %v2262_v33 = vrot.slane %v5812_v38, 4  ;;  %2265 = vst [vmem:[#allocation2 + $0x10] sm:$0xf0] %v2261_v13 }
 0x257   : > { %2268 = vst [vmem:[#allocation2 + $0x28] sm:$0xf] %v2244_v4 }
 0x258   : > { %2266 = vst [vmem:[#allocation2 + $0x18] sm:$0xf0] %v2262_v33 }
 0x259 PF: > { %p4034_p4 = scmp.ne.s32.totalorder %s4581_s25, 1 }
 0x25a   : > { %2324 = vmatprep.subr.bf16.mxu1 (!%p4034_p4), %v4736_v3  ;;  %2430 = vmatprep.subr.bf16.mxu0 (!%p4034_p4), %v5001_v1  ;;  %vm2309_vm0 = vcmask (!%p4034_p4), 1043456   ;;  %2286 = vst [vmem:[#allocation2 + $0x38] sm:$0xf] (!%p4034_p4), %v5800_v51  ;;  %2285 = vst [vmem:[#allocation2 + $0x30] sm:$0xf] (!%p4034_p4), %v5796_v15  ;;  %v7117_v1 = vld [vmem:[#allocation95_spill] sm:$0xff] (!%p4034_p4) }
 0x25b   : > { %2276 = sbr.rel (%p4034_p4) target bundleno = 1768 (0x6e8), region = 64  ;;  %2296 = vst [vmem:[#allocation2 + $0x48] sm:$0xf] (!%p4034_p4), %v2244_v4  ;;  %2295 = vst [vmem:[#allocation2 + $0x40] sm:$0xf] (!%p4034_p4), %v2243_v2  ;;  %2325 = vmatpush1.bf16.msra.mxu1 (!%p4034_p4), %v4739_v5  ;;  %2431 = vmatpush1.bf16.msra.mxu0 (!%p4034_p4), %v5015_v30  ;;  %v7098_v5 = vld [vmem:[#allocation30_spill] sm:$0xff] (!%p4034_p4) }
 0x25c   : > { %v2298_v43 = vld [vmem:[#allocation2 + $0x8] sm:$0xf0] (!%p4034_p4)  ;;  %2326 = vmatprep.subr.bf16.mxu1 (!%p4034_p4), %v4747_v10  ;;  %2432 = vmatprep.subr.bf16.mxu0 (!%p4034_p4), %v5021_v49  ;;  %v7099_v10 = vld [vmem:[#allocation77_spill] sm:$0xff] (!%p4034_p4)  ;;  %v7116_v49 = vld [vmem:[#allocation48_spill] sm:$0xff] (!%p4034_p4) }
 0x25d   : > { %v2313_v57 = vrot.slane (!%p4034_p4), %v2298_v43, 4  ;;  %v7118_v30 = vld [vmem:[#allocation50_spill] sm:$0xff] (!%p4034_p4)  ;;  %v7127_v22 = vld [vmem:[#allocation105_spill] sm:$0xff] (!%p4034_p4)  ;;  %v7129_v40 = vld [vmem:[#allocation107_spill] sm:$0xff] (!%p4034_p4) }
 0x25e   : > { %v7126_v51 = vld [vmem:[#allocation58_spill] sm:$0xff] (!%p4034_p4)  ;;  %v7128_v37 = vld [vmem:[#allocation13_spill] sm:$0xff] (!%p4034_p4)  ;;  %v7132_v0 = vld [vmem:[#allocation15_spill] sm:$0xff] (!%p4034_p4) }
 0x25f   : > { %v5827_v9 = vld [vmem:[#allocation2 + $0x18] sm:$0xff] (!%p4034_p4)  ;;  %2327 = vmatpush1.bf16.msra.mxu1 (!%p4034_p4), %v4760_v18  ;;  %2433 = vmatpush1.bf16.msra.mxu0 (!%p4034_p4), %v5033_v56  ;;  %v7100_v18 = vld [vmem:[#allocation32_spill] sm:$0xff] (!%p4034_p4)  ;;  %v2301_v8 = vld [vmem:[#allocation2 + $0x20] sm:$0xf] (!%p4034_p4) }
 0x260   : > { %v2314_v39 = vrot.slane (!%p4034_p4), %v5827_v9, 4  ;;  %2328 = vmatprep.subr.bf16.mxu1 (!%p4034_p4), %v4766_v20  ;;  %2434 = vmatprep.subr.bf16.mxu0 (!%p4034_p4), %v5039_v17  ;;  %v7101_v20 = vld [vmem:[#allocation79_spill] sm:$0xff] (!%p4034_p4)  ;;  %v7115_v17 = vld [vmem:[#allocation93_spill] sm:$0xff] (!%p4034_p4)  ;;  %v7130_v19 = vld [vmem:[#allocation14_spill] sm:$0xff] (!%p4034_p4)  ;;  %v2316_v2 = vrot.slane (!%p4034_p4), %v2301_v8, 4 }
 0x261   : > { %v7119_v56 = vld [vmem:[#allocation97_spill] sm:$0xff] (!%p4034_p4)  ;;  %v7133_v55 = vld [vmem:[#allocation111_spill] sm:$0xff] (!%p4034_p4)  ;;  %v7134_v47 = vld [vmem:[#allocation16_spill] sm:$0xff] (!%p4034_p4) }
 0x262   : > { %v5839_v3 = vsel %vm2309_vm0, %v2313_v57, %v2314_v39  ;;  %v7131_v48 = vld [vmem:[#allocation109_spill] sm:$0xff]  ;;  %v7137_v16 = vld [vmem:[#allocation115_spill] sm:$0xff]  ;;  %v7138_v21 = vld [vmem:[#allocation18_spill] sm:$0xff] }
 0x263   : > { %2356 = vmatprep.mubr.bf16.mxu1 %v5839_v3  ;;  %2462 = vmatprep.mubr.bf16.mxu0 %v5839_v3  ;;  %v7135_v31 = vld [vmem:[#allocation113_spill] sm:$0xff]  ;;  %v7140_v33 = vld [vmem:[#allocation19_spill] sm:$0xff]  ;;  %v7142_v43 = vld [vmem:[#allocation20_spill] sm:$0xff] }
 0x264   : > { %2329 = vmatpush1.bf16.msra.mxu1 %v4776_v26  ;;  %2435 = vmatpush1.bf16.msra.mxu0 %v5051_v32  ;;  %v7102_v26 = vld [vmem:[#allocation34_spill] sm:$0xff]  ;;  %v7121_v32 = vld [vmem:[#allocation99_spill] sm:$0xff]  ;;  %v7136_v4 = vld [vmem:[#allocation17_spill] sm:$0xff] }
 0x265   : > { %2330 = vmatprep.subr.bf16.mxu1 %v4782_v28  ;;  %2436 = vmatprep.subr.bf16.mxu0 %v5057_v63  ;;  %v7103_v28 = vld [vmem:[#allocation81_spill] sm:$0xff]  ;;  %v7112_v63 = vld [vmem:[#allocation44_spill] sm:$0xff]  ;;  %v7141_v35 = vld [vmem:[#allocation119_spill] sm:$0xff] }
 0x266   : > { %v7139_v13 = vld [vmem:[#allocation117_spill] sm:$0xff]  ;;  %v7182_v8 = vld [vmem:[#allocation51_spill] sm:$0xff] }
 0x267   : > { %v7143_v57 = vld [vmem:[#allocation121_spill] sm:$0xff] }
 0x268   : > { %2331 = vmatpush1.bf16.msra.mxu1 %v4792_v34  ;;  %2437 = vmatpush1.bf16.msra.mxu0 %v5067_v59  ;;  %v7104_v34 = vld [vmem:[#allocation36_spill] sm:$0xff] }
 0x269   : > { %2332 = vmatprep.subr.bf16.mxu1 %v4798_v36  ;;  %2438 = vmatprep.subr.bf16.mxu0 %v5073_v25  ;;  %v7105_v36 = vld [vmem:[#allocation83_spill] sm:$0xff]  ;;  %v7120_v59 = vld [vmem:[#allocation52_spill] sm:$0xff]  ;;  %v7122_v25 = vld [vmem:[#allocation54_spill] sm:$0xff] }
 0x26c   : > { %2333 = vmatpush1.bf16.msra.mxu1 %v4808_v42  ;;  %2439 = vmatpush1.bf16.msra.mxu0 %v5083_v41  ;;  %v7106_v42 = vld [vmem:[#allocation38_spill] sm:$0xff] }
 0x26d   : > { %2334 = vmatprep.subr.bf16.mxu1 %v4814_v44  ;;  %2440 = vmatprep.subr.bf16.mxu0 %v5089_v12  ;;  %v7107_v44 = vld [vmem:[#allocation85_spill] sm:$0xff]  ;;  %v2297_v41 = vld [vmem:[#allocation2] sm:$0xf0] }
 0x26e   : > { %v2310_v12 = vrot.slane %v2297_v41, 4  ;;  %v7169_v41 = vld [vmem:[#allocation147_spill] sm:$0xff] }
 0x270   : > { %2335 = vmatpush1.bf16.msra.mxu1 %v4824_v50  ;;  %2441 = vmatpush1.bf16.msra.mxu0 %v5099_v23  ;;  %v7108_v50 = vld [vmem:[#allocation40_spill] sm:$0xff] }
 0x271   : > { %2336 = vmatprep.subr.bf16.mxu1 %v4830_v52  ;;  %2442 = vmatprep.subr.bf16.mxu0 %v5105_v53  ;;  %v7109_v52 = vld [vmem:[#allocation87_spill] sm:$0xff]  ;;  %v5895_v23 = vld [vmem:[#allocation2 + $0x10] sm:$0xff] }
 0x272   : > { %v2302_v53 = vld [vmem:[#allocation2 + $0x28] sm:$0xf] }
 0x273   : > { %v2318_v15 = vrot.slane %v2302_v53, 4  ;;  %v7174_v53 = vld [vmem:[#allocation43_spill] sm:$0xff] }
 0x274   : > { %2337 = vmatpush1.bf16.msra.mxu1 %v4849_v60  ;;  %2443 = vmatpush1.bf16.msra.mxu0 %v5115_v7  ;;  %v7110_v60 = vld [vmem:[#allocation42_spill] sm:$0xff]  ;;  %v7123_v7 = vld [vmem:[#allocation101_spill] sm:$0xff] }
 0x275   : > { %2338 = vmatprep.subr.bf16.mxu1 %v4856_v62  ;;  %2444 = vmatprep.subr.bf16.mxu0 %v5121_v54  ;;  %v7111_v62 = vld [vmem:[#allocation89_spill] sm:$0xff]  ;;  %v7124_v54 = vld [vmem:[#allocation56_spill] sm:$0xff]  ;;  %v5914_v29 = vsel %vm2309_vm0, %v2314_v39, %v2318_v15  ;;  %v7177_v15 = vld [vmem:[#allocation155_spill] sm:$0xff] }
 0x276   : > { %v7144_v39 = vld [vmem:[#allocation21_spill] sm:$0xff] }
 0x278   : > { %2339 = vmatpush1.bf16.msra.mxu1 %v4867_v6  ;;  %2445 = vmatpush1.bf16.msra.mxu0 %v5131_v61  ;;  %v7113_v6 = vld [vmem:[#allocation91_spill] sm:$0xff]  ;;  %v2311_v61 = vrot.slane %v5895_v23, 4 }
 0x279   : > { %2340 = vmatprep.subr.bf16.mxu1 %v4873_v11  ;;  %2446 = vmatprep.subr.bf16.mxu0 %v5137_v45  ;;  %v7114_v11 = vld [vmem:[#allocation46_spill] sm:$0xff]  ;;  %v7125_v45 = vld [vmem:[#allocation103_spill] sm:$0xff] }
 0x27a   : > { %v5905_v24 = vsel %vm2309_vm0, %v2310_v12, %v2311_v61  ;;  %v5925_v58 = vsel %vm2309_vm0, %v2311_v61, %v2316_v2  ;;  %v7172_v12 = vld [vmem:[#allocation41_spill] sm:$0xff]  ;;  %v7173_v61 = vld [vmem:[#allocation151_spill] sm:$0xff] }
 0x27b   : > { %v7185_v2 = vld [vmem:[#allocation163_spill] sm:$0xff] }
 0x27c   : > { %2341 = vmatpush1.bf16.msra.mxu1 %v7098_v5  ;;  %2447 = vmatpush1.bf16.msra.mxu0 %v7099_v10  ;;  %v7145_v5 = vld [vmem:[#allocation123_spill] sm:$0xff]  ;;  %v7146_v10 = vld [vmem:[#allocation22_spill] sm:$0xff] }
 0x27d   : > { %2342 = vmatprep.subr.bf16.mxu1 %v7100_v18  ;;  %2448 = vmatprep.subr.bf16.mxu0 %v7101_v20  ;;  %v7147_v18 = vld [vmem:[#allocation125_spill] sm:$0xff]  ;;  %v7148_v20 = vld [vmem:[#allocation23_spill] sm:$0xff] }
 0x280   : > { %2343 = vmatpush1.bf16.msra.mxu1 %v7102_v26  ;;  %2449 = vmatpush1.bf16.msra.mxu0 %v7103_v28  ;;  %v7149_v26 = vld [vmem:[#allocation127_spill] sm:$0xff]  ;;  %v7150_v28 = vld [vmem:[#allocation24_spill] sm:$0xff] }
 0x281   : > { %2344 = vmatprep.subr.bf16.mxu1 %v7104_v34  ;;  %2450 = vmatprep.subr.bf16.mxu0 %v7105_v36  ;;  %v7151_v34 = vld [vmem:[#allocation129_spill] sm:$0xff] }
 0x282   : > { %v7152_v36 = vld [vmem:[#allocation25_spill] sm:$0xff] }
 0x284   : > { %2345 = vmatpush1.bf16.msra.mxu1 %v7106_v42  ;;  %2451 = vmatpush1.bf16.msra.mxu0 %v7107_v44  ;;  %v7153_v42 = vld [vmem:[#allocation131_spill] sm:$0xff]  ;;  %v7154_v44 = vld [vmem:[#allocation26_spill] sm:$0xff] }
 0x285   : > { %2346 = vmatprep.subr.bf16.mxu1 %v7108_v50  ;;  %2452 = vmatprep.subr.bf16.mxu0 %v7109_v52  ;;  %v7155_v50 = vld [vmem:[#allocation133_spill] sm:$0xff]  ;;  %v7156_v52 = vld [vmem:[#allocation27_spill] sm:$0xff] }
 0x288   : > { %2347 = vmatpush1.bf16.msra.mxu1 %v7110_v60  ;;  %2453 = vmatpush1.bf16.msra.mxu0 %v7111_v62  ;;  %v7157_v60 = vld [vmem:[#allocation135_spill] sm:$0xff]  ;;  %v7158_v62 = vld [vmem:[#allocation28_spill] sm:$0xff] }
 0x289   : > { %2348 = vmatprep.subr.bf16.mxu1 %v7112_v63  ;;  %2454 = vmatprep.subr.bf16.mxu0 %v7113_v6  ;;  %v7159_v63 = vld [vmem:[#allocation137_spill] sm:$0xff] }
 0x28a   : > { %v7160_v6 = vld [vmem:[#allocation29_spill] sm:$0xff] }
 0x28c   : > { %2349 = vmatpush1.bf16.msra.mxu1 %v7114_v11  ;;  %2455 = vmatpush1.bf16.msra.mxu0 %v7115_v17  ;;  %v7161_v11 = vld [vmem:[#allocation139_spill] sm:$0xff] }
 0x28d   : > { %2350 = vmatprep.subr.bf16.mxu1 %v7116_v49  ;;  %2456 = vmatprep.subr.bf16.mxu0 %v7117_v1  ;;  %v7162_v17 = vld [vmem:[#allocation31_spill] sm:$0xff]  ;;  %v7163_v49 = vld [vmem:[#allocation141_spill] sm:$0xff] }
 0x28e   : > { %v7164_v1 = vld [vmem:[#allocation33_spill] sm:$0xff] }
 0x290   : > { %2351 = vmatpush1.bf16.msra.mxu1 %v7118_v30  ;;  %2457 = vmatpush1.bf16.msra.mxu0 %v7119_v56  ;;  %v7165_v30 = vld [vmem:[#allocation143_spill] sm:$0xff] }
 0x291   : > { %2352 = vmatprep.subr.bf16.mxu1 %v7120_v59  ;;  %2458 = vmatprep.subr.bf16.mxu0 %v7121_v32  ;;  %v7166_v56 = vld [vmem:[#allocation35_spill] sm:$0xff]  ;;  %v7167_v59 = vld [vmem:[#allocation145_spill] sm:$0xff] }
 0x292   : > { %v7168_v32 = vld [vmem:[#allocation37_spill] sm:$0xff] }
 0x294   : > { %2353 = vmatpush1.bf16.msra.mxu1 %v7122_v25  ;;  %2459 = vmatpush1.bf16.msra.mxu0 %v7123_v7  ;;  %v7170_v25 = vld [vmem:[#allocation39_spill] sm:$0xff]  ;;  %v7171_v7 = vld [vmem:[#allocation149_spill] sm:$0xff] }
 0x295   : > { %2354 = vmatprep.subr.bf16.mxu1 %v7124_v54  ;;  %2460 = vmatprep.subr.bf16.mxu0 %v7125_v45  ;;  %v7175_v54 = vld [vmem:[#allocation153_spill] sm:$0xff] }
 0x296   : > { %v7176_v45 = vld [vmem:[#allocation45_spill] sm:$0xff] }
 0x298   : > { %2355 = vmatpush1.bf16.msra.mxu1 %v7126_v51  ;;  %2461 = vmatpush1.bf16.msra.mxu0 %v7127_v22  ;;  %v7178_v51 = vld [vmem:[#allocation47_spill] sm:$0xff]  ;;  %v7179_v22 = vld [vmem:[#allocation157_spill] sm:$0xff] }
 0x299   : > { %2377 = vmatprep.subr.bf16.mxu1 %v7128_v37  ;;  %2536 = vmatprep.subr.bf16.mxu0 %v7129_v40  ;;  %v7180_v37 = vld [vmem:[#allocation49_spill] sm:$0xff]  ;;  %v7181_v40 = vld [vmem:[#allocation159_spill] sm:$0xff] }
 0x29b   : > { %2357 = vmatmul.mubr.bf16.vlgmr.msra.gmra.mrb[0].mxu1 %v5905_v24  ;;  %2463 = vmatmul.mubr.bf16.vlgmr.msra.gmra.mrb[0].mxu0 %v5905_v24 }
 0x29c   : > { %2378 = vmatpush1.bf16.msra.mxu1 %v7130_v19  ;;  %2537 = vmatpush1.bf16.msra.mxu0 %v7131_v48  ;;  %v7183_v19 = vld [vmem:[#allocation161_spill] sm:$0xff] }
 0x29d   : > { %2379 = vmatprep.subr.bf16.mxu1 %v7132_v0  ;;  %2538 = vmatprep.subr.bf16.mxu0 %v7133_v55  ;;  %v7184_v48 = vld [vmem:[#allocation53_spill] sm:$0xff]  ;;  %v7186_v0 = vld [vmem:[#allocation55_spill] sm:$0xff] }
 0x29e   : > { %2366 = vmatprep.mubr.bf16.mxu1 %v5914_v29  ;;  %2472 = vmatprep.mubr.bf16.mxu0 %v5914_v29  ;;  %v7187_v55 = vld [vmem:[#allocation165_spill] sm:$0xff] }
 0x2a0   : > { %2380 = vmatpush1.bf16.msra.mxu1 %v7134_v47  ;;  %2539 = vmatpush1.bf16.msra.mxu0 %v7135_v31  ;;  %v7188_v47 = vld [vmem:[#allocation57_spill] sm:$0xff]  ;;  %v7189_v31 = vld [vmem:[#allocation167_spill] sm:$0xff] }
 0x2a1   : > { %2381 = vmatprep.subr.bf16.mxu1 %v7136_v4  ;;  %2540 = vmatprep.subr.bf16.mxu0 %v7137_v16  ;;  %v7190_v4 = vld [vmem:[#allocation59_spill] sm:$0xff]  ;;  %v7191_v16 = vld [vmem:[#allocation169_spill] sm:$0xff] }
 0x2a3   : > { %2367 = vmatmul.mubr.bf16.gmra.mrb[4].mxu1 %v5925_v58  ;;  %2473 = vmatmul.mubr.bf16.gmra.mrb[4].mxu0 %v5925_v58 }
 0x2a4   : > { %2382 = vmatpush1.bf16.msra.mxu1 %v7138_v21  ;;  %2541 = vmatpush1.bf16.msra.mxu0 %v7139_v13  ;;  %v7192_v21 = vld [vmem:[#allocation60_spill] sm:$0xff]  ;;  %v7193_v13 = vld [vmem:[#allocation171_spill] sm:$0xff] }
 0x2a5   : > { %2383 = vmatprep.subr.bf16.mxu1 %v7140_v33  ;;  %2542 = vmatprep.subr.bf16.mxu0 %v7141_v35  ;;  %v7194_v33 = vld [vmem:[#allocation61_spill] sm:$0xff] }
 0x2a6   : > { %2409 = vmatprep.mubr.bf16.mxu1 %v5839_v3  ;;  %2568 = vmatprep.mubr.bf16.mxu0 %v5839_v3  ;;  %v7195_v35 = vld [vmem:[#allocation173_spill] sm:$0xff] }
 0x2a8   : > { %2384 = vmatpush1.bf16.msra.mxu1 %v7142_v43  ;;  %2543 = vmatpush1.bf16.msra.mxu0 %v7143_v57  ;;  %v7196_v43 = vld [vmem:[#allocation62_spill] sm:$0xff]  ;;  %v7197_v57 = vld [vmem:[#allocation175_spill] sm:$0xff] }
 0x2a9   : > { %2385 = vmatprep.subr.bf16.mxu1 %v7144_v39  ;;  %2544 = vmatprep.subr.bf16.mxu0 %v7145_v5  ;;  %v7198_v39 = vld [vmem:[#allocation63_spill] sm:$0xff]  ;;  %v7199_v5 = vld [vmem:[#allocation177_spill] sm:$0xff] }
 0x2ac   : > { %2386 = vmatpush1.bf16.msra.mxu1 %v7146_v10  ;;  %2545 = vmatpush1.bf16.msra.mxu0 %v7147_v18  ;;  %v7200_v10 = vld [vmem:[#allocation64_spill] sm:$0xff]  ;;  %v7201_v18 = vld [vmem:[#allocation179_spill] sm:$0xff] }
 0x2ad   : > { %2387 = vmatprep.subr.bf16.mxu1 %v7148_v20  ;;  %2546 = vmatprep.subr.bf16.mxu0 %v7149_v26  ;;  %v7202_v20 = vld [vmem:[#allocation65_spill] sm:$0xff] }
 0x2ae   : > { %v7203_v26 = vld [vmem:[#allocation181_spill] sm:$0xff] }
 0x2b0   : > { %2388 = vmatpush1.bf16.msra.mxu1 %v7150_v28  ;;  %2547 = vmatpush1.bf16.msra.mxu0 %v7151_v34  ;;  %v7204_v28 = vld [vmem:[#allocation66_spill] sm:$0xff]  ;;  %v7205_v34 = vld [vmem:[#allocation183_spill] sm:$0xff] }
 0x2b1   : > { %2389 = vmatprep.subr.bf16.mxu1 %v7152_v36  ;;  %2548 = vmatprep.subr.bf16.mxu0 %v7153_v42  ;;  %v7206_v36 = vld [vmem:[#allocation67_spill] sm:$0xff]  ;;  %v7207_v42 = vld [vmem:[#allocation185_spill] sm:$0xff] }
 0x2b4   : > { %2390 = vmatpush1.bf16.msra.mxu1 %v7154_v44  ;;  %2549 = vmatpush1.bf16.msra.mxu0 %v7155_v50  ;;  %v7208_v44 = vld [vmem:[#allocation68_spill] sm:$0xff]  ;;  %v7209_v50 = vld [vmem:[#allocation187_spill] sm:$0xff] }
 0x2b5   : > { %2391 = vmatprep.subr.bf16.mxu1 %v7156_v52  ;;  %2550 = vmatprep.subr.bf16.mxu0 %v7157_v60  ;;  %v7210_v52 = vld [vmem:[#allocation69_spill] sm:$0xff] }
 0x2b6   : > { %v7211_v60 = vld [vmem:[#allocation189_spill] sm:$0xff] }
 0x2b8   : > { %2392 = vmatpush1.bf16.msra.mxu1 %v7158_v62  ;;  %2551 = vmatpush1.bf16.msra.mxu0 %v7159_v63  ;;  %v7212_v62 = vld [vmem:[#allocation70_spill] sm:$0xff]  ;;  %v7213_v63 = vld [vmem:[#allocation191_spill] sm:$0xff] }
 0x2b9   : > { %2393 = vmatprep.subr.bf16.mxu1 %v7160_v6  ;;  %2552 = vmatprep.subr.bf16.mxu0 %v7161_v11  ;;  %v7214_v6 = vld [vmem:[#allocation71_spill] sm:$0xff]  ;;  %v7215_v11 = vld [vmem:[#allocation193_spill] sm:$0xff] }
 0x2bc   : > { %2394 = vmatpush1.bf16.msra.mxu1 %v7162_v17  ;;  %2553 = vmatpush1.bf16.msra.mxu0 %v7163_v49  ;;  %v7216_v17 = vld [vmem:[#allocation72_spill] sm:$0xff]  ;;  %v7217_v49 = vld [vmem:[#allocation195_spill] sm:$0xff] }
 0x2bd   : > { %2395 = vmatprep.subr.bf16.mxu1 %v7164_v1  ;;  %2554 = vmatprep.subr.bf16.mxu0 %v7165_v30  ;;  %v7218_v1 = vld [vmem:[#allocation73_spill] sm:$0xff] }
 0x2be   : > { %v7219_v30 = vld [vmem:[#allocation197_spill] sm:$0xff] }
 0x2c0   : > { %2396 = vmatpush1.bf16.msra.mxu1 %v7166_v56  ;;  %2555 = vmatpush1.bf16.msra.mxu0 %v7167_v59  ;;  %v7220_v56 = vld [vmem:[#allocation74_spill] sm:$0xff]  ;;  %v7221_v59 = vld [vmem:[#allocation199_spill] sm:$0xff] }
 0x2c1   : > { %2397 = vmatprep.subr.bf16.mxu1 %v7168_v32  ;;  %2556 = vmatprep.subr.bf16.mxu0 %v7169_v41  ;;  %v7222_v32 = vld [vmem:[#allocation75_spill] sm:$0xff]  ;;  %v7223_v41 = vld [vmem:[#allocation201_spill] sm:$0xff] }
 0x2c4   : > { %2398 = vmatpush1.bf16.msra.mxu1 %v7170_v25  ;;  %2557 = vmatpush1.bf16.msra.mxu0 %v7171_v7  ;;  %v7224_v25 = vld [vmem:[#allocation76_spill] sm:$0xff]  ;;  %v7225_v7 = vld [vmem:[#allocation203_spill] sm:$0xff] }
 0x2c5   : > { %2399 = vmatprep.subr.bf16.mxu1 %v7172_v12  ;;  %2558 = vmatprep.subr.bf16.mxu0 %v7173_v61  ;;  %v7226_v12 = vld [vmem:[#allocation78_spill] sm:$0xff]  ;;  %v7227_v61 = vld [vmem:[#allocation205_spill] sm:$0xff] }
 0x2c8   : > { %2400 = vmatpush1.bf16.msra.mxu1 %v7174_v53  ;;  %2559 = vmatpush1.bf16.msra.mxu0 %v7175_v54  ;;  %v7228_v53 = vld [vmem:[#allocation80_spill] sm:$0xff]  ;;  %v7229_v54 = vld [vmem:[#allocation207_spill] sm:$0xff] }
 0x2c9   : > { %2401 = vmatprep.subr.bf16.mxu1 %v7176_v45  ;;  %2560 = vmatprep.subr.bf16.mxu0 %v7177_v15  ;;  %v7230_v45 = vld [vmem:[#allocation82_spill] sm:$0xff]  ;;  %v7231_v15 = vld [vmem:[#allocation209_spill] sm:$0xff] }
 0x2cc   : > { %2402 = vmatpush1.bf16.msra.mxu1 %v7178_v51  ;;  %2561 = vmatpush1.bf16.msra.mxu0 %v7179_v22  ;;  %v7232_v51 = vld [vmem:[#allocation84_spill] sm:$0xff]  ;;  %v7233_v22 = vld [vmem:[#allocation211_spill] sm:$0xff] }
 0x2cd   : > { %2403 = vmatprep.subr.bf16.mxu1 %v7180_v37  ;;  %2562 = vmatprep.subr.bf16.mxu0 %v7181_v40  ;;  %v7234_v37 = vld [vmem:[#allocation86_spill] sm:$0xff]  ;;  %v7235_v40 = vld [vmem:[#allocation213_spill] sm:$0xff] }
 0x2d0   : > { %2404 = vmatpush1.bf16.msra.mxu1 %v7182_v8  ;;  %2563 = vmatpush1.bf16.msra.mxu0 %v7183_v19  ;;  %v7236_v8 = vld [vmem:[#allocation88_spill] sm:$0xff]  ;;  %v7237_v19 = vld [vmem:[#allocation215_spill] sm:$0xff] }
 0x2d1   : > { %2405 = vmatprep.subr.bf16.mxu1 %v7184_v48  ;;  %2564 = vmatprep.subr.bf16.mxu0 %v7185_v2  ;;  %v7238_v48 = vld [vmem:[#allocation90_spill] sm:$0xff]  ;;  %v7239_v2 = vld [vmem:[#allocation217_spill] sm:$0xff] }
 0x2d4   : > { %2406 = vmatpush1.bf16.msra.mxu1 %v7186_v0  ;;  %2565 = vmatpush1.bf16.msra.mxu0 %v7187_v55  ;;  %v7240_v0 = vld [vmem:[#allocation92_spill] sm:$0xff]  ;;  %v7241_v55 = vld [vmem:[#allocation219_spill] sm:$0xff] }
 0x2d5   : > { %2407 = vmatprep.subr.bf16.mxu1 %v7188_v47  ;;  %2566 = vmatprep.subr.bf16.mxu0 %v7189_v31  ;;  %v7242_v47 = vld [vmem:[#allocation94_spill] sm:$0xff]  ;;  %v7243_v31 = vld [vmem:[#allocation221_spill] sm:$0xff] }
 0x2d8   : > { %2408 = vmatpush1.bf16.msra.mxu1 %v7190_v4  ;;  %2567 = vmatpush1.bf16.msra.mxu0 %v7191_v16  ;;  %v7244_v4 = vld [vmem:[#allocation96_spill] sm:$0xff]  ;;  %v7245_v16 = vld [vmem:[#allocation223_spill] sm:$0xff] }
 0x2d9   : > { %2483 = vmatprep.subr.bf16.mxu1 %v7192_v21  ;;  %2642 = vmatprep.subr.bf16.mxu0 %v7193_v13  ;;  %v7246_v21 = vld [vmem:[#allocation98_spill] sm:$0xff]  ;;  %v7247_v13 = vld [vmem:[#allocation225_spill] sm:$0xff] }
 0x2db   : > { %2410 = vmatmul.mubr.bf16.vlgmr.msra.gmra.mrb[8].mxu1 %v5905_v24  ;;  %2569 = vmatmul.mubr.bf16.vlgmr.msra.gmra.mrb[8].mxu0 %v5905_v24 }
 0x2dc   : > { %2484 = vmatpush1.bf16.msra.mxu1 %v7194_v33  ;;  %2643 = vmatpush1.bf16.msra.mxu0 %v7195_v35  ;;  %v7248_v33 = vld [vmem:[#allocation100_spill] sm:$0xff]  ;;  %v7249_v35 = vld [vmem:[#allocation227_spill] sm:$0xff] }
 0x2dd   : > { %2485 = vmatprep.subr.bf16.mxu1 %v7196_v43  ;;  %2644 = vmatprep.subr.bf16.mxu0 %v7197_v57  ;;  %v7250_v43 = vld [vmem:[#allocation102_spill] sm:$0xff]  ;;  %v7251_v57 = vld [vmem:[#allocation229_spill] sm:$0xff] }
 0x2de   : > { %2578 = vmatprep.mubr.bf16.mxu0 %v5914_v29  ;;  %2419 = vmatprep.mubr.bf16.mxu1 %v5914_v29 }
 0x2e0   : > { %2486 = vmatpush1.bf16.msra.mxu1 %v7198_v39  ;;  %2645 = vmatpush1.bf16.msra.mxu0 %v7199_v5  ;;  %v7252_v39 = vld [vmem:[#allocation104_spill] sm:$0xff]  ;;  %v7253_v5 = vld [vmem:[#allocation231_spill] sm:$0xff] }
 0x2e1   : > { %2487 = vmatprep.subr.bf16.mxu1 %v7200_v10  ;;  %2646 = vmatprep.subr.bf16.mxu0 %v7201_v18  ;;  %v4282_v10 = vld [vmem:[%s6634_s2 + $0x40] sm:$0xff]  }
 0x2e2   : > { %v7254_v18 = vld [vmem:[#allocation106_spill] sm:$0xff] }
 0x2e3   : > { %2579 = vmatmul.mubr.bf16.gmra.mrb[12].mxu0 %v5925_v58  ;;  %2420 = vmatmul.mubr.bf16.gmra.mrb[12].mxu1 %v5925_v58 }
 0x2e4   : > { %2488 = vmatpush1.bf16.msra.mxu1 %v7202_v20  ;;  %2647 = vmatpush1.bf16.msra.mxu0 %v7203_v26  ;;  %v7255_v20 = vld [vmem:[#allocation233_spill] sm:$0xff]  ;;  %v7256_v26 = vld [vmem:[#allocation108_spill] sm:$0xff] }
 0x2e5   : > { %2489 = vmatprep.subr.bf16.mxu1 %v7204_v28  ;;  %2648 = vmatprep.subr.bf16.mxu0 %v7205_v34  ;;  %v4283_v28 = vld [vmem:[%s6634_s2] sm:$0xff]   ;;  %v4284_v34 = vld [vmem:[%s6634_s2 + $0x48] sm:$0xff]  }
 0x2e6   : > { %2515 = vmatprep.mubr.bf16.mxu1 %v5839_v3  ;;  %2674 = vmatprep.mubr.bf16.mxu0 %v5839_v3 }
 0x2e8   : > { %2490 = vmatpush1.bf16.msra.mxu1 %v7206_v36  ;;  %2649 = vmatpush1.bf16.msra.mxu0 %v7207_v42  ;;  %v7257_v36 = vld [vmem:[#allocation110_spill] sm:$0xff]  ;;  %v7258_v42 = vld [vmem:[#allocation112_spill] sm:$0xff] }
 0x2e9   : > { %2491 = vmatprep.subr.bf16.mxu1 %v7208_v44  ;;  %2650 = vmatprep.subr.bf16.mxu0 %v7209_v50  ;;  %v4285_v44 = vld [vmem:[%s6634_s2 + $0x8] sm:$0xff]   ;;  %v7259_v50 = vld [vmem:[#allocation114_spill] sm:$0xff] }
 0x2ec   : > { %2492 = vmatpush1.bf16.msra.mxu1 %v7210_v52  ;;  %2651 = vmatpush1.bf16.msra.mxu0 %v7211_v60  ;;  %v7260_v52 = vld [vmem:[#allocation116_spill] sm:$0xff] }
 0x2ed   : > { %2493 = vmatprep.subr.bf16.mxu1 %v7212_v62  ;;  %2652 = vmatprep.subr.bf16.mxu0 %v7213_v63  ;;  %v4286_v60 = vld [vmem:[%s6634_s2 + $0x50] sm:$0xff]   ;;  %v4288_v63 = vld [vmem:[%s6634_s2 + $0x58] sm:$0xff]  }
 0x2ee   : > { %v4287_v62 = vld [vmem:[%s6634_s2 + $0x10] sm:$0xff]  }
 0x2f0   : > { %2494 = vmatpush1.bf16.msra.mxu1 %v7214_v6  ;;  %2653 = vmatpush1.bf16.msra.mxu0 %v7215_v11  ;;  %v7261_v6 = vld [vmem:[#allocation118_spill] sm:$0xff]  ;;  %v7262_v11 = vld [vmem:[#allocation120_spill] sm:$0xff] }
 0x2f1   : > { %2495 = vmatprep.subr.bf16.mxu1 %v7216_v17  ;;  %2654 = vmatprep.subr.bf16.mxu0 %v7217_v49  ;;  %v4289_v17 = vld [vmem:[%s6634_s2 + $0x18] sm:$0xff]   ;;  %v4290_v49 = vld [vmem:[%s6634_s2 + $0x60] sm:$0xff]  }
 0x2f4   : > { %2496 = vmatpush1.bf16.msra.mxu1 %v7218_v1  ;;  %2655 = vmatpush1.bf16.msra.mxu0 %v7219_v30  ;;  %v7263_v1 = vld [vmem:[#allocation122_spill] sm:$0xff]  ;;  %v7264_v30 = vld [vmem:[#allocation124_spill] sm:$0xff] }
 0x2f5   : > { %2497 = vmatprep.subr.bf16.mxu1 %v7220_v56  ;;  %2656 = vmatprep.subr.bf16.mxu0 %v7221_v59  ;;  %v4291_v56 = vld [vmem:[%s6634_s2 + $0x20] sm:$0xff]   ;;  %v4292_v59 = vld [vmem:[%s6634_s2 + $0x68] sm:$0xff]  }
 0x2f8   : > { %2498 = vmatpush1.bf16.msra.mxu1 %v7222_v32  ;;  %2657 = vmatpush1.bf16.msra.mxu0 %v7223_v41  ;;  %v7265_v32 = vld [vmem:[#allocation126_spill] sm:$0xff]  ;;  %v7266_v41 = vld [vmem:[#allocation128_spill] sm:$0xff] }
 0x2f9   : > { %2499 = vmatprep.subr.bf16.mxu1 %v7224_v25  ;;  %2658 = vmatprep.subr.bf16.mxu0 %v7225_v7  ;;  %v4293_v25 = vld [vmem:[%s6634_s2 + $0x28] sm:$0xff]   ;;  %v4294_v7 = vld [vmem:[%s6634_s2 + $0x70] sm:$0xff]  }
 0x2fc   : > { %2500 = vmatpush1.bf16.msra.mxu1 %v7226_v12  ;;  %2659 = vmatpush1.bf16.msra.mxu0 %v7227_v61  ;;  %v7267_v12 = vld [vmem:[#allocation130_spill] sm:$0xff]  ;;  %v7268_v61 = vld [vmem:[#allocation132_spill] sm:$0xff] }
 0x2fd   : > { %2501 = vmatprep.subr.bf16.mxu1 %v7228_v53  ;;  %2660 = vmatprep.subr.bf16.mxu0 %v7229_v54  ;;  %v4295_v53 = vld [vmem:[%s6634_s2 + $0x30] sm:$0xff]   ;;  %v3173_v54 = vld [vmem:[#allocation2 + $0x8] sm:$0xff] }
 0x300   : > { %2502 = vmatpush1.bf16.msra.mxu1 %v7230_v45  ;;  %2661 = vmatpush1.bf16.msra.mxu0 %v7231_v15  ;;  %v4296_v45 = vld [vmem:[%s6634_s2 + $0x78] sm:$0xff]   ;;  %v7269_v15 = vld [vmem:[#allocation134_spill] sm:$0xff] }
 0x301   : > { %2503 = vmatprep.subr.bf16.mxu1 %v7232_v51  ;;  %2662 = vmatprep.subr.bf16.mxu0 %v7233_v22  ;;  %v7270_v51 = vld [vmem:[#allocation136_spill] sm:$0xff]  ;;  %v4297_v22 = vld [vmem:[%s6634_s2 + $0x38] sm:$0xff]  }
 0x304   : > { %2504 = vmatpush1.bf16.msra.mxu1 %v7234_v37  ;;  %2663 = vmatpush1.bf16.msra.mxu0 %v7235_v40  ;;  %v7271_v37 = vld [vmem:[#allocation138_spill] sm:$0xff]  ;;  %v7272_v40 = vld [vmem:[#allocation140_spill] sm:$0xff] }
 0x305   : > { %2505 = vmatprep.subr.bf16.mxu1 %v7236_v8  ;;  %2664 = vmatprep.subr.bf16.mxu0 %v7237_v19  ;;  %v3172_v8 = vld [vmem:[#allocation2] sm:$0xff]  ;;  %v2280_v19 = vrot.slane %v5798_v46, 4 }
 0x307   : > { %2284 = vst [vmem:[#allocation2 + $0x28] sm:$0xf0] %v2280_v19  ;;  %v7310_v19 = vld [vmem:[#allocation216_spill] sm:$0xff] }
 0x308   : > { %2506 = vmatpush1.bf16.msra.mxu1 %v7238_v48  ;;  %2665 = vmatpush1.bf16.msra.mxu0 %v7239_v2  ;;  %v7273_v48 = vld [vmem:[#allocation142_spill] sm:$0xff]  ;;  %v2279_v2 = vrot.slane %v5794_v14, 4 }
 0x309   : > { %2507 = vmatprep.subr.bf16.mxu1 %v7240_v0  ;;  %2666 = vmatprep.subr.bf16.mxu0 %v7241_v55  ;;  %v7274_v0 = vld [vmem:[#allocation144_spill] sm:$0xff]  ;;  %v7275_v55 = vld [vmem:[#allocation146_spill] sm:$0xff] }
 0x30a   : > { %2283 = vst [vmem:[#allocation2 + $0x20] sm:$0xf0] %v2279_v2  ;;  %v7279_v14 = vld [vmem:[#allocation154_spill] sm:$0xff]  ;;  %v7312_v2 = vld [vmem:[#allocation220_spill] sm:$0xff] }
 0x30c   : > { %2508 = vmatpush1.bf16.msra.mxu1 %v7242_v47  ;;  %2667 = vmatpush1.bf16.msra.mxu0 %v7243_v31  ;;  %v7276_v47 = vld [vmem:[#allocation148_spill] sm:$0xff]  ;;  %v2290_v31 = vrot.slane %v5812_v38, 4 }
 0x30d   : > { %2509 = vmatprep.subr.bf16.mxu1 %v7244_v4  ;;  %2668 = vmatprep.subr.bf16.mxu0 %v7245_v16  ;;  %v7277_v4 = vld [vmem:[#allocation150_spill] sm:$0xff]  ;;  %v2289_v16 = vrot.slane %v5810_v27, 4 }
 0x30e   : > { %v3177_v46 = vld [vmem:[#allocation2 + $0x28] sm:$0xff]  ;;  %2294 = vst [vmem:[#allocation2 + $0x38] sm:$0xf0] %v2290_v31  ;;  %v7283_v27 = vld [vmem:[#allocation162_spill] sm:$0xff]  ;;  %v7316_v31 = vld [vmem:[#allocation228_spill] sm:$0xff] }
 0x30f   : > { %2293 = vst [vmem:[#allocation2 + $0x30] sm:$0xf0] %v2289_v16  ;;  %v7319_v16 = vld [vmem:[#allocation234_spill] sm:$0xff] }
 0x310   : > { %2510 = vmatpush1.bf16.msra.mxu1 %v7246_v21  ;;  %2669 = vmatpush1.bf16.msra.mxu0 %v7247_v13  ;;  %v7278_v21 = vld [vmem:[#allocation152_spill] sm:$0xff] }
 0x311   : > { %2511 = vmatprep.subr.bf16.mxu1 %v7248_v33  ;;  %2670 = vmatprep.subr.bf16.mxu0 %v7249_v35  ;;  %v3176_v13 = vld [vmem:[#allocation2 + $0x20] sm:$0xff]  ;;  %v7282_v35 = vld [vmem:[#allocation160_spill] sm:$0xff] }
 0x312   : > { %v7281_v33 = vld [vmem:[#allocation158_spill] sm:$0xff] }
 0x314   : > { %2512 = vmatpush1.bf16.msra.mxu1 %v7250_v43  ;;  %2671 = vmatpush1.bf16.msra.mxu0 %v7251_v57  ;;  %v7284_v43 = vld [vmem:[#allocation164_spill] sm:$0xff]  ;;  %v7285_v57 = vld [vmem:[#allocation166_spill] sm:$0xff] }
 0x315   : > { %2513 = vmatprep.subr.bf16.mxu1 %v7252_v39  ;;  %2672 = vmatprep.subr.bf16.mxu0 %v7253_v5  ;;  %v3179_v38 = vld [vmem:[#allocation2 + $0x38] sm:$0xff]  ;;  %v7286_v39 = vld [vmem:[#allocation168_spill] sm:$0xff]  ;;  %v7287_v5 = vld [vmem:[#allocation170_spill] sm:$0xff] }
 0x318   : > { %2514 = vmatpush1.bf16.msra.mxu1 %v7254_v18  ;;  %2673 = vmatpush1.bf16.msra.mxu0 %v7255_v20  ;;  %v7289_v18 = vld [vmem:[#allocation174_spill] sm:$0xff]  ;;  %v7290_v20 = vld [vmem:[#allocation176_spill] sm:$0xff] }
 0x319   : > { %2589 = vmatprep.subr.bf16.mxu1 %v7256_v26  ;;  %4059 = vmatprep.subr.bf16.mxu0 %v4282_v10  ;;  %v7288_v10 = vld [vmem:[#allocation172_spill] sm:$0xff]  ;;  %v7291_v26 = vld [vmem:[#allocation178_spill] sm:$0xff] }
 0x31b   : > { %2516 = vmatmul.mubr.bf16.vlgmr.msra.gmra.mrb[16].mxu1 %v5905_v24  ;;  %2675 = vmatmul.mubr.bf16.vlgmr.msra.gmra.mrb[16].mxu0 %v5905_v24 }
 0x31c   : > { %2590 = vmatpush1.bf16.msra.mxu1 %v7257_v36  ;;  %2684 = vmatprep.mubr.bf16.mxu0 %v5914_v29  ;;  %v7294_v36 = vld [vmem:[#allocation184_spill] sm:$0xff] }
 0x31d   : > { %2591 = vmatprep.subr.bf16.mxu1 %v7258_v42  ;;  %2525 = vmatprep.mubr.bf16.mxu1 %v5914_v29  ;;  %v7295_v42 = vld [vmem:[#allocation186_spill] sm:$0xff] }
 0x31e   : > { %4060 = vmatpush3.bf16.msra.mxu0 %v4283_v28  ;;  %v7292_v28 = vld [vmem:[#allocation180_spill] sm:$0xff] }
 0x31f   : > { %4061 = vmatprep.subr.bf16.mxu0 %v4284_v34  ;;  %v7293_v34 = vld [vmem:[#allocation182_spill] sm:$0xff] }
 0x320   : > { %2592 = vmatpush1.bf16.msra.mxu1 %v7259_v50  ;;  %v7297_v50 = vld [vmem:[#allocation190_spill] sm:$0xff] }
 0x321   : > { %2593 = vmatprep.subr.bf16.mxu1 %v7260_v52  ;;  %v7298_v52 = vld [vmem:[#allocation192_spill] sm:$0xff] }
 0x322   : > { %4062 = vmatpush3.bf16.msra.mxu0 %v4285_v44  ;;  %v7296_v44 = vld [vmem:[#allocation188_spill] sm:$0xff] }
 0x323   : > { %2685 = vmatmul.mubr.bf16.gmra.mrb[20].mxu0 %v5925_v58  ;;  %2526 = vmatmul.mubr.bf16.gmra.mrb[20].mxu1 %v5925_v58 }
 0x324   : > { %2594 = vmatpush1.bf16.msra.mxu1 %v7261_v6  ;;  %2621 = vmatprep.mubr.bf16.mxu1 %v5839_v3 }
 0x325   : > { %2595 = vmatprep.subr.bf16.mxu1 %v7262_v11  ;;  %4063 = vmatprep.subr.bf16.mxu0 %v4286_v60 }
 0x326   : > { %4064 = vmatpush3.bf16.msra.mxu0 %v4287_v62  ;;  %3358 = vmatprep.mubr.bf16.mxu0 %v3173_v54  ;;  %v7304_v54 = vld [vmem:[#allocation204_spill] sm:$0xff] }
 0x327   : > { %4065 = vmatprep.subr.bf16.mxu0 %v4288_v63 }
 0x328   : > { %2596 = vmatpush1.bf16.msra.mxu1 %v7263_v1  ;;  %v7300_v1 = vld [vmem:[#allocation196_spill] sm:$0xff] }
 0x329   : > { %2597 = vmatprep.subr.bf16.mxu1 %v7264_v30 }
 0x32a   : > { %4066 = vmatpush3.bf16.msra.mxu0 %v4289_v17  ;;  %v7299_v17 = vld [vmem:[#allocation194_spill] sm:$0xff] }
 0x32b   : > { %4067 = vmatprep.subr.bf16.mxu0 %v4290_v49 }
 0x32c   : > { %2598 = vmatpush1.bf16.msra.mxu1 %v7265_v32 }
 0x32d   : > { %2599 = vmatprep.subr.bf16.mxu1 %v7266_v41 }
 0x32e   : > { %4068 = vmatpush3.bf16.msra.mxu0 %v4291_v56  ;;  %v7301_v56 = vld [vmem:[#allocation198_spill] sm:$0xff] }
 0x32f   : > { %4069 = vmatprep.subr.bf16.mxu0 %v4292_v59  ;;  %v7302_v59 = vld [vmem:[#allocation200_spill] sm:$0xff] }
 0x330   : > { %2600 = vmatpush1.bf16.msra.mxu1 %v7267_v12  ;;  %v7303_v12 = vld [vmem:[#allocation202_spill] sm:$0xff] }
 0x331   : > { %2601 = vmatprep.subr.bf16.mxu1 %v7268_v61 }
 0x332   : > { %4070 = vmatpush3.bf16.msra.mxu0 %v4293_v25 }
 0x333   : > { %4071 = vmatprep.subr.bf16.mxu0 %v4294_v7 }
 0x334   : > { %2602 = vmatpush1.bf16.msra.mxu1 %v7269_v15 }
 0x335   : > { %2603 = vmatprep.subr.bf16.mxu1 %v7270_v51  ;;  %v7305_v51 = vld [vmem:[#allocation206_spill] sm:$0xff] }
 0x336   : > { %4072 = vmatpush3.bf16.msra.mxu0 %v4295_v53 }
 0x337   : > { %4073 = vmatprep.subr.bf16.mxu0 %v4296_v45 }
 0x338   : > { %2604 = vmatpush1.bf16.msra.mxu1 %v7271_v37  ;;  %v7307_v37 = vld [vmem:[#allocation210_spill] sm:$0xff] }
 0x339   : > { %2605 = vmatprep.subr.bf16.mxu1 %v7272_v40  ;;  %v7308_v40 = vld [vmem:[#allocation212_spill] sm:$0xff] }
 0x33a   : > { %4074 = vmatpush3.bf16.msra.mxu0 %v4297_v22  ;;  %v7306_v22 = vld [vmem:[#allocation208_spill] sm:$0xff] }
 0x33c   : > { %2606 = vmatpush1.bf16.msra.mxu1 %v7273_v48  ;;  %v7311_v48 = vld [vmem:[#allocation218_spill] sm:$0xff] }
 0x33d   : > { %2607 = vmatprep.subr.bf16.mxu1 %v7274_v0  ;;  %3359 = vmatmul.mubr.bf16.vlgmr.msra.gmra.mrb[24].mxu0 %v3172_v8  ;;  %v7309_v8 = vld [vmem:[#allocation214_spill] sm:$0xff] }
 0x33e   : > { %3366 = vmatprep.mubr.bf16.mxu0 %v5827_v9  ;;  %v7280_v9 = vld [vmem:[#allocation156_spill] sm:$0xff]  ;;  %v7313_v0 = vld [vmem:[#allocation222_spill] sm:$0xff] }
 0x340   : > { %2608 = vmatpush1.bf16.msra.mxu1 %v7275_v55  ;;  %v7314_v55 = vld [vmem:[#allocation224_spill] sm:$0xff] }
 0x341   : > { %2609 = vmatprep.subr.bf16.mxu1 %v7276_v47  ;;  %v7315_v47 = vld [vmem:[#allocation226_spill] sm:$0xff] }
 0x344   : > { %2610 = vmatpush1.bf16.msra.mxu1 %v7277_v4  ;;  %v7317_v4 = vld [vmem:[#allocation230_spill] sm:$0xff] }
 0x345   : > { %2611 = vmatprep.subr.bf16.mxu1 %v7278_v21  ;;  %3367 = vmatmul.mubr.bf16.gmra.mrb[28].mxu0 %v5895_v23  ;;  %v3178_v23 = vld [vmem:[#allocation2 + $0x30] sm:$0xff] }
 0x346   : > { %3374 = vmatprep.mubr.bf16.mxu0 %v3177_v46  ;;  %v7318_v46 = vld [vmem:[#allocation232_spill] sm:$0xff] }
 0x348   : > { %2612 = vmatpush1.bf16.msra.mxu1 %v7279_v14 }
 0x349   : > { %2613 = vmatprep.subr.bf16.mxu1 %v7280_v9 }
 0x34c   : > { %2614 = vmatpush1.bf16.msra.mxu1 %v7281_v33 }
 0x34d   : > { %2615 = vmatprep.subr.bf16.mxu1 %v7282_v35  ;;  %3375 = vmatmul.mubr.bf16.gmra.mrb[32].mxu0 %v3176_v13 }
 0x34e   : > { %3382 = vmatprep.mubr.bf16.mxu0 %v3179_v38 }
 0x350   : > { %2616 = vmatpush1.bf16.msra.mxu1 %v7283_v27 }
 0x351   : > { %2617 = vmatprep.subr.bf16.mxu1 %v7284_v43 }
 0x354   : > { %2618 = vmatpush1.bf16.msra.mxu1 %v7285_v57 }
 0x355   : > { %2619 = vmatprep.subr.bf16.mxu1 %v7286_v39  ;;  %3383 = vmatmul.mubr.bf16.gmra.mrb[36].mxu0 %v3178_v23 }
 0x358   : > { %2620 = vmatpush1.bf16.msra.mxu1 %v7287_v5 }
 0x359   : > { %2695 = vmatprep.subr.bf16.mxu1 %v7288_v10 }
 0x35b   : > { %2622 = vmatmul.mubr.bf16.vlgmr.msra.gmra.mrb[24].mxu1 %v5905_v24 }
 0x35c   : > { %2696 = vmatpush1.bf16.msra.mxu1 %v7289_v18  ;;  %2631 = vmatprep.mubr.bf16.mxu1 %v5914_v29 }
 0x35d   : > { %2697 = vmatprep.subr.bf16.mxu1 %v7290_v20 }
 0x360   : > { %2698 = vmatpush1.bf16.msra.mxu1 %v7291_v26 }
 0x361   : > { %2699 = vmatprep.subr.bf16.mxu1 %v7292_v28 }
 0x363   : > { %2632 = vmatmul.mubr.bf16.gmra.mrb[28].mxu1 %v5925_v58 }
 0x364   : > { %2700 = vmatpush1.bf16.msra.mxu1 %v7293_v34  ;;  %2727 = vmatprep.mubr.bf16.mxu1 %v5839_v3 }
 0x365   : > { %2701 = vmatprep.subr.bf16.mxu1 %v7294_v36 }
 0x368   : > { %2702 = vmatpush1.bf16.msra.mxu1 %v7295_v42 }
 0x369   : > { %2703 = vmatprep.subr.bf16.mxu1 %v7296_v44 }
 0x36c   : > { %2704 = vmatpush1.bf16.msra.mxu1 %v7297_v50 }
 0x36d   : > { %2705 = vmatprep.subr.bf16.mxu1 %v7298_v52 }
 0x36e   : > { %v2358_v60 = vpop.f32.mrb[0].mxu1  ;;  %v6167_v62 = vpop.f32.mrb[0].mxu0 }
 0x36f   : > { %v2360_v63 = vpop.f32.mrb[1].mxu1  ;;  %v6169_v6 = vpop.f32.mrb[1].mxu0  ;;  %v2748_v9 = vmul.f32 %v2358_v60, %v2358_v60 }
 0x370   : > { %v2362_v11 = vpop.f32.mrb[2].mxu1  ;;  %2706 = vmatpush1.bf16.msra.mxu1 %v7299_v17  ;;  %v6172_v3 = vpop.f32.mrb[2].mxu0  ;;  %v2749_v35 = vmul.f32 %v2360_v63, %v2360_v63 }
 0x371   : > { %v2364_v49 = vpop.f32.mrb[3].mxu1  ;;  %2707 = vmatprep.subr.bf16.mxu1 %v7300_v1  ;;  %v6175_v30 = vpop.f32.mrb[3].mxu0  ;;  %v2756_v10 = vmul.f32 %v2362_v11, %v2362_v11 }
 0x372   : > { %v2757_v18 = vmul.f32 %v2364_v49, %v2364_v49 }
 0x374   : > { %2708 = vmatpush1.bf16.msra.mxu1 %v7301_v56 }
 0x375   : > { %2709 = vmatprep.subr.bf16.mxu1 %v7302_v59 }
 0x376   : > { %v2368_v32 = vpop.f32.mrb[4].mxu1  ;;  %v6179_v41 = vpop.f32.mrb[4].mxu0 }
 0x377   : > { %v2370_v25 = vpop.f32.mrb[5].mxu1  ;;  %v6181_v7 = vpop.f32.mrb[5].mxu0  ;;  %v2764_v44 = vmul.f32 %v2368_v32, %v2368_v32 }
 0x378   : > { %2710 = vmatpush1.bf16.msra.mxu1 %v7303_v12  ;;  %v2372_v61 = vpop.f32.mrb[6].mxu1  ;;  %v6184_v53 = vpop.f32.mrb[6].mxu0  ;;  %v2765_v50 = vmul.f32 %v2370_v25, %v2370_v25 }
 0x379   : > { %2711 = vmatprep.subr.bf16.mxu1 %v7304_v54  ;;  %v2374_v45 = vpop.f32.mrb[7].mxu1  ;;  %v6187_v15 = vpop.f32.mrb[7].mxu0  ;;  %v2772_v63 = vmul.f32 %v2372_v61, %v2372_v61 }
 0x37a   : > { %v2773_v59 = vmul.f32 %v2374_v45, %v2374_v45 }
 0x37c   : > { %2712 = vmatpush1.bf16.msra.mxu1 %v7305_v51 }
 0x37d   : > { %2713 = vmatprep.subr.bf16.mxu1 %v7306_v22 }
 0x380   : > { %2714 = vmatpush1.bf16.msra.mxu1 %v7307_v37 }
 0x381   : > { %2715 = vmatprep.subr.bf16.mxu1 %v7308_v40 }
 0x384   : > { %2716 = vmatpush1.bf16.msra.mxu1 %v7309_v8 }
 0x385   : > { %2717 = vmatprep.subr.bf16.mxu1 %v7310_v19 }
 0x388   : > { %2718 = vmatpush1.bf16.msra.mxu1 %v7311_v48 }
 0x389   : > { %2719 = vmatprep.subr.bf16.mxu1 %v7312_v2 }
 0x38c   : > { %2720 = vmatpush1.bf16.msra.mxu1 %v7313_v0 }
 0x38d   : > { %2721 = vmatprep.subr.bf16.mxu1 %v7314_v55 }
 0x390   : > { %2722 = vmatpush1.bf16.msra.mxu1 %v7315_v47 }
 0x391   : > { %2723 = vmatprep.subr.bf16.mxu1 %v7316_v31 }
 0x394   : > { %2724 = vmatpush1.bf16.msra.mxu1 %v7317_v4 }
 0x395   : > { %2725 = vmatprep.subr.bf16.mxu1 %v7318_v46 }
 0x398   : > { %2726 = vmatpush1.bf16.msra.mxu1 %v7319_v16 }
 0x39b   : > { %2728 = vmatmul.mubr.bf16.vlgmr.msra.gmra.mrb[32].mxu1 %v5905_v24 }
 0x39c   : > { %2737 = vmatprep.mubr.bf16.mxu1 %v5914_v29 }
 0x3a3   : > { %2738 = vmatmul.mubr.bf16.gmra.mrb[36].mxu1 %v5925_v58 }
 0x3ae   : > { %v6207_v21 = vpop.f32.mrb[8].mxu1  ;;  %v2570_v14 = vpop.f32.mrb[8].mxu0 }
 0x3af   : > { %v2780_v13 = vmul.f32 %v2570_v14, %v2570_v14  ;;  %v6209_v33 = vpop.f32.mrb[9].mxu1  ;;  %v2572_v38 = vpop.f32.mrb[9].mxu0 }
 0x3b0   : > { %v2781_v27 = vmul.f32 %v2572_v38, %v2572_v38  ;;  %v6211_v43 = vpop.f32.mrb[10].mxu1  ;;  %v2574_v23 = vpop.f32.mrb[10].mxu0 }
 0x3b1   : > { %v2812_v57 = vadd.f32 %v2780_v13, %v2748_v9  ;;  %v2788_v39 = vmul.f32 %v2574_v23, %v2574_v23  ;;  %v6213_v24 = vpop.f32.mrb[11].mxu1  ;;  %v2576_v29 = vpop.f32.mrb[11].mxu0 }
 0x3b2   : > { %v2813_v5 = vadd.f32 %v2781_v27, %v2749_v35  ;;  %v2789_v58 = vmul.f32 %v2576_v29, %v2576_v29 }
 0x3b3   : > { %4298 = vrsqrt.f32 %v2812_v57  ;;  %v2820_v20 = vadd.f32 %v2788_v39, %v2756_v10  ;;  %vm2846_vm1 = vcmp.eq.f32.partialorder %v2812_v57, inf  ;;  %vm2848_vm2 = vcmp.eq.f32.partialorder %v2812_v57, 0.0 }
 0x3b4   : > { %4300 = vrsqrt.f32 %v2813_v5  ;;  %v2821_v26 = vadd.f32 %v2789_v58, %v2757_v18  ;;  %v2849_v8 = vand.u32 2147483648, %v2812_v57  ;;  %vm2853_vm3 = vcmp.eq.f32.partialorder %v2813_v5, inf }
 0x3b5   : > { %4302 = vrsqrt.f32 %v2820_v20  ;;  %vm2855_vm4 = vcmp.eq.f32.partialorder %v2813_v5, 0.0  ;;  %v2856_v2 = vand.u32 2147483648, %v2813_v5  ;;  %vm2902_vm5 = vcmp.eq.f32.partialorder %v2820_v20, inf }
 0x3b6   : > { %v2580_v28 = vpop.f32.mrb[12].mxu0  ;;  %v6215_v34 = vpop.f32.mrb[12].mxu1  ;;  %4304 = vrsqrt.f32 %v2821_v26  ;;  %v2905_v47 = vand.u32 2147483648, %v2820_v20  ;;  %vm2904_vm6 = vcmp.eq.f32.partialorder %v2820_v20, 0.0  ;;  %vm2909_vm7 = vcmp.eq.f32.partialorder %v2821_v26, inf }
 0x3b7   : > { %v2582_v36 = vpop.f32.mrb[13].mxu0  ;;  %v6217_v42 = vpop.f32.mrb[13].mxu1  ;;  %v2796_v11 = vmul.f32 %v2580_v28, %v2580_v28  ;;  %v2912_v46 = vand.u32 2147483648, %v2821_v26  ;;  %vm2911_vm8 = vcmp.eq.f32.partialorder %v2821_v26, 0.0 }
 0x3b8   : > { %v2584_v52 = vpop.f32.mrb[14].mxu0  ;;  %v6219_v60 = vpop.f32.mrb[14].mxu1  ;;  %v2797_v17 = vmul.f32 %v2582_v36, %v2582_v36 }
 0x3b9   : > { %v2804_v49 = vmul.f32 %v2584_v52, %v2584_v52  ;;  %v2586_v1 = vpop.f32.mrb[15].mxu0  ;;  %v6221_v56 = vpop.f32.mrb[15].mxu1  ;;  %v6223_v54 = vadd.f32 %v2796_v11, %v2764_v44 }
 0x3ba   : > { %v2805_v12 = vmul.f32 %v2586_v1, %v2586_v1  ;;  %v6225_v51 = vadd.f32 %v2797_v17, %v2765_v50 }
 0x3bb   : > { %v6227_v22 = vadd.f32 %v2804_v49, %v2772_v63  ;;  %4306 = vrsqrt.f32 %v6223_v54  ;;  %vm2958_vm9 = vcmp.eq.f32.partialorder %v6223_v54, inf  ;;  %vm2960_vm10 = vcmp.eq.f32.partialorder %v6223_v54, 0.0 }
 0x3bc   : > { %v6229_v32 = vadd.f32 %v2805_v12, %v2773_v59  ;;  %4308 = vrsqrt.f32 %v6225_v51  ;;  %vm2965_vm11 = vcmp.eq.f32.partialorder %v6225_v51, inf  ;;  %vm2967_vm12 = vcmp.eq.f32.partialorder %v6225_v51, 0.0 }
 0x3bd   : > { %v4299_v25 = vpop.eup %4298  ;;  %4310 = vrsqrt.f32 %v6227_v22  ;;  %v2968_v28 = vand.u32 2147483648, %v6225_v51  ;;  %vm3014_vm13 = vcmp.eq.f32.partialorder %v6227_v22, inf  ;;  %v3017_v50 = vand.u32 2147483648, %v6227_v22 }
 0x3be   : > { %v4301_v61 = vpop.eup %4300  ;;  %v2845_v37 = vmul.f32 %v4299_v25, %v2812_v57  ;;  %4312 = vrsqrt.f32 %v6229_v32  ;;  %vm3016_vm14 = vcmp.eq.f32.partialorder %v6227_v22, 0.0  ;;  %vm3021_vm15 = vcmp.eq.f32.partialorder %v6229_v32, inf }
 0x3bf   : > { %v2852_v40 = vmul.f32 %v4301_v61, %v2813_v5  ;;  %v4303_v45 = vpop.eup %4302  ;;  %v3024_v11 = vand.u32 2147483648, %v6229_v32 }
 0x3c0   : > { %v4305_v19 = vpop.eup %4304  ;;  %v2847_v48 = vsel %vm2846_vm1, %v2812_v57, %v2845_v37  ;;  %v2901_v0 = vmul.f32 %v4303_v45, %v2820_v20  ;;  %v2961_v57 = vand.u32 2147483648, %v6223_v54  ;;  %vm3023_vm1 = vcmp.eq.f32.partialorder %v6229_v32, 0.0 }
 0x3c1   : > { %v2854_v55 = vsel %vm2853_vm3, %v2813_v5, %v2852_v40  ;;  %v2908_v31 = vmul.f32 %v4305_v19, %v2821_v26  ;;  %v2850_v16 = vsel %vm2848_vm2, %v2849_v8, %v2847_v48  ;;  %v2752_v19 = vmul.f32 %v6167_v62, %v6167_v62 }
 0x3c2   : > { %v2903_v4 = vsel %vm2902_vm5, %v2820_v20, %v2901_v0  ;;  %v2857_v13 = vsel %vm2855_vm4, %v2856_v2, %v2854_v55  ;;  %v2753_v55 = vmul.f32 %v6169_v6, %v6169_v6 }
 0x3c3   : > { %v2906_v14 = vsel %vm2904_vm6, %v2905_v47, %v2903_v4  ;;  %v2910_v9 = vsel %vm2909_vm7, %v2821_v26, %v2908_v31 }
 0x3c4   : > { %v3068_v38 = vpack.c.bf16 %v2906_v14, %v2850_v16  ;;  %v2913_v35 = vsel %vm2911_vm8, %v2912_v46, %v2910_v9 }
 0x3c5   : > { %v4307_v27 = vpop.eup %4306  ;;  %v3069_v23 = vpack.c.bf16 %v2913_v35, %v2857_v13  ;;  %v2761_v35 = vmul.f32 %v6175_v30, %v6175_v30 }
 0x3c6   : > { %v4309_v39 = vpop.eup %4308  ;;  %v3088_v29 = vrot.slane %v3068_v38, 4  ;;  %v2957_v5 = vmul.f32 %v4307_v27, %v6223_v54  ;;  %v2760_v38 = vmul.f32 %v6172_v3, %v6172_v3  ;;  %v2776_v3 = vmul.f32 %v6184_v53, %v6184_v53 }
 0x3c7   : > { %v4311_v58 = vpop.eup %4310  ;;  %v3089_v10 = vrot.slane %v3069_v23, 4  ;;  %v2964_v18 = vmul.f32 %v4309_v39, %v6225_v51 }
 0x3c8   : > { %v4313_v20 = vpop.eup %4312  ;;  %3100 = vst [vmem:[#allocation2 + $0x40] sm:$0xf0] %v3088_v29  ;;  %v2959_v26 = vsel %vm2958_vm9, %v6223_v54, %v2957_v5  ;;  %v3013_v36 = vmul.f32 %v4311_v58, %v6227_v22  ;;  %v2769_v5 = vmul.f32 %v6181_v7, %v6181_v7 }
 0x3c9   : > { %3101 = vst [vmem:[#allocation2 + $0x48] sm:$0xf0] %v3089_v10  ;;  %v2966_v44 = vsel %vm2965_vm11, %v6225_v51, %v2964_v18  ;;  %v3020_v52 = vmul.f32 %v4313_v20, %v6229_v32  ;;  %v2962_v17 = vsel %vm2960_vm10, %v2961_v57, %v2959_v26 }
 0x3ca   : > { %v3015_v63 = vsel %vm3014_vm13, %v6227_v22, %v3013_v36  ;;  %v2969_v59 = vsel %vm2967_vm12, %v2968_v28, %v2966_v44 }
 0x3cb   : > { %v3018_v49 = vsel %vm3016_vm14, %v3017_v50, %v3015_v63  ;;  %v3022_v1 = vsel %vm3021_vm15, %v6229_v32, %v3020_v52 }
 0x3cc   : > { %v3076_v12 = vpack.c.bf16 %v3018_v49, %v2962_v17  ;;  %v3025_v25 = vsel %vm3023_vm1, %v3024_v11, %v3022_v1 }
 0x3cd   : > { %v3077_v61 = vpack.c.bf16 %v3025_v25, %v2969_v59 }
 0x3ce   : > { %v3090_v37 = vrot.slane %v3076_v12, 4 }
 0x3cf   : > { %v3092_v22 = vrot.slane %v3077_v61, 4  ;;  %v3180_v8 = vld [vmem:[#allocation2 + $0x40] sm:$0xff] }
 0x3d0   : > { %v3091_v40 = vsel %vm2309_vm0, %v3088_v29, %v3090_v37  ;;  %3104 = vst [vmem:[#allocation2 + $0x60] sm:$0xf] %v3090_v37  ;;  %v3181_v45 = vld [vmem:[#allocation2 + $0x48] sm:$0xff]  ;;  %v2768_v29 = vmul.f32 %v6179_v41, %v6179_v41 }
 0x3d1   : > { %v3093_v54 = vsel %vm2309_vm0, %v3089_v10, %v3092_v22  ;;  %3105 = vst [vmem:[#allocation2 + $0x68] sm:$0xf] %v3092_v22  ;;  %3390 = vmatprep.mubr.bf16.mxu0 %v3181_v45  ;;  %v2777_v10 = vmul.f32 %v6187_v15, %v6187_v15 }
 0x3d2   : > { %3391 = vmatmul.mubr.bf16.gmra.mrb[40].mxu0 %v3180_v8 }
 0x3d3   : > { %3398 = vmatprep.mubr.bf16.mxu0 %v3093_v54 }
 0x3da   : > { %3399 = vmatmul.mubr.bf16.gmra.mrb[44].mxu0 %v3091_v40 }
 0x3ee   : > { %v6262_v32 = vpop.f32.mrb[16].mxu1  ;;  %v2676_v51 = vpop.f32.mrb[16].mxu0 }
 0x3ef   : > { %v2784_v48 = vmul.f32 %v2676_v51, %v2676_v51  ;;  %v6266_v2 = vpop.f32.mrb[17].mxu1  ;;  %v2678_v0 = vpop.f32.mrb[17].mxu0 }
 0x3f0   : > { %v2785_v47 = vmul.f32 %v2678_v0, %v2678_v0  ;;  %v6270_v31 = vpop.f32.mrb[18].mxu1  ;;  %v2680_v4 = vpop.f32.mrb[18].mxu0 }
 0x3f1   : > { %v6272_v46 = vadd.f32 %v2784_v48, %v2752_v19  ;;  %v2792_v16 = vmul.f32 %v2680_v4, %v2680_v4  ;;  %v6274_v14 = vpop.f32.mrb[19].mxu1  ;;  %v2682_v9 = vpop.f32.mrb[19].mxu0 }
 0x3f2   : > { %v6276_v13 = vadd.f32 %v2785_v47, %v2753_v55  ;;  %v2793_v62 = vmul.f32 %v2682_v9, %v2682_v9 }
 0x3f3   : > { %4314 = vrsqrt.f32 %v6272_v46  ;;  %v2824_v6 = vadd.f32 %v2792_v16, %v2760_v38  ;;  %vm2874_vm2 = vcmp.eq.f32.partialorder %v6272_v46, inf  ;;  %vm2876_vm3 = vcmp.eq.f32.partialorder %v6272_v46, 0.0 }
 0x3f4   : > { %4316 = vrsqrt.f32 %v6276_v13  ;;  %v2825_v27 = vadd.f32 %v2793_v62, %v2761_v35  ;;  %v2877_v1 = vand.u32 2147483648, %v6272_v46  ;;  %vm2881_vm4 = vcmp.eq.f32.partialorder %v6276_v13, inf }
 0x3f5   : > { %4318 = vrsqrt.f32 %v2824_v6  ;;  %vm2883_vm5 = vcmp.eq.f32.partialorder %v6276_v13, 0.0  ;;  %v2884_v25 = vand.u32 2147483648, %v6276_v13  ;;  %vm2930_vm6 = vcmp.eq.f32.partialorder %v2824_v6, inf }
 0x3f6   : > { %v2686_v23 = vpop.f32.mrb[20].mxu0  ;;  %v6284_v39 = vpop.f32.mrb[20].mxu1  ;;  %4320 = vrsqrt.f32 %v2825_v27  ;;  %vm2932_vm7 = vcmp.eq.f32.partialorder %v2824_v6, 0.0  ;;  %v2933_v22 = vand.u32 2147483648, %v2824_v6  ;;  %vm2937_vm8 = vcmp.eq.f32.partialorder %v2825_v27, inf }
 0x3f7   : > { %v2688_v30 = vpop.f32.mrb[21].mxu0  ;;  %v6292_v58 = vpop.f32.mrb[21].mxu1  ;;  %v2800_v20 = vmul.f32 %v2686_v23, %v2686_v23  ;;  %vm2939_vm9 = vcmp.eq.f32.partialorder %v2825_v27, 0.0  ;;  %v2940_v54 = vand.u32 2147483648, %v2825_v27 }
 0x3f8   : > { %v2690_v57 = vpop.f32.mrb[22].mxu0  ;;  %v6296_v18 = vpop.f32.mrb[22].mxu1  ;;  %v2801_v26 = vmul.f32 %v2688_v30, %v2688_v30 }
 0x3f9   : > { %v2808_v41 = vmul.f32 %v2690_v57, %v2690_v57  ;;  %v2692_v28 = vpop.f32.mrb[23].mxu0  ;;  %v6298_v36 = vpop.f32.mrb[23].mxu1  ;;  %v6300_v44 = vadd.f32 %v2800_v20, %v2768_v29 }
 0x3fa   : > { %v2809_v7 = vmul.f32 %v2692_v28, %v2692_v28  ;;  %v6302_v53 = vadd.f32 %v2801_v26, %v2769_v5 }
 0x3fb   : > { %v6304_v50 = vadd.f32 %v2808_v41, %v2776_v3  ;;  %4322 = vrsqrt.f32 %v6300_v44  ;;  %vm2986_vm10 = vcmp.eq.f32.partialorder %v6300_v44, inf  ;;  %vm2988_vm11 = vcmp.eq.f32.partialorder %v6300_v44, 0.0 }
 0x3fc   : > { %v6306_v52 = vadd.f32 %v2809_v7, %v2777_v10  ;;  %4324 = vrsqrt.f32 %v6302_v53  ;;  %v2989_v16 = vand.u32 2147483648, %v6300_v44  ;;  %vm2993_vm12 = vcmp.eq.f32.partialorder %v6302_v53, inf }
 0x3fd   : > { %v4315_v15 = vpop.eup %4314  ;;  %4326 = vrsqrt.f32 %v6304_v50  ;;  %vm2995_vm13 = vcmp.eq.f32.partialorder %v6302_v53, 0.0  ;;  %v2996_v38 = vand.u32 2147483648, %v6302_v53  ;;  %vm3042_vm14 = vcmp.eq.f32.partialorder %v6304_v50, inf }
 0x3fe   : > { %v4317_v63 = vpop.eup %4316  ;;  %v2873_v11 = vmul.f32 %v4315_v15, %v6272_v46  ;;  %4328 = vrsqrt.f32 %v6306_v52  ;;  %vm3044_vm15 = vcmp.eq.f32.partialorder %v6304_v50, 0.0  ;;  %vm3049_vm1 = vcmp.eq.f32.partialorder %v6306_v52, inf }
 0x3ff   : > { %v2880_v17 = vmul.f32 %v4317_v63, %v6276_v13  ;;  %v4319_v49 = vpop.eup %4318  ;;  %v3052_v3 = vand.u32 2147483648, %v6306_v52 }
 0x400   : > { %v4321_v59 = vpop.eup %4320  ;;  %v2875_v12 = vsel %vm2874_vm2, %v6272_v46, %v2873_v11  ;;  %v2929_v61 = vmul.f32 %v4319_v49, %v2824_v6  ;;  %vm3051_vm2 = vcmp.eq.f32.partialorder %v6306_v52, 0.0 }
 0x401   : > { %v2882_v37 = vsel %vm2881_vm4, %v6276_v13, %v2880_v17  ;;  %v2936_v40 = vmul.f32 %v4321_v59, %v2825_v27  ;;  %v2878_v8 = vsel %vm2876_vm3, %v2877_v1, %v2875_v12  ;;  %vm3463_vm3 = vcmask 130048  }
 0x402   : > { %v2931_v45 = vsel %vm2930_vm6, %v2824_v6, %v2929_v61  ;;  %v2885_v48 = vsel %vm2883_vm5, %v2884_v25, %v2882_v37 }
 0x403   : > { %v2934_v51 = vsel %vm2932_vm7, %v2933_v22, %v2931_v45  ;;  %v2938_v19 = vsel %vm2937_vm8, %v2825_v27, %v2936_v40  ;;  %v3045_v27 = vand.u32 2147483648, %v6304_v50 }
 0x404   : > { %v3072_v0 = vpack.c.bf16 %v2934_v51, %v2878_v8  ;;  %v2941_v55 = vsel %vm2939_vm9, %v2940_v54, %v2938_v19 }
 0x405   : > { %v4323_v47 = vpop.eup %4322  ;;  %v3073_v4 = vpack.c.bf16 %v2941_v55, %v2885_v48 }
 0x406   : > { %v4325_v46 = vpop.eup %4324  ;;  %v3132_v9 = vrot.slane %v3072_v0, 4  ;;  %v2985_v62 = vmul.f32 %v4323_v47, %v6300_v44 }
 0x407   : > { %v4327_v13 = vpop.eup %4326  ;;  %v3133_v35 = vrot.slane %v3073_v4, 4  ;;  %v2992_v6 = vmul.f32 %v4325_v46, %v6302_v53 }
 0x408   : > { %v4329_v23 = vpop.eup %4328  ;;  %3144 = vst [vmem:[#allocation2 + $0x80] sm:$0xf0] %v3132_v9  ;;  %v2987_v29 = vsel %vm2986_vm10, %v6300_v44, %v2985_v62  ;;  %v3041_v5 = vmul.f32 %v4327_v13, %v6304_v50 }
 0x409   : > { %3145 = vst [vmem:[#allocation2 + $0x88] sm:$0xf0] %v3133_v35  ;;  %v2990_v30 = vsel %vm2988_vm11, %v2989_v16, %v2987_v29  ;;  %v2994_v10 = vsel %vm2993_vm12, %v6302_v53, %v2992_v6  ;;  %v3048_v57 = vmul.f32 %v4329_v23, %v6306_v52 }
 0x40a   : > { %v2997_v20 = vsel %vm2995_vm13, %v2996_v38, %v2994_v10  ;;  %v3043_v26 = vsel %vm3042_vm14, %v6304_v50, %v3041_v5 }
 0x40b   : > { %v3046_v41 = vsel %vm3044_vm15, %v3045_v27, %v3043_v26  ;;  %v3050_v28 = vsel %vm3049_vm1, %v6306_v52, %v3048_v57  ;;  %v2751_v57 = vmul.f32 %v6209_v33, %v6209_v33 }
 0x40c   : > { %v3080_v7 = vpack.c.bf16 %v3046_v41, %v2990_v30  ;;  %v3053_v44 = vsel %vm3051_vm2, %v3052_v3, %v3050_v28  ;;  %v2750_v3 = vmul.f32 %v6207_v21, %v6207_v21 }
 0x40d   : > { %v3081_v15 = vpack.c.bf16 %v3053_v44, %v2997_v20 }
 0x40e   : > { %v3134_v63 = vrot.slane %v3080_v7, 4 }
 0x40f   : > { %v3136_v11 = vrot.slane %v3081_v15, 4 }
 0x410   : > { %v6357_v17 = vsel %vm2309_vm0, %v3132_v9, %v3134_v63  ;;  %3148 = vst [vmem:[#allocation2 + $0xa0] sm:$0xf] %v3134_v63  ;;  %v4075_v53 = vpop.f32.mrb[24].mxu0  ;;  %v2758_v63 = vmul.f32 %v6211_v43, %v6211_v43  ;;  %v2774_v43 = vmul.f32 %v6219_v60, %v6219_v60 }
 0x411   : > { %v6360_v49 = vsel %vm2309_vm0, %v3133_v35, %v3136_v11  ;;  %3149 = vst [vmem:[#allocation2 + $0xa8] sm:$0xf] %v3136_v11  ;;  %v4076_v1 = vpop.f32.mrb[25].mxu0  ;;  %v2759_v11 = vmul.f32 %v6213_v24, %v6213_v24 }
 0x412   : > { %v4077_v50 = vadd.f32 %v4076_v1, %v4075_v53  ;;  %v4078_v59 = vpop.f32.mrb[26].mxu0 }
 0x413   : > { %v4079_v12 = vpop.f32.mrb[27].mxu0 }
 0x414   : > { %v4080_v52 = vadd.f32 %v4079_v12, %v4078_v59  ;;  %v3464_v61 = vsel %vm3463_vm3, %v4077_v50, -inf  ;;  %v2766_v50 = vmul.f32 %v6215_v34, %v6215_v34  ;;  %v2767_v59 = vmul.f32 %v6217_v42, %v6217_v42 }
 0x415   : > { %3465 = vmax.xlane.f32.xlu0 %v3464_v61 }
 0x416   : > { %v3467_v8 = vsel %vm3463_vm3, %v4080_v52, -inf }
 0x418   : > { %v4081_v25 = vpop.f32.mrb[28].mxu0 }
 0x419   : > { %v4082_v37 = vpop.f32.mrb[29].mxu0  ;;  %3468 = vmax.xlane.f32.xlu0 %v3467_v8 }
 0x41a   : > { %v4083_v22 = vadd.f32 %v4082_v37, %v4081_v25  ;;  %v4084_v40 = vpop.f32.mrb[30].mxu0  ;;  %v2775_v37 = vmul.f32 %v6221_v56, %v6221_v56 }
 0x41b   : > { %v4085_v45 = vpop.f32.mrb[31].mxu0 }
 0x41c   : > { %v3470_v54 = vsel %vm3463_vm3, %v4083_v22, -inf  ;;  %v4086_v51 = vadd.f32 %v4085_v45, %v4084_v40 }
 0x41d   : > { %3471 = vmax.xlane.f32.xlu1 %v3470_v54 }
 0x41e   : > { %v3473_v19 = vsel %vm3463_vm3, %v4086_v51, -inf }
 0x420   : > { %v4087_v48 = vpop.f32.mrb[32].mxu0 }
 0x421   : > { %v4088_v0 = vpop.f32.mrb[33].mxu0  ;;  %3474 = vmax.xlane.f32.xlu1 %v3473_v19 }
 0x422   : > { %v4089_v55 = vadd.f32 %v4088_v0, %v4087_v48  ;;  %v4090_v47 = vpop.f32.mrb[34].mxu0 }
 0x423   : > { %v4091_v4 = vpop.f32.mrb[35].mxu0 }
 0x424   : > { %v4092_v16 = vadd.f32 %v4091_v4, %v4090_v47  ;;  %v3476_v46 = vsel %vm3463_vm3, %v4089_v55, -inf }
 0x425   : > { %3477 = vmax.xlane.f32.xlu0 %v3476_v46 }
 0x426   : > { %v3479_v9 = vsel %vm3463_vm3, %v4092_v16, -inf }
 0x427   : > { %3480 = vmax.xlane.f32.xlu1 %v3479_v9 }
 0x428   : > { %v4093_v62 = vpop.f32.mrb[36].mxu0 }
 0x429   : > { %v4094_v38 = vpop.f32.mrb[37].mxu0 }
 0x42a   : > { %v4095_v13 = vadd.f32 %v4094_v38, %v4093_v62  ;;  %v4096_v35 = vpop.f32.mrb[38].mxu0 }
 0x42b   : > { %v4097_v6 = vpop.f32.mrb[39].mxu0 }
 0x42c   : > { %v4098_v27 = vadd.f32 %v4097_v6, %v4096_v35  ;;  %v3482_v23 = vsel %vm3463_vm3, %v4095_v13, -inf }
 0x42d   : > { %3483 = vmax.xlane.f32.xlu0 %v3482_v23 }
 0x42e   : > { %v2623_v29 = vpop.f32.mrb[24].mxu1  ;;  %v3485_v5 = vsel %vm3463_vm3, %v4098_v27, -inf }
 0x42f   : > { %v2782_v30 = vmul.f32 %v2623_v29, %v2623_v29  ;;  %v2625_v10 = vpop.f32.mrb[25].mxu1  ;;  %3486 = vmax.xlane.f32.xlu1 %v3485_v5 }
 0x430   : > { %v2783_v20 = vmul.f32 %v2625_v10, %v2625_v10  ;;  %v2627_v26 = vpop.f32.mrb[26].mxu1 }
 0x431   : > { %v2814_v41 = vadd.f32 %v2782_v30, %v2750_v3  ;;  %v2790_v28 = vmul.f32 %v2627_v26, %v2627_v26  ;;  %v2629_v7 = vpop.f32.mrb[27].mxu1 }
 0x432   : > { %v2815_v44 = vadd.f32 %v2783_v20, %v2751_v57  ;;  %v2791_v15 = vmul.f32 %v2629_v7, %v2629_v7 }
 0x433   : > { %4330 = vrsqrt.f32 %v2814_v41  ;;  %v2822_v21 = vadd.f32 %v2790_v28, %v2758_v63  ;;  %vm2860_vm4 = vcmp.eq.f32.partialorder %v2814_v41, inf  ;;  %vm2862_vm5 = vcmp.eq.f32.partialorder %v2814_v41, 0.0 }
 0x434   : > { %4332 = vrsqrt.f32 %v2815_v44  ;;  %v2823_v53 = vadd.f32 %v2791_v15, %v2759_v11  ;;  %v2863_v19 = vand.u32 2147483648, %v2814_v41  ;;  %vm2867_vm6 = vcmp.eq.f32.partialorder %v2815_v44, inf }
 0x435   : > { %4334 = vrsqrt.f32 %v2822_v21  ;;  %vm2869_vm7 = vcmp.eq.f32.partialorder %v2815_v44, 0.0  ;;  %v2870_v55 = vand.u32 2147483648, %v2815_v44  ;;  %vm2916_vm8 = vcmp.eq.f32.partialorder %v2822_v21, inf }
 0x436   : > { %v2633_v1 = vpop.f32.mrb[28].mxu1  ;;  %4336 = vrsqrt.f32 %v2823_v53  ;;  %v2919_v16 = vand.u32 2147483648, %v2822_v21  ;;  %vm2918_vm9 = vcmp.eq.f32.partialorder %v2822_v21, 0.0  ;;  %vm2923_vm10 = vcmp.eq.f32.partialorder %v2823_v53, inf }
 0x437   : > { %v2635_v33 = vpop.f32.mrb[29].mxu1  ;;  %v2798_v52 = vmul.f32 %v2633_v1, %v2633_v1  ;;  %v2926_v62 = vand.u32 2147483648, %v2823_v53  ;;  %vm2925_vm11 = vcmp.eq.f32.partialorder %v2823_v53, 0.0 }
 0x438   : > { %v2637_v12 = vpop.f32.mrb[30].mxu1  ;;  %v2799_v24 = vmul.f32 %v2635_v33, %v2635_v33 }
 0x439   : > { %v2806_v25 = vmul.f32 %v2637_v12, %v2637_v12  ;;  %v2639_v61 = vpop.f32.mrb[31].mxu1  ;;  %v6386_v40 = vadd.f32 %v2798_v52, %v2766_v50 }
 0x43a   : > { %v2807_v22 = vmul.f32 %v2639_v61, %v2639_v61  ;;  %v6388_v45 = vadd.f32 %v2799_v24, %v2767_v59 }
 0x43b   : > { %v6390_v34 = vadd.f32 %v2806_v25, %v2774_v43  ;;  %4338 = vrsqrt.f32 %v6386_v40  ;;  %vm2972_vm12 = vcmp.eq.f32.partialorder %v6386_v40, inf  ;;  %vm2974_vm13 = vcmp.eq.f32.partialorder %v6386_v40, 0.0 }
 0x43c   : > { %v6392_v42 = vadd.f32 %v2807_v22, %v2775_v37  ;;  %4340 = vrsqrt.f32 %v6388_v45  ;;  %v2975_v26 = vand.u32 2147483648, %v6386_v40  ;;  %vm2979_vm14 = vcmp.eq.f32.partialorder %v6388_v45, inf }
 0x43d   : > { %v4331_v54 = vpop.eup %4330  ;;  %4342 = vrsqrt.f32 %v6390_v34  ;;  %vm2981_vm15 = vcmp.eq.f32.partialorder %v6388_v45, 0.0  ;;  %vm3028_vm1 = vcmp.eq.f32.partialorder %v6390_v34, inf  ;;  %v3031_v11 = vand.u32 2147483648, %v6390_v34 }
 0x43e   : > { %v4333_v60 = vpop.eup %4332  ;;  %v2859_v8 = vmul.f32 %v4331_v54, %v2814_v41  ;;  %4344 = vrsqrt.f32 %v6392_v42  ;;  %vm3030_vm2 = vcmp.eq.f32.partialorder %v6390_v34, 0.0  ;;  %v3038_v1 = vand.u32 2147483648, %v6392_v42 }
 0x43f   : > { %v2866_v51 = vmul.f32 %v4333_v60, %v2815_v44  ;;  %v4335_v56 = vpop.eup %4334  ;;  %v2754_v60 = vmul.f32 %v6262_v32, %v6262_v32 }
 0x440   : > { %v4337_v48 = vpop.eup %4336  ;;  %v2861_v0 = vsel %vm2860_vm4, %v2814_v41, %v2859_v8  ;;  %v2915_v47 = vmul.f32 %v4335_v56, %v2822_v21  ;;  %vm3035_vm4 = vcmp.eq.f32.partialorder %v6392_v42, inf  ;;  %v2755_v56 = vmul.f32 %v6266_v2, %v6266_v2 }
 0x441   : > { %v2868_v4 = vsel %vm2867_vm6, %v2815_v44, %v2866_v51  ;;  %v2922_v46 = vmul.f32 %v4337_v48, %v2823_v53  ;;  %v2864_v38 = vsel %vm2862_vm5, %v2863_v19, %v2861_v0  ;;  %v2982_v44 = vand.u32 2147483648, %v6388_v45 }
 0x442   : > { %v2917_v9 = vsel %vm2916_vm8, %v2822_v21, %v2915_v47  ;;  %v2871_v6 = vsel %vm2869_vm7, %v2870_v55, %v2868_v4  ;;  %vm3037_vm5 = vcmp.eq.f32.partialorder %v6392_v42, 0.0 }
 0x443   : > { %v2920_v13 = vsel %vm2918_vm9, %v2919_v16, %v2917_v9  ;;  %v2924_v35 = vsel %vm2923_vm10, %v2823_v53, %v2922_v46 }
 0x444   : > { %v3070_v27 = vpack.c.bf16 %v2920_v13, %v2864_v38  ;;  %v2927_v23 = vsel %vm2925_vm11, %v2926_v62, %v2924_v35  ;;  %v2770_v62 = vmul.f32 %v6284_v39, %v6284_v39  ;;  %v2771_v38 = vmul.f32 %v6292_v58, %v6292_v58 }
 0x445   : > { %v4339_v29 = vpop.eup %4338  ;;  %v3071_v5 = vpack.c.bf16 %v2927_v23, %v2871_v6  ;;  %v2779_v23 = vmul.f32 %v6298_v36, %v6298_v36 }
 0x446   : > { %v4341_v3 = vpop.eup %4340  ;;  %v3110_v30 = vrot.slane %v3070_v27, 4  ;;  %v2971_v10 = vmul.f32 %v4339_v29, %v6386_v40 }
 0x447   : > { %v4343_v57 = vpop.eup %4342  ;;  %v3111_v20 = vrot.slane %v3071_v5, 4  ;;  %v2978_v41 = vmul.f32 %v4341_v3, %v6388_v45 }
 0x448   : > { %v4345_v28 = vpop.eup %4344  ;;  %3122 = vst [vmem:[#allocation2 + $0x60] sm:$0xf0] %v3110_v30  ;;  %v2973_v7 = vsel %vm2972_vm12, %v6386_v40, %v2971_v10  ;;  %v3027_v15 = vmul.f32 %v4343_v57, %v6390_v34 }
 0x449   : > { %3123 = vst [vmem:[#allocation2 + $0x68] sm:$0xf0] %v3111_v20  ;;  %v2980_v63 = vsel %vm2979_vm14, %v6388_v45, %v2978_v41  ;;  %v3034_v21 = vmul.f32 %v4345_v28, %v6392_v42  ;;  %v2976_v33 = vsel %vm2974_vm13, %v2975_v26, %v2973_v7 }
 0x44a   : > { %v3029_v53 = vsel %vm3028_vm1, %v6390_v34, %v3027_v15  ;;  %v2983_v12 = vsel %vm2981_vm15, %v2982_v44, %v2980_v63 }
 0x44b   : > { %v3032_v50 = vsel %vm3030_vm2, %v3031_v11, %v3029_v53  ;;  %v3036_v59 = vsel %vm3035_vm4, %v6392_v42, %v3034_v21 }
 0x44c   : > { %v3078_v43 = vpack.c.bf16 %v3032_v50, %v2976_v33  ;;  %v3039_v52 = vsel %vm3037_vm5, %v3038_v1, %v3036_v59 }
 0x44d   : > { %v3079_v24 = vpack.c.bf16 %v3039_v52, %v2983_v12 }
 0x44e   : > { %v3112_v25 = vrot.slane %v3078_v43, 4 }
 0x44f   : > { %v3114_v61 = vrot.slane %v3079_v24, 4  ;;  %v3184_v34 = vld [vmem:[#allocation2 + $0x60] sm:$0xff] }
 0x450   : > { %v3113_v37 = vsel %vm2309_vm0, %v3110_v30, %v3112_v25  ;;  %3126 = vst [vmem:[#allocation2 + $0x80] sm:$0xf] %v3112_v25  ;;  %v3185_v22 = vld [vmem:[#allocation2 + $0x68] sm:$0xff] }
 0x451   : > { %v3115_v40 = vsel %vm2309_vm0, %v3111_v20, %v3114_v61  ;;  %3127 = vst [vmem:[#allocation2 + $0x88] sm:$0xf] %v3114_v61  ;;  %3406 = vmatprep.mubr.bf16.mxu0 %v3185_v22 }
 0x452   : > { %3407 = vmatmul.mubr.bf16.gmra.mrb[48].mxu0 %v3184_v34 }
 0x453   : > { %3414 = vmatprep.mubr.bf16.mxu0 %v3115_v40 }
 0x457   : > { %v3188_v45 = vld [vmem:[#allocation2 + $0x80] sm:$0xff] }
 0x458   : > { %v3189_v42 = vld [vmem:[#allocation2 + $0x88] sm:$0xff] }
 0x45a   : > { %3415 = vmatmul.mubr.bf16.gmra.mrb[52].mxu0 %v3113_v37 }
 0x45b   : > { %3422 = vmatprep.mubr.bf16.mxu0 %v3189_v42 }
 0x462   : > { %3423 = vmatmul.mubr.bf16.gmra.mrb[56].mxu0 %v3188_v45 }
 0x463   : > { %3430 = vmatprep.mubr.bf16.mxu0 %v6360_v49  ;;  %v2762_v49 = vmul.f32 %v6270_v31, %v6270_v31  ;;  %v2778_v31 = vmul.f32 %v6296_v18, %v6296_v18 }
 0x46a   : > { %3431 = vmatmul.mubr.bf16.gmra.mrb[60].mxu0 %v6357_v17  ;;  %v2763_v17 = vmul.f32 %v6274_v14, %v6274_v14 }
 0x46e   : > { %v2729_v54 = vpop.f32.mrb[32].mxu1 }
 0x46f   : > { %v2786_v8 = vmul.f32 %v2729_v54, %v2729_v54  ;;  %v2731_v51 = vpop.f32.mrb[33].mxu1 }
 0x470   : > { %v2787_v19 = vmul.f32 %v2731_v51, %v2731_v51  ;;  %v2733_v48 = vpop.f32.mrb[34].mxu1 }
 0x471   : > { %v2818_v0 = vadd.f32 %v2786_v8, %v2754_v60  ;;  %v2794_v55 = vmul.f32 %v2733_v48, %v2733_v48  ;;  %v2735_v47 = vpop.f32.mrb[35].mxu1 }
 0x472   : > { %v2819_v4 = vadd.f32 %v2787_v19, %v2755_v56  ;;  %v2795_v16 = vmul.f32 %v2735_v47, %v2735_v47 }
 0x473   : > { %4346 = vrsqrt.f32 %v2818_v0  ;;  %v2826_v32 = vadd.f32 %v2794_v55, %v2762_v49  ;;  %vm2888_vm6 = vcmp.eq.f32.partialorder %v2818_v0, inf  ;;  %vm2890_vm7 = vcmp.eq.f32.partialorder %v2818_v0, 0.0 }
 0x474   : > { %4348 = vrsqrt.f32 %v2819_v4  ;;  %v2827_v46 = vadd.f32 %v2795_v16, %v2763_v17  ;;  %v2891_v20 = vand.u32 2147483648, %v2818_v0  ;;  %vm2895_vm8 = vcmp.eq.f32.partialorder %v2819_v4, inf }
 0x475   : > { %4350 = vrsqrt.f32 %v2826_v32  ;;  %vm2897_vm9 = vcmp.eq.f32.partialorder %v2819_v4, 0.0  ;;  %v2898_v28 = vand.u32 2147483648, %v2819_v4  ;;  %vm2944_vm10 = vcmp.eq.f32.partialorder %v2826_v32, inf }
 0x476   : > { %v2739_v9 = vpop.f32.mrb[36].mxu1  ;;  %4352 = vrsqrt.f32 %v2827_v46  ;;  %v2947_v15 = vand.u32 2147483648, %v2826_v32  ;;  %vm2946_vm11 = vcmp.eq.f32.partialorder %v2826_v32, 0.0  ;;  %vm2951_vm12 = vcmp.eq.f32.partialorder %v2827_v46, inf }
 0x477   : > { %v2741_v2 = vpop.f32.mrb[37].mxu1  ;;  %v2802_v35 = vmul.f32 %v2739_v9, %v2739_v9  ;;  %v2954_v21 = vand.u32 2147483648, %v2827_v46  ;;  %vm2953_vm13 = vcmp.eq.f32.partialorder %v2827_v46, 0.0 }
 0x478   : > { %v2743_v13 = vpop.f32.mrb[38].mxu1  ;;  %v2803_v14 = vmul.f32 %v2741_v2, %v2741_v2 }
 0x479   : > { %v2810_v6 = vmul.f32 %v2743_v13, %v2743_v13  ;;  %v2745_v27 = vpop.f32.mrb[39].mxu1  ;;  %v6443_v5 = vadd.f32 %v2802_v35, %v2770_v62 }
 0x47a   : > { %v2811_v29 = vmul.f32 %v2745_v27, %v2745_v27  ;;  %v6445_v3 = vadd.f32 %v2803_v14, %v2771_v38 }
 0x47b   : > { %v6447_v39 = vadd.f32 %v2810_v6, %v2778_v31  ;;  %4354 = vrsqrt.f32 %v6443_v5  ;;  %vm3000_vm14 = vcmp.eq.f32.partialorder %v6443_v5, inf  ;;  %vm3002_vm15 = vcmp.eq.f32.partialorder %v6443_v5, 0.0  ;;  %v3543_v6 = vld [vmem:[%s6636_s4] sm:$0xff] }
 0x47c   : > { %v6449_v58 = vadd.f32 %v2811_v29, %v2779_v23  ;;  %4356 = vrsqrt.f32 %v6445_v3  ;;  %v3003_v40 = vand.u32 2147483648, %v6443_v5  ;;  %vm3007_vm1 = vcmp.eq.f32.partialorder %v6445_v3, inf }
 0x47d   : > { %v4347_v30 = vpop.eup %4346  ;;  %4358 = vrsqrt.f32 %v6447_v39  ;;  %vm3009_vm2 = vcmp.eq.f32.partialorder %v6445_v3, 0.0  ;;  %v3010_v54 = vand.u32 2147483648, %v6445_v3  ;;  %vm3056_vm4 = vcmp.eq.f32.partialorder %v6447_v39, inf }
 0x47e   : > { %v4349_v18 = vpop.eup %4348  ;;  %v2887_v10 = vmul.f32 %v4347_v30, %v2818_v0  ;;  %4360 = vrsqrt.f32 %v6449_v58  ;;  %v3059_v51 = vand.u32 2147483648, %v6447_v39  ;;  %vm3058_vm5 = vcmp.eq.f32.partialorder %v6447_v39, 0.0  ;;  %v3545_v30 = vld [vmem:[%s6636_s4 + $0x10] sm:$0xff] }
 0x47f   : > { %v2894_v57 = vmul.f32 %v4349_v18, %v2819_v4  ;;  %v4351_v36 = vpop.eup %4350  ;;  %v3066_v48 = vand.u32 2147483648, %v6449_v58 }
 0x480   : > { %v4353_v26 = vpop.eup %4352  ;;  %v2889_v41 = vsel %vm2888_vm6, %v2818_v0, %v2887_v10  ;;  %v2943_v7 = vmul.f32 %v4351_v36, %v2826_v32  ;;  %vm3063_vm6 = vcmp.eq.f32.partialorder %v6449_v58, inf  ;;  %v3544_v10 = vld [vmem:[%s6636_s4 + $0x8] sm:$0xff] }
 0x481   : > { %v2896_v44 = vsel %vm2895_vm8, %v2819_v4, %v2894_v57  ;;  %v2950_v63 = vmul.f32 %v4353_v26, %v2827_v46  ;;  %v2892_v53 = vsel %vm2890_vm7, %v2891_v20, %v2889_v41  ;;  %vm3065_vm7 = vcmp.eq.f32.partialorder %v6449_v58, 0.0 }
 0x482   : > { %v2945_v11 = vsel %vm2944_vm10, %v2826_v32, %v2943_v7  ;;  %v2899_v50 = vsel %vm2897_vm9, %v2898_v28, %v2896_v44  ;;  %v3546_v28 = vld [vmem:[%s6636_s4 + $0x18] sm:$0xff]  ;;  %v4525_v44 = vmov 0.0|0.0  }
 0x483   : > { %v2948_v1 = vsel %vm2946_vm11, %v2947_v15, %v2945_v11  ;;  %v2952_v33 = vsel %vm2951_vm12, %v2827_v46, %v2950_v63  ;;  %4153 = vmatprep.subr.bf16.mxu0 %v4525_v44 }
 0x484   : > { %v3074_v59 = vpack.c.bf16 %v2948_v1, %v2892_v53  ;;  %v2955_v12 = vsel %vm2953_vm13, %v2954_v21, %v2952_v33  ;;  %v3547_v1 = vld [vmem:[%s6636_s4 + $0x20] sm:$0xff] }
 0x485   : > { %v4355_v43 = vpop.eup %4354  ;;  %v3075_v52 = vpack.c.bf16 %v2955_v12, %v2899_v50 }
 0x486   : > { %v4357_v24 = vpop.eup %4356  ;;  %v3154_v25 = vrot.slane %v3074_v59, 4  ;;  %v2999_v61 = vmul.f32 %v4355_v43, %v6443_v5 }
 0x487   : > { %v4359_v37 = vpop.eup %4358  ;;  %v3155_v22 = vrot.slane %v3075_v52, 4  ;;  %v3006_v34 = vmul.f32 %v4357_v24, %v6445_v3  ;;  %v3548_v24 = vld [vmem:[%s6636_s4 + $0x28] sm:$0xff] }
 0x488   : > { %v4361_v42 = vpop.eup %4360  ;;  %3166 = vst [vmem:[#allocation2 + $0xa0] sm:$0xf0] %v3154_v25  ;;  %v3001_v45 = vsel %vm3000_vm14, %v6443_v5, %v2999_v61  ;;  %v3055_v60 = vmul.f32 %v4359_v37, %v6447_v39 }
 0x489   : > { %3167 = vst [vmem:[#allocation2 + $0xa8] sm:$0xf0] %v3155_v22  ;;  %v3008_v8 = vsel %vm3007_vm1, %v6445_v3, %v3006_v34  ;;  %v3062_v56 = vmul.f32 %v4361_v42, %v6449_v58  ;;  %v3004_v0 = vsel %vm3002_vm15, %v3003_v40, %v3001_v45  ;;  %v3549_v40 = vld [vmem:[%s6636_s4 + $0x30] sm:$0xff]  ;;  %v3550_v42 = vld [vmem:[%s6636_s4 + $0x38] sm:$0xff] }
 0x48a   : > { %v3057_v19 = vsel %vm3056_vm4, %v6447_v39, %v3055_v60  ;;  %v3011_v4 = vsel %vm3009_vm2, %v3010_v54, %v3008_v8 }
 0x48b   : > { %v3060_v55 = vsel %vm3058_vm5, %v3059_v51, %v3057_v19  ;;  %v3064_v47 = vsel %vm3063_vm6, %v6449_v58, %v3062_v56 }
 0x48c   : > { %v3082_v16 = vpack.c.bf16 %v3060_v55, %v3004_v0  ;;  %v3067_v49 = vsel %vm3065_vm7, %v3066_v48, %v3064_v47 }
 0x48d   : > { %v3083_v17 = vpack.c.bf16 %v3067_v49, %v3011_v4 }
 0x48e   : > { %v3156_v32 = vrot.slane %v3082_v16, 4 }
 0x48f   : > { %v3158_v46 = vrot.slane %v3083_v17, 4  ;;  %v3192_v38 = vld [vmem:[#allocation2 + $0xa0] sm:$0xff] }
 0x490   : > { %v3157_v9 = vsel %vm2309_vm0, %v3154_v25, %v3156_v32  ;;  %3170 = vst [vmem:[#allocation2 + $0xc0] sm:$0xf] %v3156_v32  ;;  %v3193_v2 = vld [vmem:[#allocation2 + $0xa8] sm:$0xff] }
 0x491   : > { %v3159_v62 = vsel %vm2309_vm0, %v3155_v22, %v3158_v46  ;;  %3171 = vst [vmem:[#allocation2 + $0xc8] sm:$0xf] %v3158_v46  ;;  %3438 = vmatprep.mubr.bf16.mxu0 %v3193_v2  ;;  %vm3612_vm0 = vcmask 654336  }
 0x492   : > { %3439 = vmatmul.mubr.bf16.gmra.mrb[64].mxu0 %v3192_v38 }
 0x493   : > { %3446 = vmatprep.mubr.bf16.mxu0 %v3159_v62 }
 0x497   : > { %v3196_v31 = vld [vmem:[#allocation2 + $0xc0] sm:$0xff] }
 0x498   : > { %v3197_v13 = vld [vmem:[#allocation2 + $0xc8] sm:$0xff] }
 0x49a   : > { %3447 = vmatmul.mubr.bf16.gmra.mrb[68].mxu0 %v3157_v9 }
 0x49b   : > { %3454 = vmatprep.mubr.bf16.mxu0 %v3197_v13 }
 0x4a2   : > { %3455 = vmatmul.mubr.bf16.gmra.mrb[72].mxu0 %v3196_v31  ;;  %v3466_v35 = vpop.xlane.xlu0 %3465 }
 0x4a3   : > { %v3569_v3 = vmul.f32 %v3543_v6, %v3466_v35  ;;  %v3551_v35 = vld [vmem:[%s6636_s4 + $0x40] sm:$0xff] }
 0x4a5   : > { %v4099_v14 = vpop.f32.mrb[40].mxu0 }
 0x4a6   : > { %v4100_v27 = vpop.f32.mrb[41].mxu0  ;;  %v3469_v57 = vpop.xlane.xlu0 %3468 }
 0x4a7   : > { %v4101_v23 = vadd.f32 %v4100_v27, %v4099_v14  ;;  %v4102_v29 = vpop.f32.mrb[42].mxu0  ;;  %v3570_v36 = vmul.f32 %v3544_v10, %v3469_v57  ;;  %v3552_v27 = vld [vmem:[%s6636_s4 + $0x48] sm:$0xff] }
 0x4a8   : > { %v4103_v5 = vpop.f32.mrb[43].mxu0 }
 0x4a9   : > { %v4104_v39 = vadd.f32 %v4103_v5, %v4102_v29  ;;  %v3488_v58 = vsel %vm3463_vm3, %v4101_v23, -inf  ;;  %v4154_v41 = vpack.c.bf16 %v3570_v36, %v3569_v3 }
 0x4aa   : > { %v3472_v18 = vpop.xlane.xlu1 %3471  ;;  %3489 = vmax.xlane.f32.xlu0 %v3488_v58 }
 0x4ab   : > { %v3491_v20 = vsel %vm3463_vm3, %v4104_v39, -inf  ;;  %v3571_v26 = vmul.f32 %v3545_v30, %v3472_v18  ;;  %4155 = vmatpush1.bf16.msra.mxu0 %v4154_v41 }
 0x4ac   : > { %3492 = vmax.xlane.f32.xlu1 %v3491_v20  ;;  %4156 = vmatprep.subr.bf16.mxu0 %v4525_v44 }
 0x4ad   : > { %v4105_v7 = vpop.f32.mrb[44].mxu0 }
 0x4ae   : > { %v3475_v15 = vpop.xlane.xlu1 %3474  ;;  %v4106_v63 = vpop.f32.mrb[45].mxu0 }
 0x4af   : > { %v3572_v11 = vmul.f32 %v3546_v28, %v3475_v15  ;;  %v4107_v21 = vadd.f32 %v4106_v63, %v4105_v7  ;;  %v4108_v53 = vpop.f32.mrb[46].mxu0  ;;  %v3554_v28 = vld [vmem:[%s6636_s4 + $0x58] sm:$0xff] }
 0x4b0   : > { %v4109_v33 = vpop.f32.mrb[47].mxu0 }
 0x4b1   : > { %v4157_v50 = vpack.c.bf16 %v3572_v11, %v3571_v26  ;;  %v4110_v12 = vadd.f32 %v4109_v33, %v4108_v53  ;;  %v3494_v43 = vsel %vm3463_vm3, %v4107_v21, -inf  ;;  %v3553_v26 = vld [vmem:[%s6636_s4 + $0x50] sm:$0xff] }
 0x4b2   : > { %v3478_v59 = vpop.xlane.xlu0 %3477  ;;  %3495 = vmax.xlane.f32.xlu0 %v3494_v43 }
 0x4b3   : > { %v3573_v52 = vmul.f32 %v3547_v1, %v3478_v59  ;;  %4158 = vmatpush1.bf16.msra.mxu0 %v4157_v50  ;;  %v3497_v61 = vsel %vm3463_vm3, %v4110_v12, -inf }
 0x4b4   : > { %v3481_v25 = vpop.xlane.xlu1 %3480  ;;  %4159 = vmatprep.subr.bf16.mxu0 %v4525_v44  ;;  %3498 = vmax.xlane.f32.xlu1 %v3497_v61 }
 0x4b5   : > { %v3574_v37 = vmul.f32 %v3548_v24, %v3481_v25 }
 0x4b7   : > { %v4160_v22 = vpack.c.bf16 %v3574_v37, %v3573_v52 }
 0x4b9   : > { %4161 = vmatpush1.bf16.msra.mxu0 %v4160_v22 }
 0x4ba   : > { %v3484_v34 = vpop.xlane.xlu0 %3483  ;;  %4162 = vmatprep.subr.bf16.mxu0 %v4525_v44 }
 0x4bb   : > { %v3575_v45 = vmul.f32 %v3549_v40, %v3484_v34 }
 0x4bc   : > { %v3487_v54 = vpop.xlane.xlu1 %3486 }
 0x4bd   : > { %v3576_v60 = vmul.f32 %v3550_v42, %v3487_v54 }
 0x4bf   : > { %v4163_v8 = vpack.c.bf16 %v3576_v60, %v3575_v45 }
 0x4c1   : > { %4164 = vmatpush1.bf16.msra.mxu0 %v4163_v8 }
 0x4c2   : > { %4165 = vmatprep.subr.bf16.mxu0 %v4525_v44 }
 0x525   : > { %v4111_v51 = vpop.f32.mrb[48].mxu0 }
 0x526   : > { %v4112_v56 = vpop.f32.mrb[49].mxu0 }
 0x527   : > { %v4113_v19 = vadd.f32 %v4112_v56, %v4111_v51  ;;  %v4114_v48 = vpop.f32.mrb[50].mxu0 }
 0x528   : > { %v4115_v0 = vpop.f32.mrb[51].mxu0 }
 0x529   : > { %v4116_v55 = vadd.f32 %v4115_v0, %v4114_v48  ;;  %v3500_v47 = vsel %vm3463_vm3, %v4113_v19, -inf }
 0x52a   : > { %3501 = vmax.xlane.f32.xlu0 %v3500_v47 }
 0x52b   : > { %v3503_v4 = vsel %vm3463_vm3, %v4116_v55, -inf }
 0x52c   : > { %3504 = vmax.xlane.f32.xlu1 %v3503_v4  ;;  %v6543_v4 = vld.sshfl [vmem:[#allocation6] sm:$0x33 pattern:$0x76325410] }
 0x52d   : > { %v4117_v16 = vpop.f32.mrb[52].mxu0 }
 0x52e   : > { %v4118_v49 = vpop.f32.mrb[53].mxu0 }
 0x52f   : > { %v4119_v17 = vadd.f32 %v4118_v49, %v4117_v16  ;;  %v4120_v32 = vpop.f32.mrb[54].mxu0  ;;  %v3610_v16 = vcombine.high %v6543_v4, %v6543_v4  ;;  %v3555_v49 = vld [vmem:[%s6636_s4 + $0x60] sm:$0xff] }
 0x530   : > { %v4121_v46 = vpop.f32.mrb[55].mxu0 }
 0x531   : > { %v4122_v9 = vadd.f32 %v4121_v46, %v4120_v32  ;;  %v3506_v2 = vsel %vm3463_vm3, %v4119_v17, -inf  ;;  %4053 = vmatprep.mubr.msk.f32.mxu0 %vm3612_vm0, %v3610_v16  ;;  %v3556_v32 = vld [vmem:[%s6636_s4 + $0x68] sm:$0xff] }
 0x532   : > { %3507 = vmax.xlane.f32.xlu0 %v3506_v2 }
 0x533   : > { %v3509_v62 = vsel %vm3463_vm3, %v4122_v9, -inf }
 0x534   : > { %3510 = vmax.xlane.f32.xlu1 %v3509_v62 }
 0x535   : > { %v4123_v38 = vpop.f32.mrb[56].mxu0 }
 0x536   : > { %v4124_v13 = vpop.f32.mrb[57].mxu0 }
 0x537   : > { %v4125_v31 = vadd.f32 %v4124_v13, %v4123_v38  ;;  %v3490_v14 = vpop.xlane.xlu0 %3489  ;;  %v4126_v6 = vpop.f32.mrb[58].mxu0  ;;  %v3557_v38 = vld [vmem:[%s6636_s4 + $0x70] sm:$0xff] }
 0x538   : > { %v4127_v23 = vpop.f32.mrb[59].mxu0  ;;  %v3577_v39 = vmul.f32 %v3551_v35, %v3490_v14 }
 0x539   : > { %v4128_v29 = vadd.f32 %v4127_v23, %v4126_v6  ;;  %v3493_v5 = vpop.xlane.xlu1 %3492  ;;  %v3512_v3 = vsel %vm3463_vm3, %v4125_v31, -inf  ;;  %v3558_v31 = vld [vmem:[%s6636_s4 + $0x78] sm:$0xff]  ;;  %v3559_v23 = vld [vmem:[%s6636_s4 + $0x80] sm:$0xff] }
 0x53a   : > { %v3578_v58 = vmul.f32 %v3552_v27, %v3493_v5  ;;  %3513 = vmax.xlane.f32.xlu0 %v3512_v3  ;;  %v3560_v5 = vld [vmem:[%s6636_s4 + $0x88] sm:$0xff] }
 0x53b   : > { %v3515_v30 = vsel %vm3463_vm3, %v4128_v29, -inf }
 0x53c   : > { %v4166_v18 = vpack.c.bf16 %v3578_v58, %v3577_v39  ;;  %3516 = vmax.xlane.f32.xlu1 %v3515_v30 }
 0x53d   : > { %v4129_v10 = vpop.f32.mrb[60].mxu0 }
 0x53e   : > { %4167 = vmatpush1.bf16.msra.mxu0 %v4166_v18  ;;  %v4130_v57 = vpop.f32.mrb[61].mxu0  ;;  %v3561_v18 = vld [vmem:[%s6636_s4 + $0x90] sm:$0xff] }
 0x53f   : > { %v4131_v36 = vadd.f32 %v4130_v57, %v4129_v10  ;;  %v4132_v20 = vpop.f32.mrb[62].mxu0  ;;  %v3496_v41 = vpop.xlane.xlu0 %3495  ;;  %4168 = vmatprep.subr.bf16.mxu0 %v4525_v44  ;;  %v3562_v57 = vld [vmem:[%s6636_s4 + $0x98] sm:$0xff] }
 0x540   : > { %v4133_v7 = vpop.f32.mrb[63].mxu0  ;;  %v3579_v21 = vmul.f32 %v3553_v26, %v3496_v41 }
 0x541   : > { %v4134_v15 = vadd.f32 %v4133_v7, %v4132_v20  ;;  %v3499_v63 = vpop.xlane.xlu1 %3498  ;;  %v3518_v11 = vsel %vm3463_vm3, %v4131_v36, -inf }
 0x542   : > { %v3580_v53 = vmul.f32 %v3554_v28, %v3499_v63  ;;  %3519 = vmax.xlane.f32.xlu0 %v3518_v11  ;;  %v3563_v28 = vld [vmem:[%s6636_s4 + $0xa0] sm:$0xff] }
 0x543   : > { %v3521_v1 = vsel %vm3463_vm3, %v4134_v15, -inf  ;;  %v3564_v15 = vld [vmem:[%s6636_s4 + $0xa8] sm:$0xff] }
 0x544   : > { %v4169_v33 = vpack.c.bf16 %v3580_v53, %v3579_v21  ;;  %3522 = vmax.xlane.f32.xlu1 %v3521_v1  ;;  %v3565_v1 = vld [vmem:[%s6636_s4 + $0xb0] sm:$0xff] }
 0x546   : > { %4170 = vmatpush1.bf16.msra.mxu0 %v4169_v33 }
 0x547   : > { %4171 = vmatprep.subr.bf16.mxu0 %v4525_v44 }
 0x565   : > { %v4135_v50 = vpop.f32.mrb[64].mxu0 }
 0x566   : > { %v4136_v59 = vpop.f32.mrb[65].mxu0 }
 0x567   : > { %v4137_v12 = vadd.f32 %v4136_v59, %v4135_v50  ;;  %v4138_v43 = vpop.f32.mrb[66].mxu0  ;;  %v3566_v50 = vld [vmem:[%s6636_s4 + $0xb8] sm:$0xff] }
 0x568   : > { %v4139_v52 = vpop.f32.mrb[67].mxu0 }
 0x569   : > { %v4140_v24 = vadd.f32 %v4139_v52, %v4138_v43  ;;  %v3524_v25 = vsel %vm3463_vm3, %v4137_v12, -inf }
 0x56a   : > { %3525 = vmax.xlane.f32.xlu0 %v3524_v25 }
 0x56b   : > { %v3527_v61 = vsel %vm3463_vm3, %v4140_v24, -inf  ;;  %v3567_v24 = vld [vmem:[%s6636_s4 + $0xc0] sm:$0xff] }
 0x56c   : > { %3528 = vmax.xlane.f32.xlu1 %v3527_v61  ;;  %v3568_v61 = vld [vmem:[%s6636_s4 + $0xc8] sm:$0xff] }
 0x56d   : > { %v4141_v37 = vpop.f32.mrb[68].mxu0 }
 0x56e   : > { %v4142_v22 = vpop.f32.mrb[69].mxu0 }
 0x56f   : > { %v4143_v40 = vadd.f32 %v4142_v22, %v4141_v37  ;;  %v4144_v34 = vpop.f32.mrb[70].mxu0 }
 0x570   : > { %v4145_v42 = vpop.f32.mrb[71].mxu0 }
 0x571   : > { %v4146_v45 = vadd.f32 %v4145_v42, %v4144_v34  ;;  %v3530_v54 = vsel %vm3463_vm3, %v4143_v40, -inf  ;;  %v4051_v42 = vld [vmem:[#allocation8] ss:$0 sm:$0xff] }
 0x572   : > { %3531 = vmax.xlane.f32.xlu0 %v3530_v54 }
 0x573   : > { %v3533_v60 = vsel %vm3463_vm3, %v4146_v45, -inf }
 0x574   : > { %3534 = vmax.xlane.f32.xlu1 %v3533_v60 }
 0x575   : > { %v4147_v8 = vpop.f32.mrb[72].mxu0 }
 0x576   : > { %v4148_v51 = vpop.f32.mrb[73].mxu0 }
 0x577   : > { %v4149_v56 = vadd.f32 %v4148_v51, %v4147_v8  ;;  %v4150_v19 = vpop.f32.mrb[74].mxu0 }
 0x578   : > { %v4151_v48 = vpop.f32.mrb[75].mxu0 }
 0x579   : > { %v4152_v0 = vadd.f32 %v4151_v48, %v4150_v19  ;;  %v3536_v55 = vsel %vm3463_vm3, %v4149_v56, -inf }
 0x57a   : > { %3537 = vmax.xlane.f32.xlu0 %v3536_v55 }
 0x57b   : > { %v3539_v47 = vsel %vm3463_vm3, %v4152_v0, -inf  ;;  %vm3685_vm3 = vcmask 74752  }
 0x57c   : > { %3540 = vmax.xlane.f32.xlu1 %v3539_v47 }
 0x5b7   : > { %v3502_v17 = vpop.xlane.xlu0 %3501 }
 0x5b8   : > { %v3581_v9 = vmul.f32 %v3555_v49, %v3502_v17 }
 0x5b9   : > { %v3505_v46 = vpop.xlane.xlu1 %3504 }
 0x5ba   : > { %v3582_v2 = vmul.f32 %v3556_v32, %v3505_v46 }
 0x5bc   : > { %v4172_v62 = vpack.c.bf16 %v3582_v2, %v3581_v9 }
 0x5be   : > { %4173 = vmatpush1.bf16.msra.mxu0 %v4172_v62 }
 0x5bf   : > { %v3508_v13 = vpop.xlane.xlu0 %3507  ;;  %4174 = vmatprep.subr.bf16.mxu0 %v4525_v44 }
 0x5c0   : > { %v3583_v14 = vmul.f32 %v3557_v38, %v3508_v13 }
 0x5c1   : > { %v3511_v35 = vpop.xlane.xlu1 %3510 }
 0x5c2   : > { %v3584_v6 = vmul.f32 %v3558_v31, %v3511_v35 }
 0x5c4   : > { %v4175_v27 = vpack.c.bf16 %v3584_v6, %v3583_v14 }
 0x5c6   : > { %4176 = vmatpush1.bf16.msra.mxu0 %v4175_v27 }
 0x5c7   : > { %v3514_v29 = vpop.xlane.xlu0 %3513  ;;  %4177 = vmatprep.subr.bf16.mxu0 %v4525_v44 }
 0x5c8   : > { %v3585_v39 = vmul.f32 %v3559_v23, %v3514_v29 }
 0x5c9   : > { %v3517_v3 = vpop.xlane.xlu1 %3516 }
 0x5ca   : > { %v3586_v58 = vmul.f32 %v3560_v5, %v3517_v3 }
 0x5cc   : > { %v4178_v30 = vpack.c.bf16 %v3586_v58, %v3585_v39 }
 0x5ce   : > { %4179 = vmatpush1.bf16.msra.mxu0 %v4178_v30 }
 0x5cf   : > { %v3520_v10 = vpop.xlane.xlu0 %3519  ;;  %4180 = vmatprep.subr.bf16.mxu0 %v4525_v44 }
 0x5d0   : > { %v3587_v20 = vmul.f32 %v3561_v18, %v3520_v10 }
 0x5d1   : > { %v3523_v36 = vpop.xlane.xlu1 %3522 }
 0x5d2   : > { %v3588_v26 = vmul.f32 %v3562_v57, %v3523_v36 }
 0x5d4   : > { %v4181_v41 = vpack.c.bf16 %v3588_v26, %v3587_v20 }
 0x5d6   : > { %4182 = vmatpush1.bf16.msra.mxu0 %v4181_v41 }
 0x5d7   : > { %4183 = vmatprep.subr.bf16.mxu0 %v4525_v44 }
 0x5f7   : > { %v3526_v7 = vpop.xlane.xlu0 %3525 }
 0x5f8   : > { %v3589_v11 = vmul.f32 %v3563_v28, %v3526_v7 }
 0x5f9   : > { %v3529_v63 = vpop.xlane.xlu1 %3528 }
 0x5fa   : > { %v3590_v21 = vmul.f32 %v3564_v15, %v3529_v63 }
 0x5fc   : > { %v4184_v53 = vpack.c.bf16 %v3590_v21, %v3589_v11 }
 0x5fe   : > { %4185 = vmatpush1.bf16.msra.mxu0 %v4184_v53 }
 0x5ff   : > { %v3532_v33 = vpop.xlane.xlu0 %3531  ;;  %4186 = vmatprep.subr.bf16.mxu0 %v4525_v44 }
 0x600   : > { %v3591_v12 = vmul.f32 %v3565_v1, %v3532_v33 }
 0x601   : > { %v3535_v59 = vpop.xlane.xlu1 %3534 }
 0x602   : > { %v3592_v43 = vmul.f32 %v3566_v50, %v3535_v59 }
 0x604   : > { %v4187_v52 = vpack.c.bf16 %v3592_v43, %v3591_v12 }
 0x606   : > { %4188 = vmatpush1.bf16.msra.mxu0 %v4187_v52 }
 0x607   : > { %v3538_v25 = vpop.xlane.xlu0 %3537  ;;  %4189 = vmatprep.subr.bf16.mxu0 %v4525_v44 }
 0x608   : > { %v3593_v22 = vmul.f32 %v3567_v24, %v3538_v25 }
 0x609   : > { %v3541_v37 = vpop.xlane.xlu1 %3540 }
 0x60a   : > { %v3594_v40 = vmul.f32 %v3568_v61, %v3541_v37 }
 0x60c   : > { %v4190_v34 = vpack.c.bf16 %v3594_v40, %v3593_v22 }
 0x60e   : > { %4191 = vmatpush1.bf16.msra.mxu0 %v4190_v34 }
 0x611   : > { %3680 = vmatmul.mubr.f32.vlgmr.msra.gmra.mrb[76].mxu0 %v6543_v4 }
 0x6e4   : > { %v3681_v45 = vpop.f32.mrb[76].mxu0 }
 0x6e5   : > { %v3682_v54 = vadd.f32 %v4051_v42, %v3681_v45  ;;  %v3683_v60 = vpop.f32.mrb[77].mxu0 }
 0x6e7   : > { %3686 = vst.msk [vmem:[#allocation9] sm:$0x3] %vm3685_vm3, %v3682_v54 }
 0x6e8 PF: > { %p4222_p6 = scmp.eq.s32.totalorder %s4581_s25, 1  ;;  %s4526_s9 = smov [#allocation9]  }
 0x6e9   : > { %s3694_s12 = sshll.u32 %s4526_s9, 4  ;;  %s3695_s12 = int_to_ptr.vmem [resolvable:$true] %s3694_s12 }
 0x6ea   : > { %s4448_s16 = scalar_lea.vmem %s3695_s12, 32  ;;  %p4455_p13 = scmp.lt.s32.totalorder %s3695_s12, %s3695_s12 }
 0x6eb   : > { %p4449_p7 = scmp.ne.s32.totalorder %s3695_s12, %s4448_s16  ;;  %p4456_p5 = scmp.lt.s32.totalorder %s4448_s16, %s4448_s16 }
 0x6ed   : > { %p4450_p11 = pnand %p4449_p7, %p4222_p6  ;;  %p4457_p9 = por %p4456_p5, %p4455_p13 }
 0x6ef   : > { %p4451_p12 = pneg %p4450_p11 }
 0x6f1   : > { %p4458_p10 = pnand %p4457_p9, %p4451_p12 }
 0x6f3   : > { %4461 = shalt.err (!%p4458_p10)
}
 0x6f4   : > { %s4462_s13 = scalar_lea.hbm %s6638_s6, 32 }
 0x6f5   : > { %p4463_p1 = scmp.ne.s32.totalorder %s6638_s6, %s4462_s13  ;;  %p4468_p2 = scmp.lt.u32.totalorder %s4462_s13, %s6638_s6 }
 0x6f7   : > { %p4464_p8 = pnand %p4463_p1, %p4222_p6 }
 0x6f9   : > { %p4465_p0 = pneg %p4464_p8 }
 0x6fb   : > { %p4470_p3 = pnand %p4468_p2, %p4465_p0 }
 0x6fd   : > { %4473 = shalt.err (!%p4470_p3)
}
 0x6fe   : > { %4203 = dma.vmem_to_hbm [thread:$0]  (%p4222_p6), %s3695_s12, 32, %s6638_s6, [#allocation5]  }
 0x6ff   : > { %4499 = dma.done.wait (%p4222_p6), [#allocation5], 32  }
 0x700   : > { %4501 = vsyncadd (%p4222_p6), [#allocation5], 4294967264 }
 0x701 PF: > { %p18_p4 = scmp.ge.s32.totalorder %s4584_s26, 4   ;;  %s7320_s21 = smov %s4508_s22 }
 0x702   : > { %s7321_s22 = smov %s4512_s23  ;;  %s7322_s23 = smov %s4594_s29 }
 0x703   : > { %s7323_s24 = smov %s4584_s26  ;;  %20 = sbr.rel (!%p18_p4) target bundleno = 5 (0x5), region = 97 }
 0x70a   :  { %3707 = vsyncpa [#allocation4], 1 }
 0x70b   :  { %3709 = vsyncpa [#allocation4 + $0x1], 1 }
 0x70c   :  { %3710 = vsyncpa [#allocation7], 1 }
 0x70d   :  { %3711 = vsyncpa [#allocation5], 1 }
 0x70e   :  { %3713 = vsyncpa [#allocation5 + $0x1], 1 }

</bundles_post_ra>
